<compile_context>
chip_gen: v6e
topology: v6e:2x2x1
jax: 0.10.0
libtpu: 0.0.40
codegen_flags: <defaults>
</compile_context>

<pallas_src>
import functools

import jax
import jax.numpy as jnp
from jax.experimental import pallas as pl
from jax.experimental.pallas import tpu as pltpu

LEAKY_SLOPE = 0.1
BN_EPS = 1e-5
LANE = 128
# bf16 MXU operands (f32 accumulation) and bf16 inter-stage activations:
# the fast path on every TPU generation, and halves DMA bytes / VMEM.
MXU_DTYPE = jnp.bfloat16
ACT_DTYPE = jnp.bfloat16


def _round_up(v, m):
    return (v + m - 1) // m * m


def _lrelu(x):
    return jnp.maximum(x, LEAKY_SLOPE * x)


# ---------------- Pallas kernels ----------------

def conv_bn_stage_kernel(x_ref, scale_ref, shift_ref, w_ref, y_ref, ps_ref, *,
                         apply_act):
    """One fused stage on a (1, H, W, Cp) block.

    Optionally applies the previous stage's BatchNorm (folded to per-channel
    scale/shift) + LeakyReLU, zero-pads H/W by 1 (conv 'same' padding of the
    post-activation tensor), builds a (H*W, 9*Cp) im2col operand from 9 static
    slices, and runs ONE bf16 MXU matmul against the (9*Cp, Cp) weight matrix
    with f32 accumulation.  Also emits per-channel partial sum / sum-of-squares
    of the conv output for the cross-tile training-mode BatchNorm reduction.
    """
    hh, ww, cp = x_ref.shape[1], x_ref.shape[2], x_ref.shape[3]
    x = x_ref[0]                                   # (H, W, Cp)

    if apply_act:
        x = x * scale_ref[...] + shift_ref[...]    # promotes to f32
        x = _lrelu(x)
    x = x.astype(MXU_DTYPE)                        # single cast before the MXU

    # Zero-pad H and W by one on each side — no rolls / iotas / masks.
    xp = jnp.pad(x, ((1, 1), (1, 1), (0, 0)))      # (H+2, W+2, Cp) bf16

    # im2col: tap (dy, dx) -> columns [(dy*3+dx)*Cp : +Cp), matching w_ref rows.
    hw = hh * ww
    taps = [xp[dy:dy + hh, dx:dx + ww, :].reshape(hw, cp)
            for dy in range(3) for dx in range(3)]
    im2col = jnp.concatenate(taps, axis=1)         # (H*W, 9*Cp) bf16

    acc = jnp.dot(im2col, w_ref[...],
                  preferred_element_type=jnp.float32)   # (H*W, Cp) f32

    y_ref[0] = acc.reshape(hh, ww, cp).astype(y_ref.dtype)

    # Partial BN stats, kept in f32.  NOTE: E[x^2] - mean^2 can cancel for very
    # large activations; post-BN activations here are O(1), so it is benign
    # (a shifted / two-pass reduction would be the upgrade path otherwise).
    s = jnp.sum(acc, axis=0, keepdims=True)        # (1, Cp)
    sq = jnp.sum(acc * acc, axis=0, keepdims=True) # (1, Cp)
    ps_ref[0] = jnp.concatenate([s, sq], axis=0)   # (2, Cp)


def bn_res_act_kernel(y_ref, scale_ref, shift_ref, res_ref, o_ref):
    """Final BatchNorm + residual add + LeakyReLU (MaxPool2d(1) is identity)."""
    y = y_ref[...] * scale_ref[...] + shift_ref[...]   # bf16 * f32 -> f32
    y = y + res_ref[...]
    o_ref[...] = _lrelu(y).astype(o_ref.dtype)


# ---------------- wrapper ----------------

@jax.jit
def basic_dropblock_forward(x_nchw, params):
    w1, g1, b1, w2, g2, b2, w3, g3, b3 = params
    n, c, h, w = x_nchw.shape
    cp = _round_up(c, LANE)

    # NCHW -> lane-dense NHWC once; pad channels to a multiple of 128.
    x_nhwc = jnp.transpose(x_nchw, (0, 2, 3, 1)).astype(jnp.float32)
    x_p = jnp.pad(x_nhwc, ((0, 0), (0, 0), (0, 0), (0, cp - c)))

    def prep_w(wgt):
        # (Cout, Cin, 3, 3) OIHW -> (9*Cp_in, Cp_out) bf16; row block t = ky*3+kx.
        t = jnp.transpose(wgt.astype(jnp.float32), (2, 3, 1, 0)).reshape(9, c, c)
        t = jnp.pad(t, ((0, 0), (0, cp - c), (0, cp - c)))
        return t.reshape(9 * cp, cp).astype(MXU_DTYPE)

    def prep_gb(g, b):
        gp = jnp.pad(g.astype(jnp.float32), (0, cp - c), constant_values=1.0)
        bp = jnp.pad(b.astype(jnp.float32), (0, cp - c))
        return gp.reshape(1, cp), bp.reshape(1, cp)

    m_total = jnp.float32(n * h * w)

    def bn_affine(ps, gamma, beta):
        # Global (cross-tile) training-mode BatchNorm stats from partial sums.
        tot = jnp.sum(ps, axis=0)                        # (2, Cp)
        mean = tot[0:1] / m_total
        var = jnp.maximum(tot[1:2] / m_total - mean * mean, 0.0)
        scale = gamma * jax.lax.rsqrt(var + BN_EPS)
        shift = beta - mean * scale
        return scale, shift

    cparams = pltpu.CompilerParams(
        dimension_semantics=("parallel",),
        # Per-step working set (double-buffered bf16 tiles + in-kernel im2col /
        # accumulator temporaries) is a few MiB at these shapes; 32 MiB leaves
        # ample headroom while staying well under v7x's 64 MiB physical VMEM.
        vmem_limit_bytes=32 * 1024 * 1024)

    act_spec = pl.BlockSpec((1, h, w, cp), lambda i: (i, 0, 0, 0))
    vec_spec = pl.BlockSpec((1, cp), lambda i: (0, 0))
    w_spec = pl.BlockSpec((9 * cp, cp), lambda i: (0, 0))
    ps_spec = pl.BlockSpec((1, 2, cp), lambda i: (i, 0, 0))

    def conv_stage(x_in, wmat, scale, shift, apply_act):
        kern = functools.partial(conv_bn_stage_kernel, apply_act=apply_act)
        return pl.pallas_call(
            kern,
            grid=(n,),
            in_specs=[act_spec, vec_spec, vec_spec, w_spec],
            out_specs=[act_spec, ps_spec],
            out_shape=[jax.ShapeDtypeStruct((n, h, w, cp), ACT_DTYPE),
                       jax.ShapeDtypeStruct((n, 2, cp), jnp.float32)],
            compiler_params=cparams,
        )(x_in, scale, shift, wmat)

    ones = jnp.ones((1, cp), jnp.float32)
    zeros = jnp.zeros((1, cp), jnp.float32)

    # conv1 (raw input, no pre-activation).
    y1, ps1 = conv_stage(x_p, prep_w(w1), ones, zeros, apply_act=False)
    s1, t1 = bn_affine(ps1, *prep_gb(g1, b1))

    # bn1 + lrelu fused into conv2.
    y2, ps2 = conv_stage(y1, prep_w(w2), s1, t1, apply_act=True)
    s2, t2 = bn_affine(ps2, *prep_gb(g2, b2))

    # bn2 + lrelu fused into conv3.
    y3, ps3 = conv_stage(y2, prep_w(w3), s2, t2, apply_act=True)
    s3, t3 = bn_affine(ps3, *prep_gb(g3, b3))

    # bn3 + residual (downsample=None) + lrelu; MaxPool2d(1) == identity.
    out = pl.pallas_call(
        bn_res_act_kernel,
        grid=(n,),
        in_specs=[act_spec, vec_spec, vec_spec, act_spec],
        out_specs=act_spec,
        out_shape=jax.ShapeDtypeStruct((n, h, w, cp), jnp.float32),
        compiler_params=cparams,
    )(y3, s3, t3, x_p)

    # drop_rate == 0 (module default) -> dropout / DropBlock branch never taken.
    # TODO(synk): DropBlock class is not defined in the reference; branch unused.
    # NOTE: in a full network the padded-NHWC activation would be fed to the
    # next block directly; the slice + transpose below only restores the
    # module's NCHW contract for verification.
    return jnp.transpose(out[..., :c], (0, 3, 1, 2))


# ---------------- pure-JAX reference (verification only) ----------------

def _reference_forward(x_nchw, params):
    w1, g1, b1, w2, g2, b2, w3, g3, b3 = params

    def conv(x, wgt):
        return jax.lax.conv_general_dilated(
            x, wgt, window_strides=(1, 1), padding=((1, 1), (1, 1)),
            dimension_numbers=("NCHW", "OIHW", "NCHW"))

    def bn(x, g, b):
        mu = jnp.mean(x, axis=(0, 2, 3), keepdims=True)
        var = jnp.mean((x - mu) ** 2, axis=(0, 2, 3), keepdims=True)
        return ((x - mu) * jax.lax.rsqrt(var + BN_EPS)
                * g.reshape(1, -1, 1, 1) + b.reshape(1, -1, 1, 1))

    out = _lrelu(bn(conv(x_nchw, w1), g1, b1))
    out = _lrelu(bn(conv(out, w2), g2, b2))
    out = bn(conv(out, w3), g3, b3)
    out = _lrelu(out + x_nchw)
    return out


if __name__ == "__main__":
    key = jax.random.PRNGKey(0)
    kx, kw1, kw2, kw3, kg, kb = jax.random.split(key, 6)

    # inplanes == planes == 4 (residual path valid with downsample=None)
    N, C, H, W = 2, 4, 16, 16
    x = jax.random.normal(kx, (N, C, H, W), jnp.float32)

    def conv_w(k):
        return 0.2 * jax.random.normal(k, (C, C, 3, 3), jnp.float32)

    gammas = 1.0 + 0.1 * jax.random.normal(kg, (3, C), jnp.float32)
    betas = 0.1 * jax.random.normal(kb, (3, C), jnp.float32)
    params = (conv_w(kw1), gammas[0], betas[0],
              conv_w(kw2), gammas[1], betas[1],
              conv_w(kw3), gammas[2], betas[2])

    out = jax.block_until_ready(basic_dropblock_forward(x, params))
    ref = jax.block_until_ready(_reference_forward(x, params))

    assert out.shape == (N, C, H, W)
    err = float(jnp.max(jnp.abs(out - ref)))
    ref_scale = float(jnp.max(jnp.abs(ref)))
    # Tolerance derived from the bf16 operand path: ~2^-8 relative error per
    # conv stage (f32 accumulation) plus bf16 inter-stage stores, compounded
    # over three chained stages -> allow ~3% of the output scale.
    tol = 3e-2 * max(ref_scale, 1.0)
    assert err < tol, (err, tol)
    print("KERNEL_OK")
</pallas_src>

<mosaic_0001>
module attributes {stable_mosaic.version = 11 : i64} {
  func.func @conv_bn_stage_kernel(%arg0: i32, %arg1: memref<1x16x16x128xf32, #tpu.memory_space<vmem>>, %arg2: memref<1x128xf32, #tpu.memory_space<vmem>>, %arg3: memref<1x128xf32, #tpu.memory_space<vmem>>, %arg4: memref<1152x128xbf16, #tpu.memory_space<vmem>>, %arg5: memref<1x16x16x128xbf16, #tpu.memory_space<vmem>>, %arg6: memref<1x2x128xf32, #tpu.memory_space<vmem>>) attributes {dimension_semantics = [#tpu.dimension_semantics<parallel>], iteration_bounds = array<i64: 2>, scalar_prefetch = 0 : i64, scratch_operands = 0 : i64, tpu.core_type = #tpu.core_type<tc>, window_params = [{transform_indices = @transform_0, window_bounds = array<i64: 1, 16, 16, 128>}, {pipeline_mode = #tpu.pipeline_mode<synchronous>, transform_indices = @transform_1, window_bounds = array<i64: 1, 128>}, {pipeline_mode = #tpu.pipeline_mode<synchronous>, transform_indices = @transform_2, window_bounds = array<i64: 1, 128>}, {pipeline_mode = #tpu.pipeline_mode<synchronous>, transform_indices = @transform_3, window_bounds = array<i64: 1152, 128>}, {transform_indices = @transform_4, window_bounds = array<i64: 1, 16, 16, 128>}, {transform_indices = @transform_5, window_bounds = array<i64: 1, 2, 128>}]} {
    %c0 = arith.constant 0 : index
    %c0_0 = arith.constant 0 : index
    %c0_1 = arith.constant 0 : index
    %c0_2 = arith.constant 0 : index
    %0 = vector.load %arg1[%c0, %c0_0, %c0_1, %c0_2] : memref<1x16x16x128xf32, #tpu.memory_space<vmem>>, vector<1x16x16x128xf32>
    %1 = vector.shape_cast %0 : vector<1x16x16x128xf32> to vector<16x16x128xf32>
    %2 = arith.truncf %1 : vector<16x16x128xf32> to vector<16x16x128xbf16>
    %c0_i32 = arith.constant 0 : i32
    %3 = arith.sitofp %c0_i32 : i32 to bf16
    %4 = vector.broadcast %3 : bf16 to vector<1x16x128xbf16>
    %5 = tpu.concatenate %4, %2 in 0 : vector<1x16x128xbf16>, vector<16x16x128xbf16> -> vector<17x16x128xbf16>
    %6 = vector.broadcast %3 : bf16 to vector<1x16x128xbf16>
    %7 = tpu.concatenate %5, %6 in 0 : vector<17x16x128xbf16>, vector<1x16x128xbf16> -> vector<18x16x128xbf16>
    %8 = vector.broadcast %3 : bf16 to vector<18x1x128xbf16>
    %9 = tpu.concatenate %8, %7 in 1 : vector<18x1x128xbf16>, vector<18x16x128xbf16> -> vector<18x17x128xbf16>
    %10 = vector.broadcast %3 : bf16 to vector<18x1x128xbf16>
    %11 = tpu.concatenate %9, %10 in 1 : vector<18x17x128xbf16>, vector<18x1x128xbf16> -> vector<18x18x128xbf16>
    %12 = vector.extract_strided_slice %11 {offsets = [0, 0, 0], sizes = [16, 16, 128], strides = [1, 1, 1]} : vector<18x18x128xbf16> to vector<16x16x128xbf16>
    %13 = vector.shape_cast %12 : vector<16x16x128xbf16> to vector<256x128xbf16>
    %14 = vector.extract_strided_slice %11 {offsets = [0, 1, 0], sizes = [16, 16, 128], strides = [1, 1, 1]} : vector<18x18x128xbf16> to vector<16x16x128xbf16>
    %15 = vector.shape_cast %14 : vector<16x16x128xbf16> to vector<256x128xbf16>
    %16 = vector.extract_strided_slice %11 {offsets = [0, 2, 0], sizes = [16, 16, 128], strides = [1, 1, 1]} : vector<18x18x128xbf16> to vector<16x16x128xbf16>
    %17 = vector.shape_cast %16 : vector<16x16x128xbf16> to vector<256x128xbf16>
    %18 = vector.extract_strided_slice %11 {offsets = [1, 0, 0], sizes = [16, 16, 128], strides = [1, 1, 1]} : vector<18x18x128xbf16> to vector<16x16x128xbf16>
    %19 = vector.shape_cast %18 : vector<16x16x128xbf16> to vector<256x128xbf16>
    %20 = vector.extract_strided_slice %11 {offsets = [1, 1, 0], sizes = [16, 16, 128], strides = [1, 1, 1]} : vector<18x18x128xbf16> to vector<16x16x128xbf16>
    %21 = vector.shape_cast %20 : vector<16x16x128xbf16> to vector<256x128xbf16>
    %22 = vector.extract_strided_slice %11 {offsets = [1, 2, 0], sizes = [16, 16, 128], strides = [1, 1, 1]} : vector<18x18x128xbf16> to vector<16x16x128xbf16>
    %23 = vector.shape_cast %22 : vector<16x16x128xbf16> to vector<256x128xbf16>
    %24 = vector.extract_strided_slice %11 {offsets = [2, 0, 0], sizes = [16, 16, 128], strides = [1, 1, 1]} : vector<18x18x128xbf16> to vector<16x16x128xbf16>
    %25 = vector.shape_cast %24 : vector<16x16x128xbf16> to vector<256x128xbf16>
    %26 = vector.extract_strided_slice %11 {offsets = [2, 1, 0], sizes = [16, 16, 128], strides = [1, 1, 1]} : vector<18x18x128xbf16> to vector<16x16x128xbf16>
    %27 = vector.shape_cast %26 : vector<16x16x128xbf16> to vector<256x128xbf16>
    %28 = vector.extract_strided_slice %11 {offsets = [2, 2, 0], sizes = [16, 16, 128], strides = [1, 1, 1]} : vector<18x18x128xbf16> to vector<16x16x128xbf16>
    %29 = vector.shape_cast %28 : vector<16x16x128xbf16> to vector<256x128xbf16>
    %30 = tpu.concatenate %13, %15, %17, %19, %21, %23, %25, %27, %29 in 1 : vector<256x128xbf16>, vector<256x128xbf16>, vector<256x128xbf16>, vector<256x128xbf16>, vector<256x128xbf16>, vector<256x128xbf16>, vector<256x128xbf16>, vector<256x128xbf16>, vector<256x128xbf16> -> vector<256x1152xbf16>
    %c0_3 = arith.constant 0 : index
    %c0_4 = arith.constant 0 : index
    %31 = vector.load %arg4[%c0_3, %c0_4] : memref<1152x128xbf16, #tpu.memory_space<vmem>>, vector<1152x128xbf16>
    %cst = arith.constant dense<0.000000e+00> : vector<256x128xf32>
    %32 = tpu.matmul %30, %31, %cst {dimension_numbers = #tpu.dot_dimension_numbers<[1], [0], [0], [1], [0, 0, 1, 1], [], []>} : vector<256x1152xbf16>, vector<1152x128xbf16>, vector<256x128xf32> -> vector<256x128xf32>
    %33 = vector.shape_cast %32 : vector<256x128xf32> to vector<16x16x128xf32>
    %34 = arith.truncf %33 : vector<16x16x128xf32> to vector<16x16x128xbf16>
    %c0_5 = arith.constant 0 : index
    %c0_6 = arith.constant 0 : index
    %c0_7 = arith.constant 0 : index
    %c0_8 = arith.constant 0 : index
    %35 = vector.load %arg5[%c0_5, %c0_6, %c0_7, %c0_8] : memref<1x16x16x128xbf16, #tpu.memory_space<vmem>>, vector<1x16x16x128xbf16>
    %36 = vector.shape_cast %35 : vector<1x16x16x128xbf16> to vector<16x16x128xbf16>
    %37 = vector.shape_cast %34 : vector<16x16x128xbf16> to vector<1x16x16x128xbf16>
    tpu.vector_store %arg5[%c0_5, %c0_6, %c0_7, %c0_8], %37 {strides = array<i32>} : memref<1x16x16x128xbf16, #tpu.memory_space<vmem>>, vector<1x16x16x128xbf16>,
    %cst_9 = arith.constant dense<0.000000e+00> : vector<128xf32>
    %38 = vector.multi_reduction <add>, %32, %cst_9 [0] : vector<256x128xf32> to vector<128xf32>
    %39 = vector.shape_cast %38 : vector<128xf32> to vector<1x128xf32>
    %40 = arith.mulf %32, %32 : vector<256x128xf32>
    %cst_10 = arith.constant dense<0.000000e+00> : vector<128xf32>
    %41 = vector.multi_reduction <add>, %40, %cst_10 [0] : vector<256x128xf32> to vector<128xf32>
    %42 = vector.shape_cast %41 : vector<128xf32> to vector<1x128xf32>
    %43 = tpu.concatenate %39, %42 in 0 : vector<1x128xf32>, vector<1x128xf32> -> vector<2x128xf32>
    %c0_11 = arith.constant 0 : index
    %c0_12 = arith.constant 0 : index
    %c0_13 = arith.constant 0 : index
    %44 = vector.load %arg6[%c0_11, %c0_12, %c0_13] : memref<1x2x128xf32, #tpu.memory_space<vmem>>, vector<1x2x128xf32>
    %45 = vector.shape_cast %44 : vector<1x2x128xf32> to vector<2x128xf32>
    %46 = vector.shape_cast %43 : vector<2x128xf32> to vector<1x2x128xf32>
    tpu.vector_store %arg6[%c0_11, %c0_12, %c0_13], %46 {strides = array<i32>} : memref<1x2x128xf32, #tpu.memory_space<vmem>>, vector<1x2x128xf32>,
    return
  }
  func.func @transform_0(%arg0: i32) -> (i32, i32, i32, i32) {
    %c0_i32 = arith.constant 0 : i32
    %c0_i32_0 = arith.constant 0 : i32
    %c0_i32_1 = arith.constant 0 : i32
    %c0_i32_2 = arith.constant 0 : i32
    return %arg0, %c0_i32, %c0_i32_0, %c0_i32_1 : i32, i32, i32, i32
  }
  func.func @transform_1(%arg0: i32) -> (i32, i32) {
    %c0_i32 = arith.constant 0 : i32
    %c0_i32_0 = arith.constant 0 : i32
    %c0_i32_1 = arith.constant 0 : i32
    return %c0_i32, %c0_i32_0 : i32, i32
  }
  func.func @transform_2(%arg0: i32) -> (i32, i32) {
    %c0_i32 = arith.constant 0 : i32
    %c0_i32_0 = arith.constant 0 : i32
    %c0_i32_1 = arith.constant 0 : i32
    return %c0_i32, %c0_i32_0 : i32, i32
  }
  func.func @transform_3(%arg0: i32) -> (i32, i32) {
    %c0_i32 = arith.constant 0 : i32
    %c0_i32_0 = arith.constant 0 : i32
    %c0_i32_1 = arith.constant 0 : i32
    return %c0_i32, %c0_i32_0 : i32, i32
  }
  func.func @transform_4(%arg0: i32) -> (i32, i32, i32, i32) {
    %c0_i32 = arith.constant 0 : i32
    %c0_i32_0 = arith.constant 0 : i32
    %c0_i32_1 = arith.constant 0 : i32
    %c0_i32_2 = arith.constant 0 : i32
    return %arg0, %c0_i32, %c0_i32_0, %c0_i32_1 : i32, i32, i32, i32
  }
  func.func @transform_5(%arg0: i32) -> (i32, i32, i32) {
    %c0_i32 = arith.constant 0 : i32
    %c0_i32_0 = arith.constant 0 : i32
    %c0_i32_1 = arith.constant 0 : i32
    return %arg0, %c0_i32, %c0_i32_0 : i32, i32, i32
  }
}

module attributes {stable_mosaic.version = 11 : i64} {
  func.func @conv_bn_stage_kernel(%arg0: i32, %arg1: memref<1x16x16x128xbf16, #tpu.memory_space<vmem>>, %arg2: memref<1x128xf32, #tpu.memory_space<vmem>>, %arg3: memref<1x128xf32, #tpu.memory_space<vmem>>, %arg4: memref<1152x128xbf16, #tpu.memory_space<vmem>>, %arg5: memref<1x16x16x128xbf16, #tpu.memory_space<vmem>>, %arg6: memref<1x2x128xf32, #tpu.memory_space<vmem>>) attributes {dimension_semantics = [#tpu.dimension_semantics<parallel>], iteration_bounds = array<i64: 2>, scalar_prefetch = 0 : i64, scratch_operands = 0 : i64, tpu.core_type = #tpu.core_type<tc>, window_params = [{transform_indices = @transform_0, window_bounds = array<i64: 1, 16, 16, 128>}, {pipeline_mode = #tpu.pipeline_mode<synchronous>, transform_indices = @transform_1, window_bounds = array<i64: 1, 128>}, {pipeline_mode = #tpu.pipeline_mode<synchronous>, transform_indices = @transform_2, window_bounds = array<i64: 1, 128>}, {pipeline_mode = #tpu.pipeline_mode<synchronous>, transform_indices = @transform_3, window_bounds = array<i64: 1152, 128>}, {transform_indices = @transform_4, window_bounds = array<i64: 1, 16, 16, 128>}, {transform_indices = @transform_5, window_bounds = array<i64: 1, 2, 128>}]} {
    %c0 = arith.constant 0 : index
    %c0_0 = arith.constant 0 : index
    %c0_1 = arith.constant 0 : index
    %c0_2 = arith.constant 0 : index
    %0 = vector.load %arg1[%c0, %c0_0, %c0_1, %c0_2] : memref<1x16x16x128xbf16, #tpu.memory_space<vmem>>, vector<1x16x16x128xbf16>
    %1 = vector.shape_cast %0 : vector<1x16x16x128xbf16> to vector<16x16x128xbf16>
    %c0_3 = arith.constant 0 : index
    %c0_4 = arith.constant 0 : index
    %2 = vector.load %arg2[%c0_3, %c0_4] : memref<1x128xf32, #tpu.memory_space<vmem>>, vector<1x128xf32>
    %3 = arith.extf %1 : vector<16x16x128xbf16> to vector<16x16x128xf32>
    %4 = vector.shape_cast %2 : vector<1x128xf32> to vector<1x1x128xf32>
    %5 = vector.broadcast %4 : vector<1x1x128xf32> to vector<16x16x128xf32>
    %6 = arith.mulf %3, %5 : vector<16x16x128xf32>
    %c0_5 = arith.constant 0 : index
    %c0_6 = arith.constant 0 : index
    %7 = vector.load %arg3[%c0_5, %c0_6] : memref<1x128xf32, #tpu.memory_space<vmem>>, vector<1x128xf32>
    %8 = vector.shape_cast %7 : vector<1x128xf32> to vector<1x1x128xf32>
    %9 = vector.broadcast %8 : vector<1x1x128xf32> to vector<16x16x128xf32>
    %10 = arith.addf %6, %9 : vector<16x16x128xf32>
    %cst = arith.constant 1.000000e-01 : f32
    %11 = vector.broadcast %cst : f32 to vector<16x16x128xf32>
    %12 = arith.mulf %11, %10 : vector<16x16x128xf32>
    %13 = arith.maximumf %10, %12 : vector<16x16x128xf32>
    %14 = arith.truncf %13 : vector<16x16x128xf32> to vector<16x16x128xbf16>
    %c0_i32 = arith.constant 0 : i32
    %15 = arith.sitofp %c0_i32 : i32 to bf16
    %16 = vector.broadcast %15 : bf16 to vector<1x16x128xbf16>
    %17 = tpu.concatenate %16, %14 in 0 : vector<1x16x128xbf16>, vector<16x16x128xbf16> -> vector<17x16x128xbf16>
    %18 = vector.broadcast %15 : bf16 to vector<1x16x128xbf16>
    %19 = tpu.concatenate %17, %18 in 0 : vector<17x16x128xbf16>, vector<1x16x128xbf16> -> vector<18x16x128xbf16>
    %20 = vector.broadcast %15 : bf16 to vector<18x1x128xbf16>
    %21 = tpu.concatenate %20, %19 in 1 : vector<18x1x128xbf16>, vector<18x16x128xbf16> -> vector<18x17x128xbf16>
    %22 = vector.broadcast %15 : bf16 to vector<18x1x128xbf16>
    %23 = tpu.concatenate %21, %22 in 1 : vector<18x17x128xbf16>, vector<18x1x128xbf16> -> vector<18x18x128xbf16>
    %24 = vector.extract_strided_slice %23 {offsets = [0, 0, 0], sizes = [16, 16, 128], strides = [1, 1, 1]} : vector<18x18x128xbf16> to vector<16x16x128xbf16>
    %25 = vector.shape_cast %24 : vector<16x16x128xbf16> to vector<256x128xbf16>
    %26 = vector.extract_strided_slice %23 {offsets = [0, 1, 0], sizes = [16, 16, 128], strides = [1, 1, 1]} : vector<18x18x128xbf16> to vector<16x16x128xbf16>
    %27 = vector.shape_cast %26 : vector<16x16x128xbf16> to vector<256x128xbf16>
    %28 = vector.extract_strided_slice %23 {offsets = [0, 2, 0], sizes = [16, 16, 128], strides = [1, 1, 1]} : vector<18x18x128xbf16> to vector<16x16x128xbf16>
    %29 = vector.shape_cast %28 : vector<16x16x128xbf16> to vector<256x128xbf16>
    %30 = vector.extract_strided_slice %23 {offsets = [1, 0, 0], sizes = [16, 16, 128], strides = [1, 1, 1]} : vector<18x18x128xbf16> to vector<16x16x128xbf16>
    %31 = vector.shape_cast %30 : vector<16x16x128xbf16> to vector<256x128xbf16>
    %32 = vector.extract_strided_slice %23 {offsets = [1, 1, 0], sizes = [16, 16, 128], strides = [1, 1, 1]} : vector<18x18x128xbf16> to vector<16x16x128xbf16>
    %33 = vector.shape_cast %32 : vector<16x16x128xbf16> to vector<256x128xbf16>
    %34 = vector.extract_strided_slice %23 {offsets = [1, 2, 0], sizes = [16, 16, 128], strides = [1, 1, 1]} : vector<18x18x128xbf16> to vector<16x16x128xbf16>
    %35 = vector.shape_cast %34 : vector<16x16x128xbf16> to vector<256x128xbf16>
    %36 = vector.extract_strided_slice %23 {offsets = [2, 0, 0], sizes = [16, 16, 128], strides = [1, 1, 1]} : vector<18x18x128xbf16> to vector<16x16x128xbf16>
    %37 = vector.shape_cast %36 : vector<16x16x128xbf16> to vector<256x128xbf16>
    %38 = vector.extract_strided_slice %23 {offsets = [2, 1, 0], sizes = [16, 16, 128], strides = [1, 1, 1]} : vector<18x18x128xbf16> to vector<16x16x128xbf16>
    %39 = vector.shape_cast %38 : vector<16x16x128xbf16> to vector<256x128xbf16>
    %40 = vector.extract_strided_slice %23 {offsets = [2, 2, 0], sizes = [16, 16, 128], strides = [1, 1, 1]} : vector<18x18x128xbf16> to vector<16x16x128xbf16>
    %41 = vector.shape_cast %40 : vector<16x16x128xbf16> to vector<256x128xbf16>
    %42 = tpu.concatenate %25, %27, %29, %31, %33, %35, %37, %39, %41 in 1 : vector<256x128xbf16>, vector<256x128xbf16>, vector<256x128xbf16>, vector<256x128xbf16>, vector<256x128xbf16>, vector<256x128xbf16>, vector<256x128xbf16>, vector<256x128xbf16>, vector<256x128xbf16> -> vector<256x1152xbf16>
    %c0_7 = arith.constant 0 : index
    %c0_8 = arith.constant 0 : index
    %43 = vector.load %arg4[%c0_7, %c0_8] : memref<1152x128xbf16, #tpu.memory_space<vmem>>, vector<1152x128xbf16>
    %cst_9 = arith.constant dense<0.000000e+00> : vector<256x128xf32>
    %44 = tpu.matmul %42, %43, %cst_9 {dimension_numbers = #tpu.dot_dimension_numbers<[1], [0], [0], [1], [0, 0, 1, 1], [], []>} : vector<256x1152xbf16>, vector<1152x128xbf16>, vector<256x128xf32> -> vector<256x128xf32>
    %45 = vector.shape_cast %44 : vector<256x128xf32> to vector<16x16x128xf32>
    %46 = arith.truncf %45 : vector<16x16x128xf32> to vector<16x16x128xbf16>
    %c0_10 = arith.constant 0 : index
    %c0_11 = arith.constant 0 : index
    %c0_12 = arith.constant 0 : index
    %c0_13 = arith.constant 0 : index
    %47 = vector.load %arg5[%c0_10, %c0_11, %c0_12, %c0_13] : memref<1x16x16x128xbf16, #tpu.memory_space<vmem>>, vector<1x16x16x128xbf16>
    %48 = vector.shape_cast %47 : vector<1x16x16x128xbf16> to vector<16x16x128xbf16>
    %49 = vector.shape_cast %46 : vector<16x16x128xbf16> to vector<1x16x16x128xbf16>
    tpu.vector_store %arg5[%c0_10, %c0_11, %c0_12, %c0_13], %49 {strides = array<i32>} : memref<1x16x16x128xbf16, #tpu.memory_space<vmem>>, vector<1x16x16x128xbf16>,
    %cst_14 = arith.constant dense<0.000000e+00> : vector<128xf32>
    %50 = vector.multi_reduction <add>, %44, %cst_14 [0] : vector<256x128xf32> to vector<128xf32>
    %51 = vector.shape_cast %50 : vector<128xf32> to vector<1x128xf32>
    %52 = arith.mulf %44, %44 : vector<256x128xf32>
    %cst_15 = arith.constant dense<0.000000e+00> : vector<128xf32>
    %53 = vector.multi_reduction <add>, %52, %cst_15 [0] : vector<256x128xf32> to vector<128xf32>
    %54 = vector.shape_cast %53 : vector<128xf32> to vector<1x128xf32>
    %55 = tpu.concatenate %51, %54 in 0 : vector<1x128xf32>, vector<1x128xf32> -> vector<2x128xf32>
    %c0_16 = arith.constant 0 : index
    %c0_17 = arith.constant 0 : index
    %c0_18 = arith.constant 0 : index
    %56 = vector.load %arg6[%c0_16, %c0_17, %c0_18] : memref<1x2x128xf32, #tpu.memory_space<vmem>>, vector<1x2x128xf32>
    %57 = vector.shape_cast %56 : vector<1x2x128xf32> to vector<2x128xf32>
    %58 = vector.shape_cast %55 : vector<2x128xf32> to vector<1x2x128xf32>
    tpu.vector_store %arg6[%c0_16, %c0_17, %c0_18], %58 {strides = array<i32>} : memref<1x2x128xf32, #tpu.memory_space<vmem>>, vector<1x2x128xf32>,
    return
  }
  func.func @transform_0(%arg0: i32) -> (i32, i32, i32, i32) {
    %c0_i32 = arith.constant 0 : i32
    %c0_i32_0 = arith.constant 0 : i32
    %c0_i32_1 = arith.constant 0 : i32
    %c0_i32_2 = arith.constant 0 : i32
    return %arg0, %c0_i32, %c0_i32_0, %c0_i32_1 : i32, i32, i32, i32
  }
  func.func @transform_1(%arg0: i32) -> (i32, i32) {
    %c0_i32 = arith.constant 0 : i32
    %c0_i32_0 = arith.constant 0 : i32
    %c0_i32_1 = arith.constant 0 : i32
    return %c0_i32, %c0_i32_0 : i32, i32
  }
  func.func @transform_2(%arg0: i32) -> (i32, i32) {
    %c0_i32 = arith.constant 0 : i32
    %c0_i32_0 = arith.constant 0 : i32
    %c0_i32_1 = arith.constant 0 : i32
    return %c0_i32, %c0_i32_0 : i32, i32
  }
  func.func @transform_3(%arg0: i32) -> (i32, i32) {
    %c0_i32 = arith.constant 0 : i32
    %c0_i32_0 = arith.constant 0 : i32
    %c0_i32_1 = arith.constant 0 : i32
    return %c0_i32, %c0_i32_0 : i32, i32
  }
  func.func @transform_4(%arg0: i32) -> (i32, i32, i32, i32) {
    %c0_i32 = arith.constant 0 : i32
    %c0_i32_0 = arith.constant 0 : i32
    %c0_i32_1 = arith.constant 0 : i32
    %c0_i32_2 = arith.constant 0 : i32
    return %arg0, %c0_i32, %c0_i32_0, %c0_i32_1 : i32, i32, i32, i32
  }
  func.func @transform_5(%arg0: i32) -> (i32, i32, i32) {
    %c0_i32 = arith.constant 0 : i32
    %c0_i32_0 = arith.constant 0 : i32
    %c0_i32_1 = arith.constant 0 : i32
    return %arg0, %c0_i32, %c0_i32_0 : i32, i32, i32
  }
}

module attributes {stable_mosaic.version = 11 : i64} {
  func.func @bn_res_act_kernel(%arg0: i32, %arg1: memref<1x16x16x128xbf16, #tpu.memory_space<vmem>>, %arg2: memref<1x128xf32, #tpu.memory_space<vmem>>, %arg3: memref<1x128xf32, #tpu.memory_space<vmem>>, %arg4: memref<1x16x16x128xf32, #tpu.memory_space<vmem>>, %arg5: memref<1x16x16x128xf32, #tpu.memory_space<vmem>>) attributes {dimension_semantics = [#tpu.dimension_semantics<parallel>], iteration_bounds = array<i64: 2>, scalar_prefetch = 0 : i64, scratch_operands = 0 : i64, tpu.core_type = #tpu.core_type<tc>, window_params = [{transform_indices = @transform_0, window_bounds = array<i64: 1, 16, 16, 128>}, {pipeline_mode = #tpu.pipeline_mode<synchronous>, transform_indices = @transform_1, window_bounds = array<i64: 1, 128>}, {pipeline_mode = #tpu.pipeline_mode<synchronous>, transform_indices = @transform_2, window_bounds = array<i64: 1, 128>}, {transform_indices = @transform_3, window_bounds = array<i64: 1, 16, 16, 128>}, {transform_indices = @transform_4, window_bounds = array<i64: 1, 16, 16, 128>}]} {
    %c0 = arith.constant 0 : index
    %c0_0 = arith.constant 0 : index
    %c0_1 = arith.constant 0 : index
    %c0_2 = arith.constant 0 : index
    %0 = vector.load %arg1[%c0, %c0_0, %c0_1, %c0_2] : memref<1x16x16x128xbf16, #tpu.memory_space<vmem>>, vector<1x16x16x128xbf16>
    %c0_3 = arith.constant 0 : index
    %c0_4 = arith.constant 0 : index
    %1 = vector.load %arg2[%c0_3, %c0_4] : memref<1x128xf32, #tpu.memory_space<vmem>>, vector<1x128xf32>
    %2 = arith.extf %0 : vector<1x16x16x128xbf16> to vector<1x16x16x128xf32>
    %3 = vector.shape_cast %1 : vector<1x128xf32> to vector<1x1x1x128xf32>
    %4 = vector.broadcast %3 : vector<1x1x1x128xf32> to vector<1x16x16x128xf32>
    %5 = arith.mulf %2, %4 : vector<1x16x16x128xf32>
    %c0_5 = arith.constant 0 : index
    %c0_6 = arith.constant 0 : index
    %6 = vector.load %arg3[%c0_5, %c0_6] : memref<1x128xf32, #tpu.memory_space<vmem>>, vector<1x128xf32>
    %7 = vector.shape_cast %6 : vector<1x128xf32> to vector<1x1x1x128xf32>
    %8 = vector.broadcast %7 : vector<1x1x1x128xf32> to vector<1x16x16x128xf32>
    %9 = arith.addf %5, %8 : vector<1x16x16x128xf32>
    %c0_7 = arith.constant 0 : index
    %c0_8 = arith.constant 0 : index
    %c0_9 = arith.constant 0 : index
    %c0_10 = arith.constant 0 : index
    %10 = vector.load %arg4[%c0_7, %c0_8, %c0_9, %c0_10] : memref<1x16x16x128xf32, #tpu.memory_space<vmem>>, vector<1x16x16x128xf32>
    %11 = arith.addf %9, %10 : vector<1x16x16x128xf32>
    %cst = arith.constant 1.000000e-01 : f32
    %12 = vector.broadcast %cst : f32 to vector<1x16x16x128xf32>
    %13 = arith.mulf %12, %11 : vector<1x16x16x128xf32>
    %14 = arith.maximumf %11, %13 : vector<1x16x16x128xf32>
    %c0_11 = arith.constant 0 : index
    %c0_12 = arith.constant 0 : index
    %c0_13 = arith.constant 0 : index
    %c0_14 = arith.constant 0 : index
    %15 = vector.load %arg5[%c0_11, %c0_12, %c0_13, %c0_14] : memref<1x16x16x128xf32, #tpu.memory_space<vmem>>, vector<1x16x16x128xf32>
    tpu.vector_store %arg5[%c0_11, %c0_12, %c0_13, %c0_14], %14 {strides = array<i32>} : memref<1x16x16x128xf32, #tpu.memory_space<vmem>>, vector<1x16x16x128xf32>,
    return
  }
  func.func @transform_0(%arg0: i32) -> (i32, i32, i32, i32) {
    %c0_i32 = arith.constant 0 : i32
    %c0_i32_0 = arith.constant 0 : i32
    %c0_i32_1 = arith.constant 0 : i32
    %c0_i32_2 = arith.constant 0 : i32
    return %arg0, %c0_i32, %c0_i32_0, %c0_i32_1 : i32, i32, i32, i32
  }
  func.func @transform_1(%arg0: i32) -> (i32, i32) {
    %c0_i32 = arith.constant 0 : i32
    %c0_i32_0 = arith.constant 0 : i32
    %c0_i32_1 = arith.constant 0 : i32
    return %c0_i32, %c0_i32_0 : i32, i32
  }
  func.func @transform_2(%arg0: i32) -> (i32, i32) {
    %c0_i32 = arith.constant 0 : i32
    %c0_i32_0 = arith.constant 0 : i32
    %c0_i32_1 = arith.constant 0 : i32
    return %c0_i32, %c0_i32_0 : i32, i32
  }
  func.func @transform_3(%arg0: i32) -> (i32, i32, i32, i32) {
    %c0_i32 = arith.constant 0 : i32
    %c0_i32_0 = arith.constant 0 : i32
    %c0_i32_1 = arith.constant 0 : i32
    %c0_i32_2 = arith.constant 0 : i32
    return %arg0, %c0_i32, %c0_i32_0, %c0_i32_1 : i32, i32, i32, i32
  }
  func.func @transform_4(%arg0: i32) -> (i32, i32, i32, i32) {
    %c0_i32 = arith.constant 0 : i32
    %c0_i32_0 = arith.constant 0 : i32
    %c0_i32_1 = arith.constant 0 : i32
    %c0_i32_2 = arith.constant 0 : i32
    return %arg0, %c0_i32, %c0_i32_0, %c0_i32_1 : i32, i32, i32, i32
  }
}

</mosaic_0001>

<bundles_post_ra>
// kernel: basic_dropblock_forward.7
= control target key start
LH: loop header
LB: loop body
LE: loop exit
PB: predicated region body
PF: predicated region fallthrough
CT: control target
= control target key end

     0   :  { %s725_s15 = smov 0   ;;  %s913_s0 = inlined_call_operand.vmem [shape: bf16[2,16,16,128], index: 0, kind: input, shape index: {}]   ;;  %s914_s1 = inlined_call_operand.vmem [shape: f32[1,128], index: 1, kind: input, shape index: {}]   ;;  %s915_s2 = inlined_call_operand.vmem [shape: f32[1,128], index: 2, kind: input, shape index: {}]   ;;  %s916_s3 = inlined_call_operand.vmem [shape: f32[2,16,16,128], index: 3, kind: input, shape index: {}]   ;;  %s917_s4 = inlined_call_operand.vmem [shape: f32[2,16,16,128], index: 4, kind: output, shape index: {}]  }
   0x1 LB: > { %s587_s16 = sadd.s32 4294967295, %s698_s15   ;;  %p591_p0 = scmp.ge.s32.totalorder %s698_s15, 1  ;;  %s698_s15 = sphi %s725_s15, %s14_s15  }
   0x2   : > { %p172_p1 = scmp.lt.s32.totalorder %s698_s15, 3 }
   0x4   : > { %p173_p2 = pnand %p591_p0, %p172_p1 }
   0x5   : > { %p203_p3 = scmp.lt.s32.totalorder (!%p173_p2), %s587_s16, 1 }
   0x6   : > { %176 = sbr.rel (%p173_p2) target bundleno = 66 (0x42), region = 36 }
   0xb   : > { %s919_s16 = smov (!%p203_p3, %s587_s16), 1  ;;  %v746_v1 = vld [vmem:[%s914_s1] ss:$0 sm:$0xff] }
   0xc   : > { %s602_s17 = sshll.u32 %s919_s16, 7  ;;  %s603_s18 = sshll.u32 %s919_s16, 8  ;;  %v759_v5 = vld [vmem:[%s915_s2] ss:$0 sm:$0xff] }
   0xd   : > { %s740_s21 = scalar_lea.vmem %s913_s0, %s602_s17  ;;  %s753_s26 = scalar_lea.vmem %s916_s3, %s603_s18 }
   0xe   : > { %v606_v0 = vld [vmem:[%s740_s21] sm:$0xff]   ;;  %v669_v4 = vld [vmem:[%s740_s21 + $0x8] sm:$0xff]   ;;  %v670_v8 = vld [vmem:[%s740_s21 + $0x10] sm:$0xff]   ;;  %s792_s5 = scalar_lea.vmem %s917_s4, %s603_s18 }
   0xf   : > { %v607_v2 = vunpack.c.l.bf16 %v606_v0  ;;  %v608_v3 = vunpack.c.h.bf16 %v606_v0  ;;  %v611_v6 = vunpack.c.l.bf16 %v669_v4  ;;  %v612_v7 = vunpack.c.h.bf16 %v669_v4  ;;  %v671_v13 = vld [vmem:[%s740_s21 + $0x18] sm:$0xff]   ;;  %v360_v14 = vld [vmem:[%s753_s26] sm:$0xff]  ;;  %v361_v15 = vld [vmem:[%s753_s26 + $0x8] sm:$0xff] }
  0x10   : > { %v615_v11 = vunpack.c.l.bf16 %v670_v8  ;;  %v616_v12 = vunpack.c.h.bf16 %v670_v8  ;;  %v619_v18 = vunpack.c.l.bf16 %v671_v13  ;;  %v620_v19 = vunpack.c.h.bf16 %v671_v13  ;;  %v362_v22 = vld [vmem:[%s753_s26 + $0x10] sm:$0xff]  ;;  %v363_v23 = vld [vmem:[%s753_s26 + $0x18] sm:$0xff]  ;;  %v364_v28 = vld [vmem:[%s753_s26 + $0x20] sm:$0xff] }
  0x11   : > { %v289_v9 = vmul.f32 %v607_v2, %v746_v1  ;;  %v290_v10 = vmul.f32 %v608_v3, %v746_v1  ;;  %v291_v16 = vmul.f32 %v611_v6, %v746_v1  ;;  %v292_v17 = vmul.f32 %v612_v7, %v746_v1  ;;  %v365_v29 = vld [vmem:[%s753_s26 + $0x28] sm:$0xff]  ;;  %v366_v36 = vld [vmem:[%s753_s26 + $0x30] sm:$0xff]  ;;  %v367_v37 = vld [vmem:[%s753_s26 + $0x38] sm:$0xff] }
  0x12   : > { %v293_v24 = vmul.f32 %v615_v11, %v746_v1  ;;  %v294_v25 = vmul.f32 %v616_v12, %v746_v1  ;;  %v295_v30 = vmul.f32 %v619_v18, %v746_v1  ;;  %v296_v31 = vmul.f32 %v620_v19, %v746_v1  ;;  %v672_v50 = vld [vmem:[%s740_s21 + $0x20] sm:$0xff]   ;;  %v673_v55 = vld [vmem:[%s740_s21 + $0x28] sm:$0xff]   ;;  %v674_v60 = vld [vmem:[%s740_s21 + $0x30] sm:$0xff]  }
  0x13   : > { %v328_v20 = vadd.f32 %v759_v5, %v289_v9  ;;  %v329_v21 = vadd.f32 %v759_v5, %v290_v10  ;;  %v330_v26 = vadd.f32 %v759_v5, %v291_v16  ;;  %v331_v27 = vadd.f32 %v759_v5, %v292_v17  ;;  %v675_v2 = vld [vmem:[%s740_s21 + $0x38] sm:$0xff]   ;;  %v368_v12 = vld [vmem:[%s753_s26 + $0x40] sm:$0xff]  ;;  %v369_v13 = vld [vmem:[%s753_s26 + $0x48] sm:$0xff] }
  0x14   : > { %v332_v34 = vadd.f32 %v759_v5, %v293_v24  ;;  %v333_v35 = vadd.f32 %v759_v5, %v294_v25  ;;  %v334_v40 = vadd.f32 %v759_v5, %v295_v30  ;;  %v335_v41 = vadd.f32 %v759_v5, %v296_v31 }
  0x15   : > { %v392_v32 = vadd.f32 %v360_v14, %v328_v20  ;;  %v393_v33 = vadd.f32 %v361_v15, %v329_v21  ;;  %v394_v38 = vadd.f32 %v362_v22, %v330_v26  ;;  %v395_v39 = vadd.f32 %v363_v23, %v331_v27  ;;  %v370_v20 = vld [vmem:[%s753_s26 + $0x50] sm:$0xff]  ;;  %v371_v21 = vld [vmem:[%s753_s26 + $0x58] sm:$0xff]  ;;  %v372_v26 = vld [vmem:[%s753_s26 + $0x60] sm:$0xff] }
  0x16   : > { %v396_v44 = vadd.f32 %v364_v28, %v332_v34  ;;  %v397_v45 = vadd.f32 %v365_v29, %v333_v35  ;;  %v398_v48 = vadd.f32 %v366_v36, %v334_v40  ;;  %v399_v49 = vadd.f32 %v367_v37, %v335_v41  ;;  %v373_v27 = vld [vmem:[%s753_s26 + $0x68] sm:$0xff]  ;;  %v374_v34 = vld [vmem:[%s753_s26 + $0x70] sm:$0xff]  ;;  %v375_v35 = vld [vmem:[%s753_s26 + $0x78] sm:$0xff] }
  0x17   : > { %v424_v42 = vmul.f32 0.1, %v392_v32  ;;  %v425_v43 = vmul.f32 0.1, %v393_v33  ;;  %v426_v46 = vmul.f32 0.1, %v394_v38  ;;  %v623_v63 = vunpack.c.l.bf16 %v672_v50 }
  0x18   : > { %v427_v47 = vmul.f32 0.1, %v395_v39  ;;  %v428_v53 = vmul.f32 0.1, %v396_v44  ;;  %v429_v54 = vmul.f32 0.1, %v397_v45  ;;  %v624_v0 = vunpack.c.h.bf16 %v672_v50 }
  0x19   : > { %v456_v51 = vmax.f32 %v392_v32, %v424_v42  ;;  %v457_v52 = vmax.f32 %v393_v33, %v425_v43  ;;  %v458_v56 = vmax.f32 %v394_v38, %v426_v46  ;;  %v430_v58 = vmul.f32 0.1, %v398_v48 }
  0x1a   : > { %v459_v57 = vmax.f32 %v395_v39, %v427_v47  ;;  %v431_v59 = vmul.f32 0.1, %v399_v49  ;;  %v460_v61 = vmax.f32 %v396_v44, %v428_v53  ;;  %v461_v62 = vmax.f32 %v397_v45, %v429_v54  ;;  %v677_v53 = vld [vmem:[%s740_s21 + $0x48] sm:$0xff]  }
  0x1b   : > { %488 = vst [vmem:[%s792_s5] sm:$0xff] %v456_v51  ;;  %489 = vst [vmem:[%s792_s5 + $0x8] sm:$0xff] %v457_v52  ;;  %v462_v3 = vmax.f32 %v398_v48, %v430_v58  ;;  %v627_v6 = vunpack.c.l.bf16 %v673_v55  ;;  %v628_v7 = vunpack.c.h.bf16 %v673_v55  ;;  %v297_v8 = vmul.f32 %v623_v63, %v746_v1  ;;  %v676_v48 = vld [vmem:[%s740_s21 + $0x40] sm:$0xff]   ;;  %v678_v58 = vld [vmem:[%s740_s21 + $0x50] sm:$0xff]  }
  0x1c   : > { %490 = vst [vmem:[%s792_s5 + $0x10] sm:$0xff] %v458_v56  ;;  %491 = vst [vmem:[%s792_s5 + $0x18] sm:$0xff] %v459_v57  ;;  %v463_v4 = vmax.f32 %v399_v49, %v431_v59  ;;  %v298_v9 = vmul.f32 %v624_v0, %v746_v1  ;;  %v631_v10 = vunpack.c.l.bf16 %v674_v60  ;;  %v632_v11 = vunpack.c.h.bf16 %v674_v60  ;;  %v679_v63 = vld [vmem:[%s740_s21 + $0x58] sm:$0xff]  }
  0x1d   : > { %492 = vst [vmem:[%s792_s5 + $0x20] sm:$0xff] %v460_v61  ;;  %493 = vst [vmem:[%s792_s5 + $0x28] sm:$0xff] %v461_v62  ;;  %v299_v14 = vmul.f32 %v627_v6, %v746_v1  ;;  %v300_v15 = vmul.f32 %v628_v7, %v746_v1  ;;  %v635_v16 = vunpack.c.l.bf16 %v675_v2  ;;  %v636_v17 = vunpack.c.h.bf16 %v675_v2 }
  0x1e   : > { %494 = vst [vmem:[%s792_s5 + $0x30] sm:$0xff] %v462_v3  ;;  %495 = vst [vmem:[%s792_s5 + $0x38] sm:$0xff] %v463_v4  ;;  %v336_v18 = vadd.f32 %v759_v5, %v297_v8  ;;  %v337_v19 = vadd.f32 %v759_v5, %v298_v9  ;;  %v301_v22 = vmul.f32 %v631_v10, %v746_v1  ;;  %v639_v61 = vunpack.c.l.bf16 %v676_v48  ;;  %v376_v10 = vld [vmem:[%s753_s26 + $0x80] sm:$0xff] }
  0x1f   : > { %v302_v23 = vmul.f32 %v632_v11, %v746_v1  ;;  %v338_v24 = vadd.f32 %v759_v5, %v299_v14  ;;  %v339_v25 = vadd.f32 %v759_v5, %v300_v15  ;;  %v303_v28 = vmul.f32 %v635_v16, %v746_v1  ;;  %v377_v11 = vld [vmem:[%s753_s26 + $0x88] sm:$0xff] }
  0x20   : > { %v304_v29 = vmul.f32 %v636_v17, %v746_v1  ;;  %v400_v30 = vadd.f32 %v368_v12, %v336_v18  ;;  %v401_v31 = vadd.f32 %v369_v13, %v337_v19  ;;  %v340_v32 = vadd.f32 %v759_v5, %v301_v22  ;;  %v378_v18 = vld [vmem:[%s753_s26 + $0x90] sm:$0xff]  ;;  %v379_v19 = vld [vmem:[%s753_s26 + $0x98] sm:$0xff] }
  0x21   : > { %v341_v33 = vadd.f32 %v759_v5, %v302_v23  ;;  %v402_v36 = vadd.f32 %v370_v20, %v338_v24  ;;  %v403_v37 = vadd.f32 %v371_v21, %v339_v25  ;;  %v342_v38 = vadd.f32 %v759_v5, %v303_v28  ;;  %v380_v24 = vld [vmem:[%s753_s26 + $0xa0] sm:$0xff]  ;;  %v381_v25 = vld [vmem:[%s753_s26 + $0xa8] sm:$0xff] }
  0x22   : > { %v343_v39 = vadd.f32 %v759_v5, %v304_v29  ;;  %v432_v40 = vmul.f32 0.1, %v400_v30  ;;  %v433_v41 = vmul.f32 0.1, %v401_v31  ;;  %v404_v42 = vadd.f32 %v372_v26, %v340_v32  ;;  %v382_v32 = vld [vmem:[%s753_s26 + $0xb0] sm:$0xff] }
  0x23   : > { %v405_v43 = vadd.f32 %v373_v27, %v341_v33  ;;  %v434_v44 = vmul.f32 0.1, %v402_v36  ;;  %v435_v45 = vmul.f32 0.1, %v403_v37  ;;  %v406_v46 = vadd.f32 %v374_v34, %v342_v38  ;;  %v383_v33 = vld [vmem:[%s753_s26 + $0xb8] sm:$0xff] }
  0x24   : > { %v407_v47 = vadd.f32 %v375_v35, %v343_v39  ;;  %v464_v49 = vmax.f32 %v400_v30, %v432_v40  ;;  %v465_v50 = vmax.f32 %v401_v31, %v433_v41  ;;  %v436_v51 = vmul.f32 0.1, %v404_v42 }
  0x25   : > { %v437_v52 = vmul.f32 0.1, %v405_v43  ;;  %v466_v54 = vmax.f32 %v402_v36, %v434_v44  ;;  %v467_v55 = vmax.f32 %v403_v37, %v435_v45  ;;  %v438_v56 = vmul.f32 0.1, %v406_v46 }
  0x26   : > { %v439_v57 = vmul.f32 0.1, %v407_v47  ;;  %496 = vst [vmem:[%s792_s5 + $0x40] sm:$0xff] %v464_v49  ;;  %497 = vst [vmem:[%s792_s5 + $0x48] sm:$0xff] %v465_v50  ;;  %v468_v59 = vmax.f32 %v404_v42, %v436_v51  ;;  %v640_v62 = vunpack.c.h.bf16 %v676_v48  ;;  %v643_v3 = vunpack.c.l.bf16 %v677_v53  ;;  %v681_v51 = vld [vmem:[%s740_s21 + $0x68] sm:$0xff]  }
  0x27   : > { %v469_v60 = vmax.f32 %v405_v43, %v437_v52  ;;  %498 = vst [vmem:[%s792_s5 + $0x50] sm:$0xff] %v466_v54  ;;  %499 = vst [vmem:[%s792_s5 + $0x58] sm:$0xff] %v467_v55  ;;  %v470_v0 = vmax.f32 %v406_v46, %v438_v56  ;;  %v644_v4 = vunpack.c.h.bf16 %v677_v53  ;;  %v305_v6 = vmul.f32 %v639_v61, %v746_v1  ;;  %v680_v46 = vld [vmem:[%s740_s21 + $0x60] sm:$0xff]   ;;  %v682_v56 = vld [vmem:[%s740_s21 + $0x70] sm:$0xff]  }
  0x28   : > { %v471_v2 = vmax.f32 %v407_v47, %v439_v57  ;;  %500 = vst [vmem:[%s792_s5 + $0x60] sm:$0xff] %v468_v59  ;;  %v306_v7 = vmul.f32 %v640_v62, %v746_v1  ;;  %v647_v8 = vunpack.c.l.bf16 %v678_v58  ;;  %v648_v9 = vunpack.c.h.bf16 %v678_v58  ;;  %v683_v61 = vld [vmem:[%s740_s21 + $0x78] sm:$0xff]  }
  0x29   : > { %501 = vst [vmem:[%s792_s5 + $0x68] sm:$0xff] %v469_v60  ;;  %502 = vst [vmem:[%s792_s5 + $0x70] sm:$0xff] %v470_v0  ;;  %v307_v12 = vmul.f32 %v643_v3, %v746_v1  ;;  %v308_v13 = vmul.f32 %v644_v4, %v746_v1  ;;  %v651_v14 = vunpack.c.l.bf16 %v679_v63  ;;  %v652_v15 = vunpack.c.h.bf16 %v679_v63 }
  0x2a   : > { %503 = vst [vmem:[%s792_s5 + $0x78] sm:$0xff] %v471_v2  ;;  %v344_v16 = vadd.f32 %v759_v5, %v305_v6  ;;  %v345_v17 = vadd.f32 %v759_v5, %v306_v7  ;;  %v309_v20 = vmul.f32 %v647_v8, %v746_v1  ;;  %v310_v21 = vmul.f32 %v648_v9, %v746_v1  ;;  %v384_v8 = vld [vmem:[%s753_s26 + $0xc0] sm:$0xff]  ;;  %v385_v9 = vld [vmem:[%s753_s26 + $0xc8] sm:$0xff] }
  0x2b   : > { %v346_v22 = vadd.f32 %v759_v5, %v307_v12  ;;  %v347_v23 = vadd.f32 %v759_v5, %v308_v13  ;;  %v311_v26 = vmul.f32 %v651_v14, %v746_v1  ;;  %v312_v27 = vmul.f32 %v652_v15, %v746_v1 }
  0x2c   : > { %v408_v28 = vadd.f32 %v376_v10, %v344_v16  ;;  %v409_v29 = vadd.f32 %v377_v11, %v345_v17  ;;  %v348_v30 = vadd.f32 %v759_v5, %v309_v20  ;;  %v349_v31 = vadd.f32 %v759_v5, %v310_v21  ;;  %v386_v16 = vld [vmem:[%s753_s26 + $0xd0] sm:$0xff]  ;;  %v387_v17 = vld [vmem:[%s753_s26 + $0xd8] sm:$0xff] }
  0x2d   : > { %v410_v34 = vadd.f32 %v378_v18, %v346_v22  ;;  %v411_v35 = vadd.f32 %v379_v19, %v347_v23  ;;  %v350_v36 = vadd.f32 %v759_v5, %v311_v26  ;;  %v351_v37 = vadd.f32 %v759_v5, %v312_v27  ;;  %v388_v22 = vld [vmem:[%s753_s26 + $0xe0] sm:$0xff]  ;;  %v389_v23 = vld [vmem:[%s753_s26 + $0xe8] sm:$0xff] }
  0x2e   : > { %v440_v38 = vmul.f32 0.1, %v408_v28  ;;  %v441_v39 = vmul.f32 0.1, %v409_v29  ;;  %v412_v40 = vadd.f32 %v380_v24, %v348_v30  ;;  %v413_v41 = vadd.f32 %v381_v25, %v349_v31  ;;  %v390_v30 = vld [vmem:[%s753_s26 + $0xf0] sm:$0xff]  ;;  %v391_v31 = vld [vmem:[%s753_s26 + $0xf8] sm:$0xff] }
  0x2f   : > { %v442_v42 = vmul.f32 0.1, %v410_v34  ;;  %v443_v43 = vmul.f32 0.1, %v411_v35  ;;  %v414_v44 = vadd.f32 %v382_v32, %v350_v36  ;;  %v415_v45 = vadd.f32 %v383_v33, %v351_v37 }
  0x30   : > { %v472_v47 = vmax.f32 %v408_v28, %v440_v38  ;;  %v473_v48 = vmax.f32 %v409_v29, %v441_v39  ;;  %v444_v49 = vmul.f32 0.1, %v412_v40  ;;  %v445_v50 = vmul.f32 0.1, %v413_v41 }
  0x31   : > { %v474_v52 = vmax.f32 %v410_v34, %v442_v42  ;;  %v475_v53 = vmax.f32 %v411_v35, %v443_v43  ;;  %v446_v54 = vmul.f32 0.1, %v414_v44  ;;  %v447_v55 = vmul.f32 0.1, %v415_v45 }
  0x32   : > { %504 = vst [vmem:[%s792_s5 + $0x80] sm:$0xff] %v472_v47  ;;  %505 = vst [vmem:[%s792_s5 + $0x88] sm:$0xff] %v473_v48  ;;  %v476_v57 = vmax.f32 %v412_v40, %v444_v49  ;;  %v477_v58 = vmax.f32 %v413_v41, %v445_v50  ;;  %v655_v59 = vunpack.c.l.bf16 %v680_v46  ;;  %v656_v60 = vunpack.c.h.bf16 %v680_v46 }
  0x33   : > { %506 = vst [vmem:[%s792_s5 + $0x90] sm:$0xff] %v474_v52  ;;  %507 = vst [vmem:[%s792_s5 + $0x98] sm:$0xff] %v475_v53  ;;  %v478_v62 = vmax.f32 %v414_v44, %v446_v54  ;;  %v479_v63 = vmax.f32 %v415_v45, %v447_v55  ;;  %v659_v0 = vunpack.c.l.bf16 %v681_v51  ;;  %v660_v2 = vunpack.c.h.bf16 %v681_v51 }
  0x34   : > { %508 = vst [vmem:[%s792_s5 + $0xa0] sm:$0xff] %v476_v57  ;;  %509 = vst [vmem:[%s792_s5 + $0xa8] sm:$0xff] %v477_v58  ;;  %v313_v3 = vmul.f32 %v655_v59, %v746_v1  ;;  %v314_v4 = vmul.f32 %v656_v60, %v746_v1  ;;  %v663_v6 = vunpack.c.l.bf16 %v682_v56  ;;  %v664_v7 = vunpack.c.h.bf16 %v682_v56 }
  0x35   : > { %510 = vst [vmem:[%s792_s5 + $0xb0] sm:$0xff] %v478_v62  ;;  %511 = vst [vmem:[%s792_s5 + $0xb8] sm:$0xff] %v479_v63  ;;  %v315_v10 = vmul.f32 %v659_v0, %v746_v1  ;;  %v316_v11 = vmul.f32 %v660_v2, %v746_v1  ;;  %v667_v12 = vunpack.c.l.bf16 %v683_v61  ;;  %v668_v13 = vunpack.c.h.bf16 %v683_v61 }
  0x36   : > { %v352_v14 = vadd.f32 %v759_v5, %v313_v3  ;;  %v353_v15 = vadd.f32 %v759_v5, %v314_v4  ;;  %v317_v18 = vmul.f32 %v663_v6, %v746_v1  ;;  %v318_v19 = vmul.f32 %v664_v7, %v746_v1 }
  0x37   : > { %v354_v20 = vadd.f32 %v759_v5, %v315_v10  ;;  %v355_v21 = vadd.f32 %v759_v5, %v316_v11  ;;  %v319_v24 = vmul.f32 %v667_v12, %v746_v1  ;;  %v320_v25 = vmul.f32 %v668_v13, %v746_v1 }
  0x38   : > { %v416_v26 = vadd.f32 %v384_v8, %v352_v14  ;;  %v417_v27 = vadd.f32 %v385_v9, %v353_v15  ;;  %v356_v28 = vadd.f32 %v759_v5, %v317_v18  ;;  %v357_v29 = vadd.f32 %v759_v5, %v318_v19 }
  0x39   : > { %v418_v32 = vadd.f32 %v386_v16, %v354_v20  ;;  %v419_v33 = vadd.f32 %v387_v17, %v355_v21  ;;  %v358_v34 = vadd.f32 %v759_v5, %v319_v24  ;;  %v359_v35 = vadd.f32 %v759_v5, %v320_v25 }
  0x3a   : > { %v448_v36 = vmul.f32 0.1, %v416_v26  ;;  %v449_v37 = vmul.f32 0.1, %v417_v27  ;;  %v420_v38 = vadd.f32 %v388_v22, %v356_v28  ;;  %v421_v1 = vadd.f32 %v389_v23, %v357_v29 }
  0x3b   : > { %v450_v39 = vmul.f32 0.1, %v418_v32  ;;  %v451_v40 = vmul.f32 0.1, %v419_v33  ;;  %v422_v41 = vadd.f32 %v390_v30, %v358_v34  ;;  %v423_v42 = vadd.f32 %v391_v31, %v359_v35 }
  0x3c   : > { %v480_v43 = vmax.f32 %v416_v26, %v448_v36  ;;  %v481_v44 = vmax.f32 %v417_v27, %v449_v37  ;;  %v452_v45 = vmul.f32 0.1, %v420_v38  ;;  %v453_v46 = vmul.f32 0.1, %v421_v1 }
  0x3d   : > { %v482_v5 = vmax.f32 %v418_v32, %v450_v39  ;;  %v483_v47 = vmax.f32 %v419_v33, %v451_v40  ;;  %v454_v48 = vmul.f32 0.1, %v422_v41  ;;  %v455_v49 = vmul.f32 0.1, %v423_v42 }
  0x3e   : > { %512 = vst [vmem:[%s792_s5 + $0xc0] sm:$0xff] %v480_v43  ;;  %513 = vst [vmem:[%s792_s5 + $0xc8] sm:$0xff] %v481_v44  ;;  %v484_v50 = vmax.f32 %v420_v38, %v452_v45  ;;  %v485_v51 = vmax.f32 %v421_v1, %v453_v46 }
  0x3f   : > { %514 = vst [vmem:[%s792_s5 + $0xd0] sm:$0xff] %v482_v5  ;;  %515 = vst [vmem:[%s792_s5 + $0xd8] sm:$0xff] %v483_v47  ;;  %v486_v52 = vmax.f32 %v422_v41, %v454_v48  ;;  %v487_v53 = vmax.f32 %v423_v42, %v455_v49 }
  0x40   : > { %516 = vst [vmem:[%s792_s5 + $0xe0] sm:$0xff] %v484_v50  ;;  %517 = vst [vmem:[%s792_s5 + $0xe8] sm:$0xff] %v485_v51 }
  0x41   : > { %518 = vst [vmem:[%s792_s5 + $0xf0] sm:$0xff] %v486_v52  ;;  %519 = vst [vmem:[%s792_s5 + $0xf8] sm:$0xff] %v487_v53 }
  0x42 PF: > { %s14_s15 = sadd.s32 1, %s698_s15  }
  0x43   : > { %p11_p4 = scmp.ge.s32.totalorder %s14_s15, 4  }
  0x45   :  { %13 = sbr.rel (!%p11_p4) target bundleno = 1 (0x1), region = 69 }

// kernel: basic_dropblock_forward.4
= control target key start
LH: loop header
LB: loop body
LE: loop exit
PB: predicated region body
PF: predicated region fallthrough
CT: control target
= control target key end

     0   :  { %s3437_s18 = smov 0   ;;  %s4626_s0 = inlined_call_operand.vmem [shape: f32[2,16,16,128], index: 0, kind: input, shape index: {}]   ;;  %s4627_s1 = inlined_call_operand.vmem [shape: f32[1,128], index: 1, kind: input, shape index: {}]   ;;  %s4628_s2 = inlined_call_operand.vmem [shape: f32[1,128], index: 2, kind: input, shape index: {}]   ;;  %s4629_s3 = inlined_call_operand.vmem [shape: bf16[1152,128], index: 3, kind: input, shape index: {}]   ;;  %s4630_s4 = inlined_call_operand.vmem [shape: bf16[2,16,16,128], index: 4, kind: output, shape index: {0}]   ;;  %s4631_s5 = inlined_call_operand.vmem [shape: f32[2,2,128], index: 5, kind: output, shape index: {1}]  }
   0x1 LB: > { %s2536_s1 = sadd.s32 4294967295, %s3404_s18   ;;  %p2540_p0 = scmp.ge.s32.totalorder %s3404_s18, 1  ;;  %s3404_s18 = sphi %s3437_s18, %s16_s18  }
   0x2   : > { %p190_p1 = scmp.lt.s32.totalorder %s3404_s18, 3 }
   0x4   : > { %p191_p2 = pnand %p2540_p0, %p190_p1 }
   0x6   : > { %194 = sbr.rel (%p191_p2) target bundleno = 548 (0x224), region = 36 }
   0xb   : > { %v3326_v0 = vld [vmem:[%s4629_s3 + $0x78] sm:$0xff]   ;;  %v3328_v2 = vld [vmem:[%s4629_s3 + $0x70] sm:$0xff]   ;;  %p222_p3 = scmp.lt.s32.totalorder %s2536_s1, 1  ;;  %v3330_v4 = vld [vmem:[%s4629_s3 + $0x68] sm:$0xff]   ;;  %v3406_v9 = vmov 0   ;;  %vm438_vm0 = vcmask 1040384  }
   0xc   : > { %v3327_v1 = vld [vmem:[%s4629_s3 + $0x38] sm:$0xff]   ;;  %2781 = vmatprep.subr.bf16.mxu0 %v3326_v0  ;;  %3301 = vmatprep.subr.bf16.mxu1 %v3326_v0  ;;  %v3329_v3 = vld [vmem:[%s4629_s3 + $0x30] sm:$0xff]   ;;  %v3331_v5 = vld [vmem:[%s4629_s3 + $0x28] sm:$0xff]   ;;  %v288_v10 = vrot.slane %v3406_v9, 7  ;;  %vm439_vm1 = vsmask.f32 256 }
   0xd   : > { %2782 = vmatpush3.bf16.msra.mxu0 %v3327_v1  ;;  %3309 = vmatpush3.bf16.msra.mxu1 %v3327_v1  ;;  %s4653_s1 = smov (!%p222_p3, %s2536_s1), 1  ;;  %v3332_v6 = vld [vmem:[%s4629_s3 + $0x60] sm:$0xff]   ;;  %v3334_v8 = vld [vmem:[%s4629_s3 + $0x58] sm:$0xff]   ;;  %v3336_v12 = vld [vmem:[%s4629_s3 + $0x50] sm:$0xff]   ;;  %vm475_vm3 = vsmask.f32 7424 }
   0xe   : > { %2783 = vmatprep.subr.bf16.mxu0 %v3328_v2  ;;  %3302 = vmatprep.subr.bf16.mxu1 %v3328_v2  ;;  %s2652_s7 = sshll.u32 %s4653_s1, 8  ;;  %v3333_v7 = vld [vmem:[%s4629_s3 + $0x20] sm:$0xff]   ;;  %v3335_v11 = vld [vmem:[%s4629_s3 + $0x18] sm:$0xff]   ;;  %vm3489_vm2 = vmand %vm438_vm0, %vm439_vm1  ;;  %vm716_vm4 = vcmask 1046528   ;;  %s2545_s24 = sshll.u32 %s4653_s1, 1 }
   0xf   : > { %s3478_s14 = scalar_lea.vmem %s4626_s0, %s2652_s7  ;;  %v3337_v17 = vld [vmem:[%s4629_s3 + $0x10] sm:$0xff]   ;;  %v3498_v18 = vsel %vm3489_vm2, 0, %v288_v10  ;;  %v3502_v19 = vsel %vm3489_vm2, %v288_v10, 0  ;;  %v3338_v20 = vld [vmem:[%s4629_s3 + $0x48] sm:$0xff]   ;;  %v3340_v31 = vld [vmem:[%s4629_s3 + $0x40] sm:$0xff]   ;;  %s235_s27 = scalar_lea.vmem %s4631_s5, %s2545_s24 }
  0x10   : > { %v259_v13 = vld [vmem:[%s3478_s14 + $0xb0] sm:$0xff]  ;;  %v260_v14 = vld [vmem:[%s3478_s14 + $0xb8] sm:$0xff]  ;;  %v477_v21 = vshrl.u32 %v3498_v18, 16  ;;  %v479_v22 = vshll.u32 %v3498_v18, 16  ;;  %v484_v23 = vshll.u32 %v3502_v19, 16  ;;  %v3339_v28 = vld [vmem:[%s4629_s3 + $0x8] sm:$0xff]  }
  0x11   : > { %2784 = vmatpush3.bf16.msra.mxu0 %v3329_v3  ;;  %3310 = vmatpush3.bf16.msra.mxu1 %v3329_v3  ;;  %v280_v16 = vpack.c.bf16 %v260_v14, %v259_v13  ;;  %v237_v34 = vld [vmem:[%s3478_s14] sm:$0xff]  ;;  %v238_v35 = vld [vmem:[%s3478_s14 + $0x8] sm:$0xff]  ;;  %v3342_v46 = vld [vmem:[%s4629_s3 + $0xf8] sm:$0xff]  }
  0x12   : > { %2785 = vmatprep.subr.bf16.mxu0 %v3330_v4  ;;  %3303 = vmatprep.subr.bf16.mxu1 %v3330_v4  ;;  %v481_v26 = vrot.slane %v479_v22, 1  ;;  %v486_v27 = vrot.slane %v484_v23, 1  ;;  %v269_v38 = vpack.c.bf16 %v238_v35, %v237_v34  ;;  %v261_v39 = vld [vmem:[%s3478_s14 + $0xc0] sm:$0xff]  ;;  %v262_v40 = vld [vmem:[%s3478_s14 + $0xc8] sm:$0xff]  ;;  %v3343_v48 = vld [vmem:[%s4629_s3 + $0x178] sm:$0xff]  }
  0x13   : > { %v370_v24 = vshrl.u32 %v280_v16, 16  ;;  %v373_v25 = vshll.u32 %v280_v16, 16  ;;  %v3341_v41 = vld [vmem:[%s4629_s3] sm:$0xff]   ;;  %v281_v43 = vpack.c.bf16 %v262_v40, %v261_v39  ;;  %v3344_v55 = vld [vmem:[%s4629_s3 + $0xb8] sm:$0xff]   ;;  %v3346_v59 = vld [vmem:[%s4629_s3 + $0xf0] sm:$0xff]  }
  0x14   : > { %v482_v30 = vor.u32 %v481_v26, %v477_v21  ;;  %v293_v47 = vshrl.u32 %v269_v38, 16  ;;  %v296_v49 = vshll.u32 %v269_v38, 16  ;;  %v3345_v56 = vld [vmem:[%s4629_s3 + $0x138] sm:$0xff]   ;;  %v3351_v62 = vld [vmem:[%s4629_s3 + $0x170] sm:$0xff]   ;;  %v3348_v16 = vld [vmem:[%s4629_s3 + $0xe8] sm:$0xff]  }
  0x15   : > { %2786 = vmatpush3.bf16.msra.mxu0 %v3331_v5  ;;  %3311 = vmatpush3.bf16.msra.mxu1 %v3331_v5  ;;  %v372_v29 = vrot.slane %v370_v24, 7  ;;  %v377_v50 = vshrl.u32 %v281_v43, 16  ;;  %v380_v51 = vshll.u32 %v281_v43, 16  ;;  %v239_v5 = vld [vmem:[%s3478_s14 + $0x10] sm:$0xff]  ;;  %v241_v35 = vld [vmem:[%s3478_s14 + $0x20] sm:$0xff]  ;;  %v242_v40 = vld [vmem:[%s3478_s14 + $0x28] sm:$0xff] }
  0x16   : > { %2787 = vmatprep.subr.bf16.mxu0 %v3332_v6  ;;  %3304 = vmatprep.subr.bf16.mxu1 %v3332_v6  ;;  %v3523_v36 = vsel %vm475_vm3, %v482_v30, %v486_v27  ;;  %v295_v54 = vrot.slane %v293_v47, 7  ;;  %v240_v6 = vld [vmem:[%s3478_s14 + $0x18] sm:$0xff]  ;;  %v266_v43 = vld [vmem:[%s3478_s14 + $0xe8] sm:$0xff] }
  0x17   : > { %v375_v32 = vor.u32 %v373_v25, %v372_v29  ;;  %v3518_v33 = vsel %vm3489_vm2, %v372_v29, 0  ;;  %1408 = vmatprep.mubr.bf16.mxu0 %v3523_v36  ;;  %v379_v57 = vrot.slane %v377_v50, 7  ;;  %v3349_v29 = vld [vmem:[%s4629_s3 + $0xa8] sm:$0xff]  }
  0x18   : > { %v628_v37 = vshll.u32 %v3518_v33, 16  ;;  %v298_v60 = vor.u32 %v296_v49, %v295_v54  ;;  %v3555_v61 = vsel %vm3489_vm2, %v295_v54, 0  ;;  %v3352_v49 = vld [vmem:[%s4629_s3 + $0xa0] sm:$0xff]  }
  0x19   : > { %2788 = vmatpush3.bf16.msra.mxu0 %v3333_v7  ;;  %3312 = vmatpush3.bf16.msra.mxu1 %v3333_v7  ;;  %v3534_v42 = vsel %vm3489_vm2, 0, %v375_v32  ;;  %v496_v63 = vshll.u32 %v3555_v61, 16  ;;  %v382_v0 = vor.u32 %v380_v51, %v379_v57  ;;  %v3563_v1 = vsel %vm3489_vm2, %v379_v57, 0  ;;  %v263_v7 = vld [vmem:[%s3478_s14 + $0xd0] sm:$0xff] }
  0x1a   : > { %2789 = vmatprep.subr.bf16.mxu0 %v3334_v8  ;;  %3305 = vmatprep.subr.bf16.mxu1 %v3334_v8  ;;  %v621_v44 = vshrl.u32 %v3534_v42, 16  ;;  %v623_v45 = vshll.u32 %v3534_v42, 16  ;;  %v630_v53 = vrot.slane %v628_v37, 1  ;;  %v3570_v3 = vsel %vm3489_vm2, 0, %v298_v60  ;;  %v3347_v8 = vld [vmem:[%s4629_s3 + $0xb0] sm:$0xff]  }
  0x1b   : > { %v640_v4 = vshll.u32 %v3563_v1, 16  ;;  %v489_v9 = vshrl.u32 %v3570_v3, 16  ;;  %v491_v10 = vshll.u32 %v3570_v3, 16  ;;  %v498_v22 = vrot.slane %v496_v63, 1 }
  0x1c   : > { %v625_v52 = vrot.slane %v623_v45, 1  ;;  %v718_v37 = vrot.slane %v3502_v19, 1  ;;  %v3350_v45 = vld [vmem:[%s4629_s3 + $0xe0] sm:$0xff]  }
  0x1d   : > { %2790 = vmatpush3.bf16.msra.mxu0 %v3335_v11  ;;  %3313 = vmatpush3.bf16.msra.mxu1 %v3335_v11  ;;  %v3585_v11 = vsel %vm3489_vm2, 0, %v382_v0  ;;  %v493_v21 = vrot.slane %v491_v10, 1  ;;  %v642_v25 = vrot.slane %v640_v4, 1 }
  0x1e   : > { %2791 = vmatprep.subr.bf16.mxu0 %v3336_v12  ;;  %3306 = vmatprep.subr.bf16.mxu1 %v3336_v12  ;;  %v626_v58 = vor.u32 %v625_v52, %v621_v44  ;;  %v264_v12 = vld [vmem:[%s3478_s14 + $0xd8] sm:$0xff]  ;;  %v633_v13 = vshrl.u32 %v3585_v11, 16  ;;  %v635_v14 = vshll.u32 %v3585_v11, 16 }
  0x1f   : > { %v282_v23 = vpack.c.bf16 %v264_v12, %v263_v7  ;;  %v3361_v12 = vld [vmem:[%s4629_s3 + $0x128] sm:$0xff]  }
  0x20   : > { %v3566_v2 = vsel %vm475_vm3, %v626_v58, %v630_v53  ;;  %v637_v24 = vrot.slane %v635_v14, 1 }
  0x21   : > { %2792 = vmatpush3.bf16.msra.mxu0 %v3337_v17  ;;  %3314 = vmatpush3.bf16.msra.mxu1 %v3337_v17  ;;  %v3353_v17 = vld [vmem:[%s4629_s3 + $0x130] sm:$0xff]   ;;  %v384_v30 = vshrl.u32 %v282_v23, 16 }
  0x22   : > { %2793 = vmatprep.subr.bf16.mxu0 %v3338_v20  ;;  %3307 = vmatprep.subr.bf16.mxu1 %v3338_v20  ;;  %v270_v20 = vpack.c.bf16 %v240_v6, %v239_v5  ;;  %v638_v32 = vor.u32 %v637_v24, %v633_v13 }
  0x23   : > { %1504 = vmatprep.mubr.bf16.mxu1 %v3566_v2  ;;  %v386_v39 = vrot.slane %v384_v30, 7  ;;  %v244_v30 = vld [vmem:[%s3478_s14 + $0x38] sm:$0xff] }
  0x24   : > { %v300_v26 = vshrl.u32 %v270_v20, 16  ;;  %v303_v27 = vshll.u32 %v270_v20, 16  ;;  %v3610_v44 = vsel %vm475_vm3, %v638_v32, %v642_v25  ;;  %v243_v25 = vld [vmem:[%s3478_s14 + $0x30] sm:$0xff] }
  0x25   : > { %2794 = vmatpush3.bf16.msra.mxu0 %v3339_v28  ;;  %3315 = vmatpush3.bf16.msra.mxu1 %v3339_v28  ;;  %v494_v28 = vor.u32 %v493_v21, %v489_v9  ;;  %v3627_v52 = vsel %vm3489_vm2, %v386_v39, 0  ;;  %v3356_v32 = vld [vmem:[%s4629_s3 + $0xd0] sm:$0xff]  }
  0x26   : > { %2795 = vmatprep.subr.bf16.mxu0 %v3340_v31  ;;  %3308 = vmatprep.subr.bf16.mxu1 %v3340_v31  ;;  %v387_v31 = vshll.u32 %v282_v23, 16  ;;  %v302_v34 = vrot.slane %v300_v26, 7 }
  0x27   : > { %v3603_v38 = vsel %vm475_vm3, %v494_v28, %v498_v22  ;;  %v717_v22 = vrot.slane %v3498_v18, 1 }
  0x28   : > { %v3617_v47 = vsel %vm3489_vm2, %v302_v34, 0  ;;  %v389_v51 = vor.u32 %v387_v31, %v386_v39  ;;  %v272_v39 = vpack.c.bf16 %v244_v30, %v243_v25 }
  0x29   : > { %2796 = vmatpush3.bf16.msra.mxu0 %v3341_v41  ;;  %3316 = vmatpush3.bf16.msra.mxu1 %v3341_v41  ;;  %v265_v41 = vld [vmem:[%s3478_s14 + $0xe0] sm:$0xff]  ;;  %v508_v50 = vshll.u32 %v3617_v47, 16 }
  0x2a   : > { %2893 = vmatprep.subr.bf16.mxu1 %v3342_v46  ;;  %3005 = vmatprep.subr.bf16.mxu0 %v3343_v48  ;;  %v305_v46 = vor.u32 %v303_v27, %v302_v34  ;;  %v271_v48 = vpack.c.bf16 %v242_v40, %v241_v35  ;;  %v283_v53 = vpack.c.bf16 %v266_v43, %v265_v41  ;;  %v3645_v0 = vsel %vm3489_vm2, 0, %v389_v51  ;;  %v3355_v27 = vld [vmem:[%s4629_s3 + $0x98] sm:$0xff]   ;;  %v3357_v40 = vld [vmem:[%s4629_s3 + $0x90] sm:$0xff]   ;;  %v3367_v51 = vld [vmem:[%s4629_s3 + $0x120] sm:$0xff]  }
  0x2b   : > { %v510_v63 = vrot.slane %v508_v50, 1  ;;  %v645_v4 = vshrl.u32 %v3645_v0, 16  ;;  %v647_v5 = vshll.u32 %v3645_v0, 16  ;;  %v317_v50 = vshll.u32 %v272_v39, 16 }
  0x2c   : > { %1409 = vmatmul.mubr.bf16.vlgmr.msra.gmra.mxu0 %v3498_v18  ;;  %1505 = vmatmul.mubr.bf16.vlgmr.msra.gmra.mxu1 %v3534_v42  ;;  %v3632_v54 = vsel %vm3489_vm2, 0, %v305_v46  ;;  %v307_v57 = vshrl.u32 %v271_v48, 16  ;;  %v310_v58 = vshll.u32 %v271_v48, 16  ;;  %v391_v9 = vshrl.u32 %v283_v53, 16  ;;  %v3366_v46 = vld [vmem:[%s4629_s3 + $0x160] sm:$0xff]  }
  0x2d   : > { %3006 = vmatpush3.bf16.msra.mxu0 %v3345_v56  ;;  %2894 = vmatpush3.bf16.msra.mxu1 %v3344_v55  ;;  %v652_v55 = vshll.u32 %v3627_v52, 16  ;;  %v3354_v56 = vld [vmem:[%s4629_s3 + $0xd8] sm:$0xff]   ;;  %v501_v60 = vshrl.u32 %v3632_v54, 16  ;;  %v394_v10 = vshll.u32 %v283_v53, 16  ;;  %v649_v13 = vrot.slane %v647_v5, 1 }
  0x2e   : > { %3007 = vmatprep.subr.bf16.mxu0 %v3351_v62  ;;  %2895 = vmatprep.subr.bf16.mxu1 %v3346_v59  ;;  %v3359_v59 = vld [vmem:[%s4629_s3 + $0x168] sm:$0xff]   ;;  %v503_v62 = vshll.u32 %v3632_v54, 16  ;;  %v309_v7 = vrot.slane %v307_v57, 7  ;;  %v393_v21 = vrot.slane %v391_v9, 7 }
  0x2f   : > { %1416 = vmatprep.mubr.bf16.mxu0 %v3603_v38  ;;  %1512 = vmatprep.mubr.bf16.mxu1 %v3610_v44  ;;  %v654_v6 = vrot.slane %v652_v55, 1  ;;  %v650_v23 = vor.u32 %v649_v13, %v645_v4  ;;  %v3358_v57 = vld [vmem:[%s4629_s3 + $0xc8] sm:$0xff]   ;;  %v3368_v13 = vld [vmem:[%s4629_s3 + $0x158] sm:$0xff]  }
  0x30   : > { %v312_v14 = vor.u32 %v310_v58, %v309_v7  ;;  %v396_v34 = vor.u32 %v394_v10, %v393_v21  ;;  %v3681_v35 = vsel %vm3489_vm2, %v393_v21, 0  ;;  %v245_v58 = vld [vmem:[%s3478_s14 + $0x40] sm:$0xff]  ;;  %v721_v10 = vrot.slane %v3555_v61, 1 }
  0x31   : > { %3008 = vmatpush3.bf16.msra.mxu0 %v3353_v17  ;;  %2896 = vmatpush3.bf16.msra.mxu1 %v3347_v8  ;;  %v505_v8 = vrot.slane %v503_v62, 1  ;;  %v3674_v31 = vsel %vm475_vm3, %v650_v23, %v654_v6  ;;  %v247_v6 = vld [vmem:[%s3478_s14 + $0x50] sm:$0xff]  ;;  %v3370_v23 = vld [vmem:[%s4629_s3 + $0x118] sm:$0xff]   ;;  %v3378_v61 = vld [vmem:[%s4629_s3 + $0x1e0] sm:$0xff]  }
  0x32   : > { %2897 = vmatprep.subr.bf16.mxu1 %v3348_v16  ;;  %3009 = vmatprep.subr.bf16.mxu0 %v3359_v59  ;;  %v3654_v16 = vsel %vm3489_vm2, %v309_v7, 0  ;;  %v3660_v24 = vsel %vm3489_vm2, 0, %v312_v14  ;;  %v3695_v48 = vsel %vm3489_vm2, 0, %v396_v34  ;;  %v248_v7 = vld [vmem:[%s3478_s14 + $0x58] sm:$0xff] }
  0x33   : > { %v506_v17 = vor.u32 %v505_v8, %v501_v60  ;;  %v520_v20 = vshll.u32 %v3654_v16, 16  ;;  %v513_v28 = vshrl.u32 %v3660_v24, 16  ;;  %v657_v55 = vshrl.u32 %v3695_v48, 16  ;;  %v246_v60 = vld [vmem:[%s3478_s14 + $0x48] sm:$0xff] }
  0x34   : > { %1417 = vmatmul.mubr.bf16.gmra.mxu0 %v3570_v3  ;;  %1513 = vmatmul.mubr.bf16.gmra.mxu1 %v3585_v11  ;;  %v273_v5 = vpack.c.bf16 %v246_v60, %v245_v58  ;;  %v720_v60 = vrot.slane %v3570_v3, 1 }
  0x35   : > { %2898 = vmatpush3.bf16.msra.mxu1 %v3349_v29  ;;  %3010 = vmatpush3.bf16.msra.mxu0 %v3361_v12  ;;  %v3664_v26 = vsel %vm475_vm3, %v506_v17, %v510_v63  ;;  %v515_v29 = vshll.u32 %v3660_v24, 16  ;;  %v522_v43 = vrot.slane %v520_v20, 1  ;;  %v274_v12 = vpack.c.bf16 %v248_v7, %v247_v6  ;;  %v3360_v17 = vld [vmem:[%s4629_s3 + $0x88] sm:$0xff]  }
  0x36   : > { %2899 = vmatprep.subr.bf16.mxu1 %v3350_v45  ;;  %1424 = vmatprep.mubr.bf16.mxu0 %v3664_v26  ;;  %v664_v45 = vshll.u32 %v3681_v35, 16  ;;  %v321_v21 = vshrl.u32 %v273_v5, 16 }
  0x37   : > { %1520 = vmatprep.mubr.bf16.mxu1 %v3674_v31  ;;  %v517_v41 = vrot.slane %v515_v29, 1  ;;  %3011 = vmatprep.subr.bf16.mxu0 %v3366_v46  ;;  %v331_v29 = vshll.u32 %v274_v12, 16 }
  0x38   : > { %v666_v4 = vrot.slane %v664_v45, 1 }
  0x39   : > { %2900 = vmatpush3.bf16.msra.mxu1 %v3352_v49  ;;  %v314_v49 = vshrl.u32 %v272_v39, 16  ;;  %v518_v53 = vor.u32 %v517_v41, %v513_v28  ;;  %3012 = vmatpush3.bf16.msra.mxu0 %v3367_v51  ;;  %v328_v28 = vshrl.u32 %v274_v12, 16  ;;  %v3363_v41 = vld [vmem:[%s4629_s3 + $0x80] sm:$0xff]   ;;  %v250_v51 = vld [vmem:[%s3478_s14 + $0x68] sm:$0xff]  ;;  %v252_v12 = vld [vmem:[%s3478_s14 + $0x78] sm:$0xff] }
  0x3a   : > { %2901 = vmatprep.subr.bf16.mxu1 %v3354_v56  ;;  %v659_v56 = vshll.u32 %v3695_v48, 16  ;;  %3013 = vmatprep.subr.bf16.mxu0 %v3368_v13 }
  0x3b   : > { %v316_v59 = vrot.slane %v314_v49, 7  ;;  %v3708_v62 = vsel %vm475_vm3, %v518_v53, %v522_v43  ;;  %v323_v43 = vrot.slane %v321_v21, 7  ;;  %v330_v45 = vrot.slane %v328_v28, 7  ;;  %v3365_v21 = vld [vmem:[%s4629_s3 + $0x1b8] sm:$0xff]  }
  0x3c   : > { %1425 = vmatmul.mubr.bf16.gmra.mxu0 %v3632_v54  ;;  %1521 = vmatmul.mubr.bf16.gmra.mxu1 %v3645_v0  ;;  %v661_v63 = vrot.slane %v659_v56, 1 }
  0x3d   : > { %2902 = vmatpush3.bf16.msra.mxu1 %v3355_v27  ;;  %1432 = vmatprep.mubr.bf16.mxu0 %v3708_v62  ;;  %v319_v8 = vor.u32 %v317_v50, %v316_v59  ;;  %v3715_v9 = vsel %vm3489_vm2, %v316_v59, 0  ;;  %v324_v27 = vshll.u32 %v273_v5, 16  ;;  %v3364_v50 = vld [vmem:[%s4629_s3 + $0x1f8] sm:$0xff]   ;;  %v333_v56 = vor.u32 %v331_v29, %v330_v45  ;;  %v3373_v5 = vld [vmem:[%s4629_s3 + $0x110] sm:$0xff]  }
  0x3e   : > { %2903 = vmatprep.subr.bf16.mxu1 %v3356_v32  ;;  %v662_v14 = vor.u32 %v661_v63, %v657_v55  ;;  %v532_v20 = vshll.u32 %v3715_v9, 16  ;;  %v3362_v32 = vld [vmem:[%s4629_s3 + $0xc0] sm:$0xff]   ;;  %3014 = vmatpush3.bf16.msra.mxu0 %v3370_v23  ;;  %v3754_v55 = vsel %vm3489_vm2, %v323_v43, 0 }
  0x3f   : > { %v3730_v25 = vsel %vm3489_vm2, 0, %v319_v8  ;;  %v326_v53 = vor.u32 %v324_v27, %v323_v43  ;;  %v544_v59 = vshll.u32 %v3754_v55, 16  ;;  %v3774_v7 = vsel %vm3489_vm2, 0, %v333_v56  ;;  %v251_v8 = vld [vmem:[%s3478_s14 + $0x70] sm:$0xff] }
  0x40   : > { %v3733_v30 = vsel %vm475_vm3, %v662_v14, %v666_v4  ;;  %v525_v34 = vshrl.u32 %v3730_v25, 16  ;;  %v527_v39 = vshll.u32 %v3730_v25, 16  ;;  %v534_v49 = vrot.slane %v532_v20, 1  ;;  %v3372_v4 = vld [vmem:[%s4629_s3 + $0x150] sm:$0xff]  }
  0x41   : > { %2904 = vmatpush3.bf16.msra.mxu1 %v3357_v40  ;;  %v249_v40 = vld [vmem:[%s3478_s14 + $0x60] sm:$0xff]  ;;  %1528 = vmatprep.mubr.bf16.mxu1 %v3733_v30  ;;  %v3770_v6 = vsel %vm3489_vm2, 0, %v326_v53  ;;  %v3790_v20 = vsel %vm716_vm4, %v717_v22, %v718_v37  ;;  %v549_v23 = vshrl.u32 %v3774_v7, 16  ;;  %v551_v27 = vshll.u32 %v3774_v7, 16  ;;  %v3369_v37 = vld [vmem:[%s4629_s3 + $0x1f0] sm:$0xff]  }
  0x42   : > { %2905 = vmatprep.subr.bf16.mxu1 %v3358_v57  ;;  %v529_v46 = vrot.slane %v527_v39, 1  ;;  %v3758_v57 = vsel %vm3489_vm2, %v330_v45, 0  ;;  %v275_v63 = vpack.c.bf16 %v250_v51, %v249_v40  ;;  %v537_v13 = vshrl.u32 %v3770_v6, 16  ;;  %3015 = vmatprep.subr.bf16.mxu0 %v3372_v4  ;;  %v3371_v39 = vld [vmem:[%s4629_s3 + $0x1b0] sm:$0xff]   ;;  %v3374_v4 = vld [vmem:[%s4629_s3 + $0x1e8] sm:$0xff]  }
  0x43   : > { %v539_v14 = vshll.u32 %v3770_v6, 16  ;;  %v546_v29 = vrot.slane %v544_v59, 1  ;;  %3016 = vmatpush3.bf16.msra.mxu0 %v3373_v5 }
  0x44   : > { %1433 = vmatmul.mubr.bf16.gmra.mxu0 %v3660_v24  ;;  %1529 = vmatmul.mubr.bf16.gmra.mxu1 %v3695_v48  ;;  %v530_v58 = vor.u32 %v529_v46, %v525_v34  ;;  %v335_v28 = vshrl.u32 %v275_v63, 16  ;;  %v338_v22 = vshll.u32 %v275_v63, 16  ;;  %v553_v34 = vrot.slane %v551_v27, 1 }
  0x45   : > { %2906 = vmatpush3.bf16.msra.mxu1 %v3360_v17  ;;  %1569 = vmatprep.mubr.bf16.mxu1 %v3570_v3  ;;  %v556_v17 = vshll.u32 %v3758_v57, 16  ;;  %v541_v19 = vrot.slane %v539_v14, 1  ;;  %v255_v14 = vld [vmem:[%s3478_s14 + $0x90] sm:$0xff] }
  0x46   : > { %2907 = vmatprep.subr.bf16.mxu1 %v3362_v32  ;;  %v3779_v3 = vsel %vm475_vm3, %v530_v58, %v534_v49  ;;  %v276_v32 = vpack.c.bf16 %v252_v12, %v251_v8  ;;  %v337_v40 = vrot.slane %v335_v28, 7  ;;  %v554_v51 = vor.u32 %v553_v34, %v549_v23  ;;  %v3376_v58 = vld [vmem:[%s4629_s3 + $0x148] sm:$0xff]  }
  0x47   : > { %1440 = vmatprep.mubr.bf16.mxu0 %v3779_v3  ;;  %v542_v43 = vor.u32 %v541_v19, %v537_v13  ;;  %v558_v45 = vrot.slane %v556_v17, 1  ;;  %v3377_v8 = vld [vmem:[%s4629_s3 + $0x108] sm:$0xff]   ;;  %3017 = vmatprep.subr.bf16.mxu0 %v3376_v58  ;;  %v256_v17 = vld [vmem:[%s3478_s14 + $0x98] sm:$0xff]  ;;  %v3840_v19 = vsel %vm716_vm4, %v720_v60, %v721_v10  ;;  %v3380_v10 = vld [vmem:[%s4629_s3 + $0x140] sm:$0xff]   ;;  %v723_v60 = vrot.slane %v3632_v54, 1 }
  0x48   : > { %v342_v46 = vshrl.u32 %v276_v32, 16  ;;  %v345_v49 = vshll.u32 %v276_v32, 16  ;;  %v340_v53 = vor.u32 %v338_v22, %v337_v40  ;;  %v3810_v56 = vsel %vm3489_vm2, %v337_v40, 0  ;;  %3018 = vmatpush3.bf16.msra.mxu0 %v3377_v8  ;;  %v257_v58 = vld [vmem:[%s3478_s14 + $0xa0] sm:$0xff] }
  0x49   : > { %2908 = vmatpush3.bf16.msra.mxu1 %v3363_v41  ;;  %v253_v41 = vld [vmem:[%s3478_s14 + $0x80] sm:$0xff]  ;;  %v3816_v59 = vsel %vm475_vm3, %v542_v43, %v546_v29  ;;  %v568_v13 = vshll.u32 %v3810_v56, 16  ;;  %v3375_v29 = vld [vmem:[%s4629_s3 + $0x1a8] sm:$0xff]   ;;  %v278_v40 = vpack.c.bf16 %v256_v17, %v255_v14  ;;  %3019 = vmatprep.subr.bf16.mxu0 %v3380_v10 }
  0x4a   : > { %3117 = vmatprep.subr.bf16.mxu1 %v3364_v50  ;;  %v254_v50 = vld [vmem:[%s3478_s14 + $0x88] sm:$0xff]  ;;  %v344_v63 = vrot.slane %v342_v46, 7  ;;  %v3827_v12 = vsel %vm3489_vm2, 0, %v340_v53  ;;  %v3379_v53 = vld [vmem:[%s4629_s3 + $0x1a0] sm:$0xff]  }
  0x4b   : > { %v277_v5 = vpack.c.bf16 %v254_v50, %v253_v41  ;;  %v561_v23 = vshrl.u32 %v3827_v12, 16  ;;  %v563_v27 = vshll.u32 %v3827_v12, 16  ;;  %v3381_v50 = vld [vmem:[%s4629_s3 + $0x100] sm:$0xff]  }
  0x4c   : > { %1441 = vmatmul.mubr.bf16.gmra.mxu0 %v3730_v25  ;;  %1570 = vmatmul.mubr.bf16.vlgmr.msra.gmra.mxu1 %v3790_v20  ;;  %v347_v28 = vor.u32 %v345_v49, %v344_v63  ;;  %v3862_v46 = vsel %vm3489_vm2, %v344_v63, 0  ;;  %v258_v63 = vld [vmem:[%s3478_s14 + $0xa8] sm:$0xff] }
  0x4d   : > { %3118 = vmatpush3.bf16.msra.mxu1 %v3365_v21  ;;  %1577 = vmatprep.mubr.bf16.mxu1 %v3632_v54  ;;  %v3833_v21 = vsel %vm475_vm3, %v554_v51, %v558_v45  ;;  %v352_v22 = vshll.u32 %v277_v5, 16  ;;  %v565_v32 = vrot.slane %v563_v27, 1  ;;  %v570_v45 = vrot.slane %v568_v13, 1 }
  0x4e   : > { %3119 = vmatprep.subr.bf16.mxu1 %v3369_v37  ;;  %1448 = vmatprep.mubr.bf16.mxu0 %v3816_v59  ;;  %v349_v37 = vshrl.u32 %v277_v5, 16  ;;  %v3848_v34 = vsel %vm3489_vm2, 0, %v347_v28  ;;  %v356_v51 = vshrl.u32 %v278_v40, 16  ;;  %v580_v17 = vshll.u32 %v3862_v46, 16 }
  0x4f   : > { %v566_v43 = vor.u32 %v565_v32, %v561_v23  ;;  %v575_v49 = vshll.u32 %v3848_v34, 16  ;;  %3020 = vmatpush3.bf16.msra.mxu0 %v3381_v50  ;;  %v573_v13 = vshrl.u32 %v3848_v34, 16  ;;  %v3888_v23 = vld [vmem:[%s4629_s3 + $0x238] sm:$0xff]   ;;  %v3385_v32 = vld [vmem:[%s4629_s3 + $0x1d0] sm:$0xff]  }
  0x50   : > { %v351_v41 = vrot.slane %v349_v37, 7  ;;  %v358_v28 = vrot.slane %v356_v51, 7  ;;  %v279_v37 = vpack.c.bf16 %v258_v63, %v257_v58  ;;  %3253 = vmatprep.subr.bf16.mxu0 %v3888_v23  ;;  %v3387_v50 = vld [vmem:[%s4629_s3 + $0x190] sm:$0xff]  }
  0x51   : > { %3120 = vmatpush3.bf16.msra.mxu1 %v3371_v39  ;;  %v724_v39 = vrot.slane %v3617_v47, 1  ;;  %v3881_v8 = vsel %vm475_vm3, %v566_v43, %v570_v45  ;;  %v577_v14 = vrot.slane %v575_v49, 1  ;;  %v727_v43 = vrot.slane %v3654_v16, 1 }
  0x52   : > { %3121 = vmatprep.subr.bf16.mxu1 %v3374_v4  ;;  %v354_v47 = vor.u32 %v352_v22, %v351_v41  ;;  %v3382_v4 = vld [vmem:[%s4629_s3 + $0x1d8] sm:$0xff]   ;;  %v3906_v10 = vsel %vm3489_vm2, %v351_v41, 0  ;;  %v363_v49 = vshrl.u32 %v279_v37, 16 }
  0x53   : > { %v3878_v5 = vsel %vm716_vm4, %v723_v60, %v724_v39  ;;  %v3384_v22 = vld [vmem:[%s4629_s3 + $0x198] sm:$0xff]   ;;  %v726_v39 = vrot.slane %v3660_v24, 1 }
  0x54   : > { %1449 = vmatmul.mubr.bf16.gmra.mxu0 %v3770_v6  ;;  %1578 = vmatmul.mubr.bf16.gmra.mxu1 %v3840_v19  ;;  %v3892_v27 = vsel %vm3489_vm2, 0, %v354_v47  ;;  %v592_v47 = vshll.u32 %v3906_v10, 16  ;;  %v365_v63 = vrot.slane %v363_v49, 7 }
  0x55   : > { %1456 = vmatprep.mubr.bf16.mxu0 %v3833_v21  ;;  %1585 = vmatprep.mubr.bf16.mxu1 %v3660_v24  ;;  %v587_v60 = vshll.u32 %v3892_v27, 16  ;;  %v585_v51 = vshrl.u32 %v3892_v27, 16  ;;  %v3921_v58 = vsel %vm716_vm4, %v726_v39, %v727_v43 }
  0x56   : > { %3122 = vmatpush3.bf16.msra.mxu1 %v3375_v29  ;;  %v359_v29 = vshll.u32 %v278_v40, 16  ;;  %v578_v40 = vor.u32 %v577_v14, %v573_v13  ;;  %v3388_v13 = vld [vmem:[%s4629_s3 + $0x1c8] sm:$0xff]  }
  0x57   : > { %3123 = vmatprep.subr.bf16.mxu1 %v3378_v61  ;;  %v582_v61 = vrot.slane %v580_v17, 1  ;;  %v3390_v14 = vld [vmem:[%s4629_s3 + $0x188] sm:$0xff]   ;;  %v729_v17 = vrot.slane %v3730_v25, 1 }
  0x58   : > { %v361_v45 = vor.u32 %v359_v29, %v358_v28  ;;  %v594_v29 = vrot.slane %v592_v47, 1 }
  0x59   : > { %v3917_v41 = vsel %vm475_vm3, %v578_v40, %v582_v61  ;;  %v730_v40 = vrot.slane %v3715_v9, 1 }
  0x5a   : > { %3124 = vmatpush3.bf16.msra.mxu1 %v3379_v53  ;;  %v589_v53 = vrot.slane %v587_v60, 1  ;;  %v3925_v16 = vsel %vm3489_vm2, 0, %v361_v45  ;;  %v3391_v60 = vld [vmem:[%s4629_s3 + $0x1c0] sm:$0xff]  }
  0x5b   : > { %3125 = vmatprep.subr.bf16.mxu1 %v3382_v4  ;;  %v366_v4 = vshll.u32 %v279_v37, 16  ;;  %v597_v45 = vshrl.u32 %v3925_v16, 16  ;;  %v3956_v9 = vsel %vm716_vm4, %v729_v17, %v730_v40 }
  0x5c   : > { %1457 = vmatmul.mubr.bf16.gmra.mxu0 %v3774_v7  ;;  %1586 = vmatmul.mubr.bf16.gmra.mxu1 %v3878_v5  ;;  %v590_v37 = vor.u32 %v589_v53, %v585_v51 }
  0x5d   : > { %1464 = vmatprep.mubr.bf16.mxu0 %v3881_v8  ;;  %1593 = vmatprep.mubr.bf16.mxu1 %v3730_v25  ;;  %v368_v61 = vor.u32 %v366_v4, %v365_v63  ;;  %v732_v4 = vrot.slane %v3770_v6, 1 }
  0x5e   : > { %3126 = vmatpush3.bf16.msra.mxu1 %v3384_v22  ;;  %v3939_v22 = vsel %vm3489_vm2, %v358_v28, 0  ;;  %v3393_v28 = vld [vmem:[%s4629_s3 + $0x180] sm:$0xff]   ;;  %v3952_v43 = vsel %vm475_vm3, %v590_v37, %v594_v29 }
  0x5f   : > { %3127 = vmatprep.subr.bf16.mxu1 %v3385_v32  ;;  %v599_v32 = vshll.u32 %v3925_v16, 16  ;;  %v604_v39 = vshll.u32 %v3939_v22, 16 }
  0x61   : > { %v601_v49 = vrot.slane %v599_v32, 1  ;;  %v606_v51 = vrot.slane %v604_v39, 1 }
  0x62   : > { %3128 = vmatpush3.bf16.msra.mxu1 %v3387_v50  ;;  %v3960_v50 = vsel %vm3489_vm2, 0, %v368_v61  ;;  %v735_v61 = vrot.slane %v3774_v7, 1 }
  0x63   : > { %3129 = vmatprep.subr.bf16.mxu1 %v3388_v13  ;;  %v602_v47 = vor.u32 %v601_v49, %v597_v45  ;;  %v611_v53 = vshll.u32 %v3960_v50, 16  ;;  %v733_v13 = vrot.slane %v3754_v55, 1  ;;  %v609_v29 = vshrl.u32 %v3960_v50, 16 }
  0x64   : > { %1465 = vmatmul.mubr.bf16.gmra.mxu0 %v3827_v12  ;;  %1594 = vmatmul.mubr.bf16.gmra.mxu1 %v3921_v58  ;;  %v738_v45 = vrot.slane %v3827_v12, 1  ;;  %v739_v49 = vrot.slane %v3810_v56, 1 }
  0x65   : > { %1472 = vmatprep.mubr.bf16.mxu0 %v3917_v41  ;;  %1601 = vmatprep.mubr.bf16.mxu1 %v3770_v6  ;;  %v3974_v17 = vsel %vm475_vm3, %v602_v47, %v606_v51  ;;  %v613_v37 = vrot.slane %v611_v53, 1  ;;  %v3979_v40 = vsel %vm716_vm4, %v732_v4, %v733_v13  ;;  %v741_v47 = vrot.slane %v3848_v34, 1  ;;  %v3386_v53 = vld [vmem:[%s4629_s3 + $0x230] sm:$0xff]  }
  0x66   : > { %3130 = vmatpush3.bf16.msra.mxu1 %v3390_v14  ;;  %v3971_v14 = vsel %vm3489_vm2, %v365_v63, 0  ;;  %v742_v51 = vrot.slane %v3862_v46, 1  ;;  %v744_v46 = vrot.slane %v3892_v27, 1  ;;  %v745_v4 = vrot.slane %v3906_v10, 1  ;;  %v3394_v10 = vld [vmem:[%s4629_s3 + $0x218] sm:$0xff]  }
  0x67   : > { %3131 = vmatprep.subr.bf16.mxu1 %v3391_v60  ;;  %v616_v32 = vshll.u32 %v3971_v14, 16  ;;  %v614_v55 = vor.u32 %v613_v37, %v609_v29  ;;  %v736_v60 = vrot.slane %v3758_v57, 1  ;;  %v4000_v57 = vsel %vm716_vm4, %v738_v45, %v739_v49  ;;  %v3395_v37 = vld [vmem:[%s4629_s3 + $0x210] sm:$0xff]  }
  0x68   : > { %v4012_v56 = vsel %vm716_vm4, %v741_v47, %v742_v51  ;;  %v747_v13 = vrot.slane %v3925_v16, 1  ;;  %v748_v29 = vrot.slane %v3939_v22, 1  ;;  %v3396_v22 = vld [vmem:[%s4629_s3 + $0x208] sm:$0xff]   ;;  %v754_v45 = vrot.slane %v3518_v33, 1  ;;  %v267_v49 = vld [vmem:[%s3478_s14 + $0xf0] sm:$0xff]  ;;  %v268_v47 = vld [vmem:[%s3478_s14 + $0xf8] sm:$0xff] }
  0x69   : > { %v618_v63 = vrot.slane %v616_v32, 1  ;;  %s2653_s14 = sshll.u32 %s4653_s1, 7 }
  0x6a   : > { %3132 = vmatpush3.bf16.msra.mxu1 %v3393_v28  ;;  %v3991_v28 = vsel %vm716_vm4, %v735_v61, %v736_v60  ;;  %v4043_v32 = vsel %vm716_vm4, %v747_v13, %v748_v29  ;;  %v3397_v61 = vld [vmem:[%s4629_s3 + $0x200] sm:$0xff]   ;;  %v759_v13 = vrot.slane %v3645_v0, 1  ;;  %v760_v29 = vrot.slane %v3627_v52, 1  ;;  %s4520_s23 = scalar_lea.vmem %s4630_s4, %s2653_s14 }
  0x6b   : > { %v3988_v39 = vsel %vm475_vm3, %v614_v55, %v618_v63  ;;  %v750_v55 = vrot.slane %v3960_v50, 1  ;;  %v751_v63 = vrot.slane %v3971_v14, 1  ;;  %v753_v14 = vrot.slane %v3534_v42, 1 }
  0x6c   : > { %1473 = vmatmul.mubr.bf16.gmra.mxu0 %v3848_v34  ;;  %1602 = vmatmul.mubr.bf16.gmra.mxu1 %v3956_v9  ;;  %v763_v52 = vrot.slane %v3681_v35, 1 }
  0x6d   : > { %1480 = vmatprep.mubr.bf16.mxu0 %v3952_v43  ;;  %1609 = vmatprep.mubr.bf16.mxu1 %v3774_v7  ;;  %v4058_v60 = vsel %vm716_vm4, %v750_v55, %v751_v63  ;;  %v4069_v51 = vsel %vm716_vm4, %v753_v14, %v754_v45  ;;  %v762_v55 = vrot.slane %v3695_v48, 1 }
  0x6f   : > { %v4100_v63 = vsel %vm716_vm4, %v762_v55, %v763_v52 }
  0x74   : > { %1481 = vmatmul.mubr.bf16.gmra.mxu0 %v3892_v27  ;;  %1610 = vmatmul.mubr.bf16.gmra.mxu1 %v3979_v40 }
  0x75   : > { %1488 = vmatprep.mubr.bf16.mxu0 %v3974_v17  ;;  %1617 = vmatprep.mubr.bf16.mxu1 %v3827_v12 }
  0x7c   : > { %1489 = vmatmul.mubr.bf16.gmra.mxu0 %v3925_v16  ;;  %1618 = vmatmul.mubr.bf16.gmra.mxu1 %v3991_v28 }
  0x7d   : > { %1496 = vmatprep.mubr.bf16.mxu0 %v3988_v39  ;;  %1625 = vmatprep.mubr.bf16.mxu1 %v3848_v34 }
  0x84   : > { %1497 = vmatmul.mubr.bf16.gmra.mxu0 %v3960_v50  ;;  %1626 = vmatmul.mubr.bf16.gmra.mxu1 %v4000_v57 }
  0x85   : > { %1730 = vmatprep.mubr.bf16.mxu0 %v3840_v19  ;;  %1633 = vmatprep.mubr.bf16.mxu1 %v3892_v27  ;;  %v3389_v19 = vld [vmem:[%s4629_s3 + $0x228] sm:$0xff]  }
  0x8c   : > { %1731 = vmatmul.mubr.bf16.vlgmr.msra.gmra.mxu0 %v3603_v38  ;;  %1634 = vmatmul.mubr.bf16.gmra.mxu1 %v4012_v56  ;;  %v3392_v38 = vld [vmem:[%s4629_s3 + $0x220] sm:$0xff]  }
  0x8d   : > { %3254 = vmatpush3.bf16.msra.mxu0 %v3888_v23  ;;  %1738 = vmatprep.mubr.bf16.mxu0 %v3878_v5  ;;  %v4028_v23 = vsel %vm716_vm4, %v744_v46, %v745_v4  ;;  %v757_v46 = vrot.slane %v3563_v1, 1  ;;  %v4087_v1 = vsel %vm716_vm4, %v759_v13, %v760_v29 }
  0x8e   : > { %3255 = vmatprep.subr.bf16.mxu0 %v3386_v53  ;;  %1641 = vmatprep.mubr.bf16.mxu1 %v3925_v16 }
  0x91   : > { %3256 = vmatpush3.bf16.msra.mxu0 %v3386_v53  ;;  %v284_v53 = vpack.c.bf16 %v268_v47, %v267_v49 }
  0x92   : > { %3257 = vmatprep.subr.bf16.mxu0 %v3389_v19 }
  0x93   : > { %v398_v33 = vshrl.u32 %v284_v53, 16 }
  0x94   : > { %1739 = vmatmul.mubr.bf16.gmra.mxu0 %v3664_v26  ;;  %1642 = vmatmul.mubr.bf16.gmra.mxu1 %v4028_v23 }
  0x95   : > { %1746 = vmatprep.mubr.bf16.mxu0 %v3921_v58  ;;  %3258 = vmatpush3.bf16.msra.mxu0 %v3389_v19  ;;  %v756_v19 = vrot.slane %v3585_v11, 1 }
  0x96   : > { %3259 = vmatprep.subr.bf16.mxu0 %v3392_v38  ;;  %1649 = vmatprep.mubr.bf16.mxu1 %v3960_v50 }
  0x97   : > { %v4078_v4 = vsel %vm716_vm4, %v756_v19, %v757_v46 }
  0x99   : > { %3260 = vmatpush3.bf16.msra.mxu0 %v3392_v38  ;;  %v400_v38 = vrot.slane %v398_v33, 7 }
  0x9a   : > { %3261 = vmatprep.subr.bf16.mxu0 %v3394_v10 }
  0x9b   : > { %v474_v47 = vsel %vm3489_vm2, %v400_v38, 0 }
  0x9c   : > { %1747 = vmatmul.mubr.bf16.gmra.mxu0 %v3708_v62  ;;  %1650 = vmatmul.mubr.bf16.gmra.mxu1 %v4043_v32  ;;  %v797_v13 = vrot.slane %v474_v47, 1 }
  0x9d   : > { %1754 = vmatprep.mubr.bf16.mxu0 %v3956_v9  ;;  %3262 = vmatpush3.bf16.msra.mxu0 %v3394_v10  ;;  %v401_v10 = vshll.u32 %v284_v53, 16 }
  0x9e   : > { %3263 = vmatprep.subr.bf16.mxu0 %v3395_v37  ;;  %1657 = vmatprep.mubr.bf16.mxu1 %v3534_v42 }
  0xa1   : > { %3264 = vmatpush3.bf16.msra.mxu0 %v3395_v37  ;;  %v403_v37 = vor.u32 %v401_v10, %v400_v38 }
  0xa2   : > { %3265 = vmatprep.subr.bf16.mxu0 %v3396_v22 }
  0xa4   : > { %1755 = vmatmul.mubr.bf16.gmra.mxu0 %v3779_v3  ;;  %1658 = vmatmul.mubr.bf16.gmra.mxu1 %v4058_v60 }
  0xa5   : > { %1762 = vmatprep.mubr.bf16.mxu0 %v3979_v40  ;;  %3266 = vmatpush3.bf16.msra.mxu0 %v3396_v22  ;;  %v4092_v22 = vsel %vm3489_vm2, 0, %v403_v37 }
  0xa6   : > { %3267 = vmatprep.subr.bf16.mxu0 %v3397_v61  ;;  %1665 = vmatprep.mubr.bf16.mxu1 %v3585_v11  ;;  %v796_v10 = vrot.slane %v4092_v22, 1  ;;  %v782_v55 = vshrl.u32 %v4092_v22, 16 }
  0xa9   : > { %3268 = vmatpush3.bf16.msra.mxu0 %v3397_v61 }
  0xac   : > { %1763 = vmatmul.mubr.bf16.gmra.mxu0 %v3816_v59  ;;  %1666 = vmatmul.mubr.bf16.gmra.mxu1 %v4069_v51 }
  0xad   : > { %1770 = vmatprep.mubr.bf16.mxu0 %v3991_v28  ;;  %1673 = vmatprep.mubr.bf16.mxu1 %v3645_v0 }
  0xb4   : > { %1771 = vmatmul.mubr.bf16.gmra.mxu0 %v3833_v21  ;;  %1674 = vmatmul.mubr.bf16.gmra.mxu1 %v4078_v4 }
  0xb5   : > { %1778 = vmatprep.mubr.bf16.mxu0 %v4000_v57  ;;  %1681 = vmatprep.mubr.bf16.mxu1 %v3695_v48 }
  0xbc   : > { %1779 = vmatmul.mubr.bf16.gmra.mxu0 %v3881_v8  ;;  %1682 = vmatmul.mubr.bf16.gmra.mxu1 %v4087_v1 }
  0xbd   : > { %1786 = vmatprep.mubr.bf16.mxu0 %v4012_v56  ;;  %1689 = vmatprep.mubr.bf16.mxu1 %v4092_v22 }
  0xc4   : > { %1787 = vmatmul.mubr.bf16.gmra.mxu0 %v3917_v41  ;;  %1690 = vmatmul.mubr.bf16.gmra.mxu1 %v4100_v63 }
  0xc5   : > { %1794 = vmatprep.mubr.bf16.mxu0 %v4028_v23  ;;  %1891 = vmatprep.mubr.bf16.mxu1 %v3664_v26 }
  0xcc   : > { %1795 = vmatmul.mubr.bf16.gmra.mxu0 %v3952_v43  ;;  %1892 = vmatmul.mubr.bf16.vlgmr.msra.gmra.mxu1 %v3632_v54 }
  0xcd   : > { %1802 = vmatprep.mubr.bf16.mxu0 %v4043_v32  ;;  %1899 = vmatprep.mubr.bf16.mxu1 %v3708_v62 }
  0xd4   : > { %1803 = vmatmul.mubr.bf16.gmra.mxu0 %v3974_v17  ;;  %1900 = vmatmul.mubr.bf16.gmra.mxu1 %v3660_v24 }
  0xd5   : > { %1810 = vmatprep.mubr.bf16.mxu0 %v4058_v60  ;;  %1907 = vmatprep.mubr.bf16.mxu1 %v3779_v3 }
  0xdc   : > { %1811 = vmatmul.mubr.bf16.gmra.mxu0 %v3988_v39  ;;  %1908 = vmatmul.mubr.bf16.gmra.mxu1 %v3730_v25 }
  0xdd   : > { %1818 = vmatprep.mubr.bf16.mxu0 %v4069_v51  ;;  %1915 = vmatprep.mubr.bf16.mxu1 %v3816_v59 }
  0xe4   : > { %1819 = vmatmul.mubr.bf16.gmra.mxu0 %v3566_v2  ;;  %1916 = vmatmul.mubr.bf16.gmra.mxu1 %v3770_v6 }
  0xe5   : > { %1826 = vmatprep.mubr.bf16.mxu0 %v4078_v4  ;;  %1923 = vmatprep.mubr.bf16.mxu1 %v3833_v21 }
  0xec   : > { %v2797_v54 = vpop.f32.mrf.mxu0  ;;  %v2869_v24 = vpop.f32.mrf.mxu1  ;;  %1827 = vmatmul.mubr.bf16.gmra.mxu0 %v3610_v44  ;;  %1924 = vmatmul.mubr.bf16.gmra.mxu1 %v3774_v7 }
  0xed   : > { %1834 = vmatprep.mubr.bf16.mxu0 %v4087_v1  ;;  %1931 = vmatprep.mubr.bf16.mxu1 %v3881_v8  ;;  %v784_v8 = vshll.u32 %v4092_v22, 16 }
  0xee   : > { %v2798_v26 = vpop.f32.mrf.mxu0  ;;  %v2870_v62 = vpop.f32.mrf.mxu1 }
  0xef   : > { %v4123_v35 = vadd.f32 %v2798_v26, %v2797_v54  ;;  %v4127_v25 = vadd.f32 %v2870_v62, %v2869_v24  ;;  %v786_v52 = vrot.slane %v784_v8, 1  ;;  %v789_v54 = vshll.u32 %v474_v47, 16 }
  0xf0   : > { %v2800_v3 = vpop.f32.mrf.mxu0  ;;  %v2872_v59 = vpop.f32.mrf.mxu1 }
  0xf2   : > { %v2801_v6 = vpop.f32.mrf.mxu0  ;;  %v2873_v61 = vpop.f32.mrf.mxu1 }
  0xf3   : > { %v4130_v21 = vadd.f32 %v2801_v6, %v2800_v3  ;;  %v4132_v14 = vadd.f32 %v2873_v61, %v2872_v59  ;;  %v791_v3 = vrot.slane %v789_v54, 1 }
  0xf4   : > { %v2803_v45 = vpop.f32.mrf.mxu0  ;;  %v2875_v49 = vpop.f32.mrf.mxu1  ;;  %1835 = vmatmul.mubr.bf16.gmra.mxu0 %v3674_v31  ;;  %1932 = vmatmul.mubr.bf16.gmra.mxu1 %v3827_v12  ;;  %v4152_v12 = vsel %vm716_vm4, %v796_v10, %v797_v13 }
  0xf5   : > { %1842 = vmatprep.mubr.bf16.mxu0 %v4100_v63  ;;  %1939 = vmatprep.mubr.bf16.mxu1 %v3917_v41  ;;  %v787_v41 = vor.u32 %v786_v52, %v782_v55 }
  0xf6   : > { %v2804_v7 = vpop.f32.mrf.mxu0  ;;  %v2876_v19 = vpop.f32.mrf.mxu1 }
  0xf7   : > { %v4137_v53 = vadd.f32 %v2804_v7, %v2803_v45  ;;  %v4142_v46 = vadd.f32 %v2876_v19, %v2875_v49  ;;  %v4163_v7 = vsel %vm475_vm3, %v787_v41, %v791_v3 }
  0xf8   : > { %v2806_v33 = vpop.f32.mrf.mxu0  ;;  %v2878_v15 = vpop.f32.mrf.mxu1 }
  0xfa   : > { %v2807_v38 = vpop.f32.mrf.mxu0  ;;  %v2879_v37 = vpop.f32.mrf.mxu1 }
  0xfb   : > { %v4146_v29 = vadd.f32 %v2807_v38, %v2806_v33  ;;  %v4149_v24 = vadd.f32 %v2879_v37, %v2878_v15 }
  0xfc   : > { %v2809_v26 = vpop.f32.mrf.mxu0  ;;  %1843 = vmatmul.mubr.bf16.gmra.mxu0 %v3733_v30  ;;  %v2881_v62 = vpop.f32.mrf.mxu1  ;;  %1940 = vmatmul.mubr.bf16.gmra.mxu1 %v3848_v34 }
  0xfd   : > { %1850 = vmatprep.mubr.bf16.mxu0 %v4152_v12  ;;  %1947 = vmatprep.mubr.bf16.mxu1 %v3952_v43 }
  0xfe   : > { %v2810_v59 = vpop.f32.mrf.mxu0  ;;  %v2882_v61 = vpop.f32.mrf.mxu1 }
  0xff   : > { %v4157_v6 = vadd.f32 %v2810_v59, %v2809_v26  ;;  %v4160_v45 = vadd.f32 %v2882_v61, %v2881_v62 }
 0x100   : > { %v2812_v49 = vpop.f32.mrf.mxu0  ;;  %v2884_v47 = vpop.f32.mrf.mxu1 }
 0x102   : > { %v2813_v19 = vpop.f32.mrf.mxu0  ;;  %v2885_v33 = vpop.f32.mrf.mxu1 }
 0x103   : > { %v4165_v8 = vadd.f32 %v2813_v19, %v2812_v49  ;;  %v4167_v10 = vadd.f32 %v2885_v33, %v2884_v47 }
 0x104   : > { %v2815_v34 = vpop.f32.mrf.mxu0  ;;  %1851 = vmatmul.mubr.bf16.gmra.mxu0 %v4163_v7  ;;  %v2887_v13 = vpop.f32.mrf.mxu1  ;;  %1948 = vmatmul.mubr.bf16.gmra.mxu1 %v3892_v27 }
 0x105   : > { %3269 = vmatprep.mubr.bf16.mxu0 %v3878_v5  ;;  %1955 = vmatprep.mubr.bf16.mxu1 %v3974_v17 }
 0x106   : > { %v2816_v43 = vpop.f32.mrf.mxu0  ;;  %v2888_v38 = vpop.f32.mrf.mxu1 }
 0x107   : > { %v4172_v15 = vadd.f32 %v2816_v43, %v2815_v34  ;;  %v4175_v55 = vadd.f32 %v2888_v38, %v2887_v13 }
 0x108   : > { %v2818_v37 = vpop.f32.mrf.mxu0  ;;  %v2890_v52 = vpop.f32.mrf.mxu1 }
 0x10a   : > { %v2819_v54 = vpop.f32.mrf.mxu0  ;;  %v2891_v62 = vpop.f32.mrf.mxu1 }
 0x10b   : > { %v4177_v26 = vadd.f32 %v2819_v54, %v2818_v37  ;;  %v4180_v5 = vadd.f32 %v2891_v62, %v2890_v52 }
 0x10c   : > { %v2821_v41 = vpop.f32.mrf.mxu0  ;;  %3270 = vmatmul.mubr.bf16.vlgmr.msra.gmra.mxu0 %v3921_v58  ;;  %v2909_v27 = vpop.f32.mrf.mxu1  ;;  %1956 = vmatmul.mubr.bf16.gmra.mxu1 %v3925_v16 }
 0x10d   : > { %3273 = vmatprep.mubr.bf16.mxu0 %v3956_v9  ;;  %1963 = vmatprep.mubr.bf16.mxu1 %v3988_v39 }
 0x10e   : > { %v2822_v17 = vpop.f32.mrf.mxu0  ;;  %v2910_v59 = vpop.f32.mrf.mxu1 }
 0x10f   : > { %v4184_v3 = vadd.f32 %v2822_v17, %v2821_v41  ;;  %v2911_v49 = vadd.f32 %v2910_v59, %v2909_v27 }
 0x110   : > { %v2824_v61 = vpop.f32.mrf.mxu0  ;;  %v2912_v47 = vpop.f32.mrf.mxu1 }
 0x111   : > { %v4188_v33 = vadd.f32 %v2911_v49, %v4123_v35 }
 0x112   : > { %v2825_v19 = vpop.f32.mrf.mxu0  ;;  %v2913_v34 = vpop.f32.mrf.mxu1 }
 0x113   : > { %v4190_v58 = vadd.f32 %v2825_v19, %v2824_v61  ;;  %v2914_v16 = vadd.f32 %v2913_v34, %v2912_v47 }
 0x114   : > { %v2827_v9 = vpop.f32.mrf.mxu0  ;;  %3274 = vmatmul.mubr.bf16.gmra.mxu0 %v3979_v40  ;;  %v2915_v13 = vpop.f32.mrf.mxu1  ;;  %1964 = vmatmul.mubr.bf16.gmra.mxu1 %v3960_v50 }
 0x115   : > { %3277 = vmatprep.mubr.bf16.mxu0 %v3991_v28  ;;  %v4196_v43 = vadd.f32 %v2914_v16, %v4130_v21  ;;  %1971 = vmatprep.mubr.bf16.mxu1 %v3566_v2 }
 0x116   : > { %v2828_v39 = vpop.f32.mrf.mxu0  ;;  %v2916_v35 = vpop.f32.mrf.mxu1 }
 0x117   : > { %v4198_v38 = vadd.f32 %v2828_v39, %v2827_v9  ;;  %v2917_v52 = vadd.f32 %v2916_v35, %v2915_v13 }
 0x118   : > { %v2830_v37 = vpop.f32.mrf.mxu0  ;;  %v2918_v54 = vpop.f32.mrf.mxu1 }
 0x119   : > { %v4202_v40 = vadd.f32 %v2917_v52, %v4137_v53 }
 0x11a   : > { %v2831_v62 = vpop.f32.mrf.mxu0  ;;  %v2919_v41 = vpop.f32.mrf.mxu1 }
 0x11b   : > { %v4204_v28 = vadd.f32 %v2831_v62, %v2830_v37  ;;  %v2920_v21 = vadd.f32 %v2919_v41, %v2918_v54 }
 0x11c   : > { %v2833_v50 = vpop.f32.mrf.mxu0  ;;  %3278 = vmatmul.mubr.bf16.gmra.mxu0 %v4000_v57  ;;  %v2921_v27 = vpop.f32.mrf.mxu1  ;;  %1972 = vmatmul.mubr.bf16.gmra.mxu1 %v3534_v42 }
 0x11d   : > { %3281 = vmatprep.mubr.bf16.mxu0 %v4012_v56  ;;  %v4210_v17 = vadd.f32 %v2920_v21, %v4146_v29  ;;  %1979 = vmatprep.mubr.bf16.mxu1 %v3610_v44 }
 0x11e   : > { %v2834_v2 = vpop.f32.mrf.mxu0  ;;  %v2922_v53 = vpop.f32.mrf.mxu1 }
 0x11f   : > { %v4212_v59 = vadd.f32 %v2834_v2, %v2833_v50  ;;  %v2923_v49 = vadd.f32 %v2922_v53, %v2921_v27 }
 0x120   : > { %v2836_v61 = vpop.f32.mrf.mxu0  ;;  %v2924_v47 = vpop.f32.mrf.mxu1 }
 0x121   : > { %v4216_v57 = vadd.f32 %v2923_v49, %v4157_v6 }
 0x122   : > { %v2837_v19 = vpop.f32.mrf.mxu0  ;;  %v2925_v34 = vpop.f32.mrf.mxu1 }
 0x123   : > { %v4218_v56 = vadd.f32 %v2837_v19, %v2836_v61  ;;  %v2926_v29 = vadd.f32 %v2925_v34, %v2924_v47 }
 0x124   : > { %v2839_v42 = vpop.f32.mrf.mxu0  ;;  %3282 = vmatmul.mubr.bf16.gmra.mxu0 %v4028_v23  ;;  %v2927_v9 = vpop.f32.mrf.mxu1  ;;  %1980 = vmatmul.mubr.bf16.gmra.mxu1 %v3585_v11 }
 0x125   : > { %3285 = vmatprep.mubr.bf16.mxu0 %v4043_v32  ;;  %v4224_v16 = vadd.f32 %v2926_v29, %v4165_v8  ;;  %1987 = vmatprep.mubr.bf16.mxu1 %v3674_v31 }
 0x126   : > { %v2840_v44 = vpop.f32.mrf.mxu0  ;;  %v2928_v6 = vpop.f32.mrf.mxu1 }
 0x127   : > { %v4226_v13 = vadd.f32 %v2840_v44, %v2839_v42  ;;  %v2929_v35 = vadd.f32 %v2928_v6, %v2927_v9 }
 0x128   : > { %v2842_v39 = vpop.f32.mrf.mxu0  ;;  %v2930_v37 = vpop.f32.mrf.mxu1 }
 0x129   : > { %v4230_v23 = vadd.f32 %v2929_v35, %v4172_v15 }
 0x12a   : > { %v2843_v52 = vpop.f32.mrf.mxu0  ;;  %v2931_v54 = vpop.f32.mrf.mxu1 }
 0x12b   : > { %v4232_v32 = vadd.f32 %v2843_v52, %v2842_v39  ;;  %v2932_v8 = vadd.f32 %v2931_v54, %v2930_v37 }
 0x12c   : > { %v2845_v11 = vpop.f32.mrf.mxu0  ;;  %3286 = vmatmul.mubr.bf16.gmra.mxu0 %v4058_v60  ;;  %v2933_v62 = vpop.f32.mrf.mxu1  ;;  %1988 = vmatmul.mubr.bf16.gmra.mxu1 %v3645_v0 }
 0x12d   : > { %3289 = vmatprep.mubr.bf16.mxu0 %v4069_v51  ;;  %v4238_v41 = vadd.f32 %v2932_v8, %v4177_v26  ;;  %1995 = vmatprep.mubr.bf16.mxu1 %v3733_v30 }
 0x12e   : > { %v2846_v31 = vpop.f32.mrf.mxu0  ;;  %v2934_v15 = vpop.f32.mrf.mxu1 }
 0x12f   : > { %v4240_v50 = vadd.f32 %v2846_v31, %v2845_v11  ;;  %v2935_v27 = vadd.f32 %v2934_v15, %v2933_v62 }
 0x130   : > { %v2848_v21 = vpop.f32.mrf.mxu0  ;;  %v2936_v2 = vpop.f32.mrf.mxu1 }
 0x131   : > { %v4244_v60 = vadd.f32 %v2935_v27, %v4184_v3 }
 0x132   : > { %v2849_v53 = vpop.f32.mrf.mxu0  ;;  %v2937_v61 = vpop.f32.mrf.mxu1 }
 0x133   : > { %v4246_v51 = vadd.f32 %v2849_v53, %v2848_v21  ;;  %v2938_v26 = vadd.f32 %v2937_v61, %v2936_v2 }
 0x134   : > { %v2851_v0 = vpop.f32.mrf.mxu0  ;;  %3290 = vmatmul.mubr.bf16.gmra.mxu0 %v4078_v4  ;;  %v2939_v49 = vpop.f32.mrf.mxu1  ;;  %1996 = vmatmul.mubr.bf16.gmra.mxu1 %v3695_v48 }
 0x135   : > { %3293 = vmatprep.mubr.bf16.mxu0 %v4087_v1  ;;  %v4252_v47 = vadd.f32 %v2938_v26, %v4190_v58  ;;  %2003 = vmatprep.mubr.bf16.mxu1 %v4163_v7 }
 0x136   : > { %v2852_v30 = vpop.f32.mrf.mxu0  ;;  %v2940_v3 = vpop.f32.mrf.mxu1 }
 0x137   : > { %v4254_v19 = vadd.f32 %v2852_v30, %v2851_v0  ;;  %v2941_v42 = vadd.f32 %v2940_v3, %v2939_v49 }
 0x138   : > { %v2854_v34 = vpop.f32.mrf.mxu0  ;;  %v2942_v29 = vpop.f32.mrf.mxu1 }
 0x139   : > { %v4258_v4 = vadd.f32 %v2941_v42, %v4198_v38 }
 0x13a   : > { %v2855_v9 = vpop.f32.mrf.mxu0  ;;  %v2943_v44 = vpop.f32.mrf.mxu1 }
 0x13b   : > { %v4260_v1 = vadd.f32 %v2855_v9, %v2854_v34  ;;  %v2944_v58 = vadd.f32 %v2943_v44, %v2942_v29 }
 0x13c   : > { %v2857_v48 = vpop.f32.mrf.mxu0  ;;  %3294 = vmatmul.mubr.bf16.gmra.mxu0 %v4100_v63  ;;  %v2945_v6 = vpop.f32.mrf.mxu1  ;;  %2004 = vmatmul.mubr.bf16.gmra.mxu1 %v4092_v22 }
 0x13d   : > { %3297 = vmatprep.mubr.bf16.mxu0 %v4152_v12  ;;  %v4266_v39 = vadd.f32 %v2944_v58, %v4204_v28  ;;  %2011 = vmatprep.mubr.bf16.mxu1 %v3523_v36 }
 0x13e   : > { %v2858_v7 = vpop.f32.mrf.mxu0  ;;  %v2946_v38 = vpop.f32.mrf.mxu1 }
 0x13f   : > { %v4268_v35 = vadd.f32 %v2858_v7, %v2857_v48  ;;  %v2947_v52 = vadd.f32 %v2946_v38, %v2945_v6 }
 0x140   : > { %v2860_v37 = vpop.f32.mrf.mxu0  ;;  %v2948_v54 = vpop.f32.mrf.mxu1 }
 0x141   : > { %v4272_v63 = vadd.f32 %v2947_v52, %v4212_v59 }
 0x142   : > { %v2861_v11 = vpop.f32.mrf.mxu0  ;;  %v2949_v8 = vpop.f32.mrf.mxu1 }
 0x143   : > { %v4274_v12 = vadd.f32 %v2861_v11, %v2860_v37  ;;  %v2950_v28 = vadd.f32 %v2949_v8, %v2948_v54 }
 0x144   : > { %v2863_v22 = vpop.f32.mrf.mxu0  ;;  %3298 = vmatmul.mubr.bf16.gmra.mxu0 %v3790_v20  ;;  %v2951_v62 = vpop.f32.mrf.mxu1  ;;  %2012 = vmatmul.mubr.bf16.gmra.mxu1 %v3498_v18 }
 0x145   : > { %v4279_v36 = vadd.f32 %v2950_v28, %v4218_v56 }
 0x146   : > { %v2864_v31 = vpop.f32.mrf.mxu0  ;;  %v2952_v21 = vpop.f32.mrf.mxu1 }
 0x147   : > { %v4281_v15 = vadd.f32 %v2864_v31, %v2863_v22  ;;  %v2953_v59 = vadd.f32 %v2952_v21, %v2951_v62 }
 0x148   : > { %v2866_v27 = vpop.f32.mrf.mxu0  ;;  %v2954_v2 = vpop.f32.mrf.mxu1 }
 0x149   : > { %v4284_v61 = vadd.f32 %v2953_v59, %v4226_v13 }
 0x14a   : > { %v2867_v53 = vpop.f32.mrf.mxu0  ;;  %v2955_v20 = vpop.f32.mrf.mxu1 }
 0x14b   : > { %v4286_v0 = vadd.f32 %v2867_v53, %v2866_v27  ;;  %v2956_v49 = vadd.f32 %v2955_v20, %v2954_v2 }
 0x14c   : > { %v3021_v26 = vpop.f32.mrf.mxu0  ;;  %v2957_v18 = vpop.f32.mrf.mxu1 }
 0x14d   : > { %v4289_v56 = vadd.f32 %v2956_v49, %v4232_v32 }
 0x14e   : > { %v3022_v30 = vpop.f32.mrf.mxu0  ;;  %v2958_v34 = vpop.f32.mrf.mxu1 }
 0x14f   : > { %v3023_v3 = vadd.f32 %v3022_v30, %v3021_v26  ;;  %v2959_v29 = vadd.f32 %v2958_v34, %v2957_v18 }
 0x150   : > { %v3024_v42 = vpop.f32.mrf.mxu0  ;;  %v2960_v44 = vpop.f32.mrf.mxu1 }
 0x151   : > { %v4292_v9 = vadd.f32 %v3023_v3, %v4188_v33  ;;  %v4295_v48 = vadd.f32 %v2959_v29, %v4240_v50 }
 0x152   : > { %v3025_v13 = vpop.f32.mrf.mxu0  ;;  %v2961_v6 = vpop.f32.mrf.mxu1 }
 0x153   : > { %v3026_v58 = vadd.f32 %v3025_v13, %v3024_v42  ;;  %v2962_v38 = vadd.f32 %v2961_v6, %v2960_v44 }
 0x154   : > { %v3027_v7 = vpop.f32.mrf.mxu0  ;;  %v2963_v32 = vpop.f32.mrf.mxu1 }
 0x155   : > { %v4298_v37 = vadd.f32 %v3026_v58, %v4196_v43  ;;  %v4301_v54 = vadd.f32 %v2962_v38, %v4246_v51 }
 0x156   : > { %v3028_v52 = vpop.f32.mrf.mxu0  ;;  %v2964_v33 = vpop.f32.mrf.mxu1 }
 0x157   : > { %v3029_v11 = vadd.f32 %v3028_v52, %v3027_v7  ;;  %v2965_v22 = vadd.f32 %v2964_v33, %v2963_v32 }
 0x158   : > { %v3030_v8 = vpop.f32.mrf.mxu0  ;;  %v2966_v50 = vpop.f32.mrf.mxu1 }
 0x159   : > { %v4304_v28 = vadd.f32 %v3029_v11, %v4202_v40  ;;  %v4307_v31 = vadd.f32 %v2965_v22, %v4254_v19 }
 0x15a   : > { %v3031_v62 = vpop.f32.mrf.mxu0  ;;  %v2967_v43 = vpop.f32.mrf.mxu1 }
 0x15b   : > { %v3032_v21 = vadd.f32 %v3031_v62, %v3030_v8  ;;  %v2968_v59 = vadd.f32 %v2967_v43, %v2966_v50 }
 0x15c   : > { %v3033_v27 = vpop.f32.mrf.mxu0  ;;  %v2969_v51 = vpop.f32.mrf.mxu1 }
 0x15d   : > { %v4310_v2 = vadd.f32 %v3032_v21, %v4210_v17  ;;  %v4313_v20 = vadd.f32 %v2968_v59, %v4260_v1 }
 0x15e   : > { %v3034_v53 = vpop.f32.mrf.mxu0  ;;  %v2970_v40 = vpop.f32.mrf.mxu1 }
 0x15f   : > { %v3035_v26 = vadd.f32 %v3034_v53, %v3033_v27  ;;  %v2971_v18 = vadd.f32 %v2970_v40, %v2969_v51 }
 0x160   : > { %v3036_v49 = vpop.f32.mrf.mxu0  ;;  %v2972_v19 = vpop.f32.mrf.mxu1 }
 0x161   : > { %v4316_v30 = vadd.f32 %v3035_v26, %v4216_v57  ;;  %v4319_v34 = vadd.f32 %v2971_v18, %v4268_v35 }
 0x162   : > { %v3037_v3 = vpop.f32.mrf.mxu0  ;;  %v2973_v17 = vpop.f32.mrf.mxu1 }
 0x163   : > { %v3038_v42 = vadd.f32 %v3037_v3, %v3036_v49  ;;  %v2974_v44 = vadd.f32 %v2973_v17, %v2972_v19 }
 0x164   : > { %v3039_v29 = vpop.f32.mrf.mxu0  ;;  %v2975_v1 = vpop.f32.mrf.mxu1 }
 0x165   : > { %v4322_v13 = vadd.f32 %v3038_v42, %v4224_v16  ;;  %v4325_v6 = vadd.f32 %v2974_v44, %v4274_v12 }
 0x166   : > { %v3040_v58 = vpop.f32.mrf.mxu0  ;;  %v2976_v57 = vpop.f32.mrf.mxu1 }
 0x167   : > { %v3041_v7 = vadd.f32 %v3040_v58, %v3039_v29  ;;  %v2977_v32 = vadd.f32 %v2976_v57, %v2975_v1 }
 0x168   : > { %v3042_v38 = vpop.f32.mrf.mxu0  ;;  %v2978_v35 = vpop.f32.mrf.mxu1 }
 0x169   : > { %v4328_v52 = vadd.f32 %v3041_v7, %v4230_v23  ;;  %v4331_v33 = vadd.f32 %v2977_v32, %v4281_v15 }
 0x16a   : > { %v3043_v11 = vpop.f32.mrf.mxu0  ;;  %v2979_v16 = vpop.f32.mrf.mxu1 }
 0x16b   : > { %v3044_v8 = vadd.f32 %v3043_v11, %v3042_v38  ;;  %v2980_v50 = vadd.f32 %v2979_v16, %v2978_v35 }
 0x16c   : > { %v3045_v22 = vpop.f32.mrf.mxu0  ;;  %v2981_v12 = vpop.f32.mrf.mxu1 }
 0x16d   : > { %v4334_v62 = vadd.f32 %v3044_v8, %v4238_v41  ;;  %v4337_v43 = vadd.f32 %v2980_v50, %v4286_v0 }
 0x16e   : > { %v3046_v21 = vpop.f32.mrf.mxu0  ;;  %v2982_v23 = vpop.f32.mrf.mxu1 }
 0x16f   : > { %v3047_v27 = vadd.f32 %v3046_v21, %v3045_v22  ;;  %v2983_v51 = vadd.f32 %v2982_v23, %v2981_v12 }
 0x170   : > { %v3048_v59 = vpop.f32.mrf.mxu0  ;;  %v2984_v15 = vpop.f32.mrf.mxu1 }
 0x171   : > { %v4340_v53 = vadd.f32 %v3047_v27, %v4244_v60  ;;  %v4343_v40 = vadd.f32 %v2983_v51, %v4127_v25 }
 0x172   : > { %v3049_v26 = vpop.f32.mrf.mxu0  ;;  %v2985_v41 = vpop.f32.mrf.mxu1 }
 0x173   : > { %v3050_v49 = vadd.f32 %v3049_v26, %v3048_v59  ;;  %v2986_v19 = vadd.f32 %v2985_v41, %v2984_v15 }
 0x174   : > { %v3051_v18 = vpop.f32.mrf.mxu0  ;;  %v2987_v0 = vpop.f32.mrf.mxu1 }
 0x175   : > { %v4346_v3 = vadd.f32 %v3050_v49, %v4252_v47  ;;  %v4349_v17 = vadd.f32 %v2986_v19, %v4132_v14 }
 0x176   : > { %v3052_v42 = vpop.f32.mrf.mxu0  ;;  %v2988_v60 = vpop.f32.mrf.mxu1 }
 0x177   : > { %v3053_v29 = vadd.f32 %v3052_v42, %v3051_v18  ;;  %v2989_v1 = vadd.f32 %v2988_v60, %v2987_v0 }
 0x178   : > { %v3054_v44 = vpop.f32.mrf.mxu0  ;;  %v2990_v25 = vpop.f32.mrf.mxu1 }
 0x179   : > { %v4352_v58 = vadd.f32 %v3053_v29, %v4258_v4  ;;  %v4355_v57 = vadd.f32 %v2989_v1, %v4142_v46 }
 0x17a   : > { %v3055_v7 = vpop.f32.mrf.mxu0  ;;  %v2991_v47 = vpop.f32.mrf.mxu1 }
 0x17b   : > { %v3056_v38 = vadd.f32 %v3055_v7, %v3054_v44  ;;  %v2992_v35 = vadd.f32 %v2991_v47, %v2990_v25 }
 0x17c   : > { %v3057_v32 = vpop.f32.mrf.mxu0  ;;  %v2993_v14 = vpop.f32.mrf.mxu1 }
 0x17d   : > { %v4358_v11 = vadd.f32 %v3056_v38, %v4266_v39  ;;  %v4361_v16 = vadd.f32 %v2992_v35, %v4149_v24 }
 0x17e   : > { %v3058_v8 = vpop.f32.mrf.mxu0  ;;  %v2994_v4 = vpop.f32.mrf.mxu1 }
 0x17f   : > { %v3059_v22 = vadd.f32 %v3058_v8, %v3057_v32  ;;  %v2995_v12 = vadd.f32 %v2994_v4, %v2993_v14 }
 0x180   : > { %v3060_v50 = vpop.f32.mrf.mxu0  ;;  %v2996_v46 = vpop.f32.mrf.mxu1 }
 0x181   : > { %v4364_v21 = vadd.f32 %v3059_v22, %v4272_v63  ;;  %v4367_v23 = vadd.f32 %v2995_v12, %v4160_v45 }
 0x182   : > { %v3061_v27 = vpop.f32.mrf.mxu0  ;;  %v2997_v39 = vpop.f32.mrf.mxu1 }
 0x183   : > { %v3062_v59 = vadd.f32 %v3061_v27, %v3060_v50  ;;  %v2998_v15 = vadd.f32 %v2997_v39, %v2996_v46 }
 0x184   : > { %v3063_v51 = vpop.f32.mrf.mxu0  ;;  %v2999_v24 = vpop.f32.mrf.mxu1 }
 0x185   : > { %v4370_v26 = vadd.f32 %v3062_v59, %v4279_v36  ;;  %v4373_v41 = vadd.f32 %v2998_v15, %v4167_v10 }
 0x186   : > { %v3064_v49 = vpop.f32.mrf.mxu0  ;;  %v3000_v63 = vpop.f32.mrf.mxu1 }
 0x187   : > { %v3065_v18 = vadd.f32 %v3064_v49, %v3063_v51  ;;  %v3001_v0 = vadd.f32 %v3000_v63, %v2999_v24 }
 0x188   : > { %v3066_v19 = vpop.f32.mrf.mxu0  ;;  %v3002_v45 = vpop.f32.mrf.mxu1 }
 0x189   : > { %v4376_v42 = vadd.f32 %v3065_v18, %v4284_v61  ;;  %v4379_v60 = vadd.f32 %v3001_v0, %v4175_v55 }
 0x18a   : > { %v3067_v29 = vpop.f32.mrf.mxu0  ;;  %v3003_v36 = vpop.f32.mrf.mxu1 }
 0x18b   : > { %v3068_v44 = vadd.f32 %v3067_v29, %v3066_v19  ;;  %v3004_v25 = vadd.f32 %v3003_v36, %v3002_v45 }
 0x18c   : > { %v3069_v1 = vpop.f32.mrf.mxu0  ;;  %v3133_v10 = vpop.f32.mrf.mxu1 }
 0x18d   : > { %v4382_v7 = vadd.f32 %v3068_v44, %v4289_v56  ;;  %v4385_v47 = vadd.f32 %v3004_v25, %v4180_v5 }
 0x18e   : > { %v3070_v38 = vpop.f32.mrf.mxu0  ;;  %v3134_v61 = vpop.f32.mrf.mxu1 }
 0x18f   : > { %v3071_v32 = vadd.f32 %v3070_v38, %v3069_v1  ;;  %v3135_v55 = vadd.f32 %v3134_v61, %v3133_v10 }
 0x190   : > { %v3072_v35 = vpop.f32.mrf.mxu0  ;;  %v4390_v8 = vpop.f32.mrf.mxu1 }
 0x191   : > { %v4388_v14 = vadd.f32 %v3071_v32, %v4295_v48  ;;  %v4393_v50 = vadd.f32 %v3135_v55, %v4292_v9 }
 0x192   : > { %v3073_v22 = vpop.f32.mrf.mxu0  ;;  %v4395_v56 = vpop.f32.mrf.mxu1 }
 0x193   : > { %v3074_v4 = vadd.f32 %v3073_v22, %v3072_v35 }
 0x194   : > { %v3075_v12 = vpop.f32.mrf.mxu0  ;;  %v4400_v46 = vpop.f32.mrf.mxu1 }
 0x195   : > { %v4398_v5 = vadd.f32 %v3074_v4, %v4301_v54 }
 0x196   : > { %v3076_v27 = vpop.f32.mrf.mxu0  ;;  %v4402_v48 = vpop.f32.mrf.mxu1 }
 0x197   : > { %v3077_v59 = vadd.f32 %v3076_v27, %v3075_v12 }
 0x198   : > { %v3078_v39 = vpop.f32.mrf.mxu0  ;;  %v4407_v15 = vpop.f32.mrf.mxu1 }
 0x199   : > { %v4405_v51 = vadd.f32 %v3077_v59, %v4307_v31 }
 0x19a   : > { %v3079_v9 = vpop.f32.mrf.mxu0  ;;  %v4409_v49 = vpop.f32.mrf.mxu1 }
 0x19b   : > { %v3080_v24 = vadd.f32 %v3079_v9, %v3078_v39 }
 0x19c   : > { %v3081_v18 = vpop.f32.mrf.mxu0  ;;  %v4414_v63 = vpop.f32.mrf.mxu1 }
 0x19d   : > { %v4412_v54 = vadd.f32 %v3080_v24, %v4313_v20 }
 0x19e   : > { %v3082_v19 = vpop.f32.mrf.mxu0  ;;  %v4416_v45 = vpop.f32.mrf.mxu1 }
 0x19f   : > { %v3083_v0 = vadd.f32 %v3082_v19, %v3081_v18 }
 0x1a0   : > { %v3084_v29 = vpop.f32.mrf.mxu0  ;;  %v4421_v44 = vpop.f32.mrf.mxu1 }
 0x1a1   : > { %v4419_v31 = vadd.f32 %v3083_v0, %v4319_v34 }
 0x1a2   : > { %v3085_v36 = vpop.f32.mrf.mxu0  ;;  %v4423_v25 = vpop.f32.mrf.mxu1 }
 0x1a3   : > { %v3086_v1 = vadd.f32 %v3085_v36, %v3084_v29 }
 0x1a4   : > { %v3087_v10 = vpop.f32.mrf.mxu0  ;;  %v4428_v38 = vpop.f32.mrf.mxu1 }
 0x1a5   : > { %v4426_v20 = vadd.f32 %v3086_v1, %v4325_v6 }
 0x1a6   : > { %v3088_v32 = vpop.f32.mrf.mxu0  ;;  %v4430_v35 = vpop.f32.mrf.mxu1 }
 0x1a7   : > { %4634 = vst [vmem:[#allocation2_spill] sm:$0xff] %v4426_v20  ;;  %v3089_v61 = vadd.f32 %v3088_v32, %v3087_v10 }
 0x1a8   : > { %v3090_v55 = vpop.f32.mrf.mxu0  ;;  %v4435_v22 = vpop.f32.mrf.mxu1 }
 0x1a9   : > { %v4433_v34 = vadd.f32 %v3089_v61, %v4331_v33 }
 0x1aa   : > { %v3091_v4 = vpop.f32.mrf.mxu0  ;;  %v4437_v27 = vpop.f32.mrf.mxu1 }
 0x1ab   : > { %v3092_v12 = vadd.f32 %v3091_v4, %v3090_v55 }
 0x1ac   : > { %v3093_v59 = vpop.f32.mrf.mxu0  ;;  %v4442_v39 = vpop.f32.mrf.mxu1 }
 0x1ad   : > { %v4440_v6 = vadd.f32 %v3092_v12, %v4337_v43 }
 0x1ae   : > { %v3094_v9 = vpop.f32.mrf.mxu0  ;;  %v4444_v18 = vpop.f32.mrf.mxu1 }
 0x1af   : > { %4635 = vst [vmem:[#allocation3_spill] sm:$0xff] %v4440_v6  ;;  %v3095_v24 = vadd.f32 %v3094_v9, %v3093_v59 }
 0x1b0   : > { %v3096_v19 = vpop.f32.mrf.mxu0  ;;  %v4449_v0 = vpop.f32.mrf.mxu1 }
 0x1b1   : > { %v4447_v33 = vadd.f32 %v3095_v24, %v4343_v40 }
 0x1b2   : > { %v3097_v29 = vpop.f32.mrf.mxu0  ;;  %v4451_v1 = vpop.f32.mrf.mxu1 }
 0x1b3   : > { %4636 = vst [vmem:[#allocation4_spill] sm:$0xff] %v4447_v33  ;;  %v3098_v36 = vadd.f32 %v3097_v29, %v3096_v19 }
 0x1b4   : > { %v3099_v10 = vpop.f32.mrf.mxu0  ;;  %v4456_v32 = vpop.f32.mrf.mxu1 }
 0x1b5   : > { %v4454_v43 = vadd.f32 %v3098_v36, %v4349_v17 }
 0x1b6   : > { %v3100_v61 = vpop.f32.mrf.mxu0  ;;  %v4458_v4 = vpop.f32.mrf.mxu1 }
 0x1b7   : > { %4637 = vst [vmem:[#allocation5_spill] sm:$0xff] %v4454_v43  ;;  %v3101_v55 = vadd.f32 %v3100_v61, %v3099_v10 }
 0x1b8   : > { %v3102_v12 = vpop.f32.mrf.mxu0  ;;  %v4463_v59 = vpop.f32.mrf.mxu1 }
 0x1b9   : > { %v4461_v40 = vadd.f32 %v3101_v55, %v4355_v57 }
 0x1ba   : > { %v3103_v9 = vpop.f32.mrf.mxu0  ;;  %v4465_v19 = vpop.f32.mrf.mxu1 }
 0x1bb   : > { %4638 = vst [vmem:[#allocation6_spill] sm:$0xff] %v4461_v40  ;;  %v3104_v24 = vadd.f32 %v3103_v9, %v3102_v12 }
 0x1bc   : > { %v3105_v29 = vpop.f32.mrf.mxu0  ;;  %v4470_v36 = vpop.f32.mrf.mxu1 }
 0x1bd   : > { %v4468_v17 = vadd.f32 %v3104_v24, %v4361_v16 }
 0x1be   : > { %v3106_v43 = vpop.f32.mrf.mxu0  ;;  %v4472_v61 = vpop.f32.mrf.mxu1 }
 0x1bf   : > { %4639 = vst [vmem:[#allocation7_spill] sm:$0xff] %v4468_v17  ;;  %v3107_v10 = vadd.f32 %v3106_v43, %v3105_v29 }
 0x1c0   : > { %v3108_v33 = vpop.f32.mrf.mxu0  ;;  %v4477_v55 = vpop.f32.mrf.mxu1 }
 0x1c1   : > { %v4475_v57 = vadd.f32 %v3107_v10, %v4367_v23 }
 0x1c2   : > { %v3109_v40 = vpop.f32.mrf.mxu0  ;;  %v4479_v9 = vpop.f32.mrf.mxu1 }
 0x1c3   : > { %4640 = vst [vmem:[#allocation8_spill] sm:$0xff] %v4475_v57  ;;  %v3110_v12 = vadd.f32 %v3109_v40, %v3108_v33  ;;  %v3141_v40 = vadd.f32 %v4402_v48, %v4400_v46  ;;  %v3147_v48 = vadd.f32 %v4416_v45, %v4414_v63  ;;  %v3150_v45 = vadd.f32 %v4423_v25, %v4421_v44 }
 0x1c4   : > { %v3111_v20 = vpop.f32.mrf.mxu0  ;;  %v4484_v24 = vpop.f32.mrf.mxu1 }
 0x1c5   : > { %v4482_v16 = vadd.f32 %v3110_v12, %v4373_v41  ;;  %v3144_v41 = vadd.f32 %v4409_v49, %v4407_v15 }
 0x1c6   : > { %v3112_v17 = vpop.f32.mrf.mxu0  ;;  %v4486_v29 = vpop.f32.mrf.mxu1 }
 0x1c7   : > { %4641 = vst [vmem:[#allocation9_spill] sm:$0xff] %v4482_v16  ;;  %v3113_v43 = vadd.f32 %v3112_v17, %v3111_v20  ;;  %v3138_v17 = vadd.f32 %v4395_v56, %v4390_v8  ;;  %v1905_v46 = vadd.f32 %v3144_v41, %v4310_v2  ;;  %v1910_v41 = vadd.f32 %v3147_v48, %v4316_v30 }
 0x1c8   : > { %v3114_v6 = vpop.f32.mrf.mxu0  ;;  %v4491_v10 = vpop.f32.mrf.mxu1  ;;  %v1913_v48 = vadd.f32 %v3150_v45, %v4322_v13 }
 0x1c9   : > { %v4489_v23 = vadd.f32 %v3113_v43, %v4379_v60 }
 0x1ca   : > { %v3115_v33 = vpop.f32.mrf.mxu0  ;;  %v4497_v16 = vpop.f32.mrf.mxu1 }
 0x1cb   : > { %4642 = vst [vmem:[#allocation10_spill] sm:$0xff] %v4489_v23  ;;  %v3116_v12 = vadd.f32 %v3115_v33, %v3114_v6  ;;  %v1902_v23 = vadd.f32 %v3141_v40, %v4304_v28 }
 0x1cc   : > { %v3271_v20 = vpop.f32.mrf.mxu0  ;;  %v4504_v60 = vpop.f32.mrf.mxu1 }
 0x1cd   : > { %v4502_v57 = vadd.f32 %v3116_v12, %v4385_v47  ;;  %v2063_v6 = vadd.f32 %v3271_v20, %v1902_v23  ;;  %v1897_v47 = vadd.f32 %v3138_v17, %v4298_v37  ;;  %v3156_v37 = vadd.f32 %v4437_v27, %v4435_v22 }
 0x1ce   : > { %v2054_v43 = vpop.f32.mrf.mxu0  ;;  %v4511_v15 = vpop.f32.mrf.mxu1 }
 0x1cf   : > { %v2055_v8 = vadd.f32 %v2054_v43, %v4393_v50  ;;  %v3153_v50 = vadd.f32 %v4430_v35, %v4428_v38  ;;  %v2380_v44 = vmul.f32 %v2063_v6, %v2063_v6 }
 0x1d0   : > { %v3272_v49 = vpop.f32.mrf.mxu0  ;;  %v4515_v33 = vpop.f32.mrf.mxu1 }
 0x1d1   : > { %v2066_v56 = vadd.f32 %v3272_v49, %v1905_v46  ;;  %v2378_v12 = vmul.f32 %v2055_v8, %v2055_v8  ;;  %v1918_v22 = vadd.f32 %v3153_v50, %v4328_v52 }
 0x1d2   : > { %v2057_v28 = vpop.f32.mrf.mxu0  ;;  %v4528_v23 = vpop.f32.mrf.mxu1 }
 0x1d3   : > { %v2694_v2 = vpack.c.bf16 %v2066_v56, %v2063_v6  ;;  %v2058_v63 = vadd.f32 %v2057_v28, %v1897_v47  ;;  %v1921_v47 = vadd.f32 %v3156_v37, %v4334_v62  ;;  %v2381_v28 = vmul.f32 %v2066_v56, %v2066_v56 }
 0x1d4   : > { %v3275_v40 = vpop.f32.mrf.mxu0  ;;  %v4532_v46 = vpop.f32.mrf.mxu1 }
 0x1d5   : > { %2766 = vst [vmem:[%s4520_s23 + $0x8] sm:$0xff] %v2694_v2   ;;  %v2689_v20 = vpack.c.bf16 %v2058_v63, %v2055_v8  ;;  %v2341_v17 = vadd.f32 %v2058_v63, %v2055_v8  ;;  %v2379_v43 = vmul.f32 %v2058_v63, %v2058_v63  ;;  %v3159_v8 = vadd.f32 %v4444_v18, %v4442_v39 }
 0x1d6   : > { %v2070_v49 = vpop.f32.mrf.mxu0  ;;  %v4536_v27 = vpop.f32.mrf.mxu1  ;;  %v2079_v52 = vadd.f32 %v3275_v40, %v1918_v22 }
 0x1d7   : > { %2690 = vst [vmem:[%s4520_s23] sm:$0xff] %v2689_v20   ;;  %v2342_v25 = vadd.f32 %v2341_v17, %v2063_v6  ;;  %v2410_v38 = vadd.f32 %v2379_v43, %v2378_v12  ;;  %v2071_v35 = vadd.f32 %v2070_v49, %v1910_v41  ;;  %v3165_v6 = vadd.f32 %v4458_v4, %v4456_v32 }
 0x1d8   : > { %v3276_v30 = vpop.f32.mrf.mxu0  ;;  %v3168_v41 = vadd.f32 %v4465_v19, %v4463_v59  ;;  %v4546_v50 = vpop.f32.mrf.mxu1  ;;  %v3162_v32 = vadd.f32 %v4451_v1, %v4449_v0  ;;  %v1926_v43 = vadd.f32 %v3159_v8, %v4340_v53  ;;  %v2384_v22 = vmul.f32 %v2079_v52, %v2079_v52 }
 0x1d9   : > { %v2411_v2 = vadd.f32 %v2410_v38, %v2380_v44  ;;  %v2343_v63 = vadd.f32 %v2342_v25, %v2066_v56  ;;  %v2082_v62 = vadd.f32 %v3276_v30, %v1921_v47  ;;  %v2382_v13 = vmul.f32 %v2071_v35, %v2071_v35 }
 0x1da   : > { %v2073_v37 = vpop.f32.mrf.mxu0  ;;  %v4548_v20 = vpop.f32.mrf.mxu1  ;;  %v1934_v25 = vadd.f32 %v3165_v6, %v4352_v58  ;;  %v1937_v38 = vadd.f32 %v3168_v41, %v4358_v11  ;;  %v3171_v53 = vadd.f32 %v4472_v61, %v4470_v36  ;;  %v3177_v58 = vadd.f32 %v4486_v29, %v4484_v24 }
 0x1db   : > { %v2344_v12 = vadd.f32 %v2343_v63, %v2071_v35  ;;  %v2412_v45 = vadd.f32 %v2411_v2, %v2381_v28  ;;  %v2074_v39 = vadd.f32 %v2073_v37, %v1913_v48  ;;  %v2704_v18 = vpack.c.bf16 %v2082_v62, %v2079_v52 }
 0x1dc   : > { %v3279_v56 = vpop.f32.mrf.mxu0  ;;  %v4553_v17 = vpop.f32.mrf.mxu1  ;;  %v1929_v2 = vadd.f32 %v3162_v32, %v4346_v3  ;;  %v2385_v8 = vmul.f32 %v2082_v62, %v2082_v62  ;;  %v3180_v41 = vadd.f32 %v4497_v16, %v4491_v10  ;;  %v3174_v61 = vadd.f32 %v4479_v9, %v4477_v55 }
 0x1dd   : > { %v2413_v4 = vadd.f32 %v2412_v45, %v2382_v13  ;;  %v2699_v59 = vpack.c.bf16 %v2074_v39, %v2071_v35  ;;  %v2345_v19 = vadd.f32 %v2344_v12, %v2074_v39  ;;  %2768 = vst [vmem:[%s4520_s23 + $0x18] sm:$0xff] %v2704_v18   ;;  %v2383_v40 = vmul.f32 %v2074_v39, %v2074_v39 }
 0x1de   : > { %v2086_v49 = vpop.f32.mrf.mxu0  ;;  %v4559_v30 = vpop.f32.mrf.mxu1  ;;  %v2095_v35 = vadd.f32 %v3279_v56, %v1934_v25  ;;  %v1942_v16 = vadd.f32 %v3171_v53, %v4364_v21  ;;  %v1950_v32 = vadd.f32 %v3177_v58, %v4376_v42  ;;  %v1945_v25 = vadd.f32 %v3174_v61, %v4370_v26 }
 0x1df   : > { %2767 = vst [vmem:[%s4520_s23 + $0x10] sm:$0xff] %v2699_v59   ;;  %v2346_v44 = vadd.f32 %v2345_v19, %v2079_v52  ;;  %v2414_v47 = vadd.f32 %v2413_v4, %v2383_v40  ;;  %v2087_v0 = vadd.f32 %v2086_v49, %v1926_v43  ;;  %v1953_v4 = vadd.f32 %v3180_v41, %v4382_v7 }
 0x1e0   : > { %v3280_v1 = vpop.f32.mrf.mxu0  ;;  %v4566_v63 = vpop.f32.mrf.mxu1  ;;  %v2388_v59 = vmul.f32 %v2095_v35, %v2095_v35  ;;  %v3183_v21 = vadd.f32 %v4511_v15, %v4504_v60  ;;  %v3186_v60 = vadd.f32 %v4528_v23, %v4515_v33 }
 0x1e1   : > { %v2347_v48 = vadd.f32 %v2346_v44, %v2082_v62  ;;  %v2098_v28 = vadd.f32 %v3280_v1, %v1937_v38  ;;  %v2415_v11 = vadd.f32 %v2414_v47, %v2384_v22  ;;  %v2386_v3 = vmul.f32 %v2087_v0, %v2087_v0 }
 0x1e2   : > { %v2089_v6 = vpop.f32.mrf.mxu0  ;;  %v4570_v45 = vpop.f32.mrf.mxu1  ;;  %v3189_v38 = vadd.f32 %v4536_v27, %v4532_v46  ;;  %v1961_v61 = vadd.f32 %v3186_v60, %v4398_v5 }
 0x1e3   : > { %v2348_v52 = vadd.f32 %v2347_v48, %v2087_v0  ;;  %v2714_v37 = vpack.c.bf16 %v2098_v28, %v2095_v35  ;;  %v2090_v12 = vadd.f32 %v2089_v6, %v1929_v2  ;;  %v2416_v13 = vadd.f32 %v2415_v11, %v2385_v8 }
 0x1e4   : > { %v3283_v36 = vpop.f32.mrf.mxu0  ;;  %v3199_v18 = vpop.f32.mrf.mxu1  ;;  %v2389_v42 = vmul.f32 %v2098_v28, %v2098_v28  ;;  %v1958_v11 = vadd.f32 %v3183_v21, %v4388_v14  ;;  %v1966_v6 = vadd.f32 %v3189_v38, %v4405_v51  ;;  %v3195_v14 = vadd.f32 %v4559_v30, %v4553_v17 }
 0x1e5   : > { %2770 = vst [vmem:[%s4520_s23 + $0x28] sm:$0xff] %v2714_v37   ;;  %v2709_v24 = vpack.c.bf16 %v2090_v12, %v2087_v0  ;;  %v2349_v29 = vadd.f32 %v2348_v52, %v2090_v12  ;;  %v2387_v62 = vmul.f32 %v2090_v12, %v2090_v12  ;;  %v2417_v39 = vadd.f32 %v2416_v13, %v2386_v3 }
 0x1e6   : > { %v2102_v10 = vpop.f32.mrf.mxu0  ;;  %v3200_v40 = vpop.f32.mrf.mxu1  ;;  %v2111_v9 = vadd.f32 %v3283_v36, %v1950_v32  ;;  %v3192_v0 = vadd.f32 %v4548_v20, %v4546_v50  ;;  %v3198_v5 = vadd.f32 %v4570_v45, %v4566_v63 }
 0x1e7   : > { %2769 = vst [vmem:[%s4520_s23 + $0x20] sm:$0xff] %v2709_v24   ;;  %v2350_v56 = vadd.f32 %v2349_v29, %v2095_v35  ;;  %v2418_v19 = vadd.f32 %v2417_v39, %v2387_v62  ;;  %v2103_v43 = vadd.f32 %v2102_v10, %v1942_v16  ;;  %v3201_v24 = vadd.f32 %v3200_v40, %v3199_v18 }
 0x1e8   : > { %v3284_v55 = vpop.f32.mrf.mxu0  ;;  %v3202_v7 = vpop.f32.mrf.mxu1  ;;  %v1969_v41 = vadd.f32 %v3192_v0, %v4412_v54  ;;  %v2392_v52 = vmul.f32 %v2111_v9, %v2111_v9 }
 0x1e9   : > { %v2351_v49 = vadd.f32 %v2350_v56, %v2098_v28  ;;  %v2114_v44 = vadd.f32 %v3284_v55, %v1953_v4  ;;  %v2419_v22 = vadd.f32 %v2418_v19, %v2388_v59  ;;  %v2390_v2 = vmul.f32 %v2103_v43, %v2103_v43 }
 0x1ea   : > { %v2105_v47 = vpop.f32.mrf.mxu0  ;;  %v3203_v53 = vpop.f32.mrf.mxu1  ;;  %v1974_v55 = vadd.f32 %v3195_v14, %v4419_v31 }
 0x1eb   : > { %v2352_v1 = vadd.f32 %v2351_v49, %v2103_v43  ;;  %v2724_v35 = vpack.c.bf16 %v2114_v44, %v2111_v9  ;;  %v2106_v48 = vadd.f32 %v2105_v47, %v1945_v25  ;;  %v2420_v26 = vadd.f32 %v2419_v22, %v2389_v42  ;;  %v4643_v25 = vld [vmem:[#allocation3_spill] sm:$0xff] }
 0x1ec   : > { %v3287_v58 = vpop.f32.mrf.mxu0  ;;  %v3205_v8 = vpop.f32.mrf.mxu1  ;;  %v2393_v29 = vmul.f32 %v2114_v44, %v2114_v44  ;;  %v3204_v54 = vadd.f32 %v3203_v53, %v3202_v7 }
 0x1ed   : > { %2772 = vst [vmem:[%s4520_s23 + $0x38] sm:$0xff] %v2724_v35   ;;  %v2719_v15 = vpack.c.bf16 %v2106_v48, %v2103_v43  ;;  %v2353_v46 = vadd.f32 %v2352_v1, %v2106_v48  ;;  %v2391_v27 = vmul.f32 %v2106_v48, %v2106_v48  ;;  %v2421_v28 = vadd.f32 %v2420_v26, %v2390_v2  ;;  %v4644_v1 = vld [vmem:[#allocation2_spill] sm:$0xff] }
 0x1ee   : > { %v2118_v50 = vpop.f32.mrf.mxu0  ;;  %v3206_v12 = vpop.f32.mrf.mxu1  ;;  %v2127_v23 = vadd.f32 %v3287_v58, %v1966_v6  ;;  %v1985_v21 = vadd.f32 %v3204_v54, %v4643_v25  ;;  %v1977_v35 = vadd.f32 %v3198_v5, %v4644_v1 }
 0x1ef   : > { %2771 = vst [vmem:[%s4520_s23 + $0x30] sm:$0xff] %v2719_v15   ;;  %v2354_v20 = vadd.f32 %v2353_v46, %v2111_v9  ;;  %v2422_v37 = vadd.f32 %v2421_v28, %v2391_v27  ;;  %v2119_v3 = vadd.f32 %v2118_v50, %v1958_v11  ;;  %v3207_v48 = vadd.f32 %v3206_v12, %v3205_v8  ;;  %v4645_v12 = vld [vmem:[#allocation4_spill] sm:$0xff] }
 0x1f0   : > { %v3288_v33 = vpop.f32.mrf.mxu0  ;;  %v3208_v51 = vpop.f32.mrf.mxu1  ;;  %v2396_v38 = vmul.f32 %v2127_v23, %v2127_v23 }
 0x1f1   : > { %v2355_v13 = vadd.f32 %v2354_v20, %v2114_v44  ;;  %v2130_v36 = vadd.f32 %v3288_v33, %v1969_v41  ;;  %v2423_v62 = vadd.f32 %v2422_v37, %v2392_v52  ;;  %v2394_v32 = vmul.f32 %v2119_v3, %v2119_v3 }
 0x1f2   : > { %v2121_v39 = vpop.f32.mrf.mxu0  ;;  %v3209_v59 = vpop.f32.mrf.mxu1  ;;  %v1982_v44 = vadd.f32 %v3201_v24, %v4433_v34 }
 0x1f3   : > { %v2356_v16 = vadd.f32 %v2355_v13, %v2119_v3  ;;  %v2734_v10 = vpack.c.bf16 %v2130_v36, %v2127_v23  ;;  %v2122_v56 = vadd.f32 %v2121_v39, %v1961_v61  ;;  %v2424_v4 = vadd.f32 %v2423_v62, %v2393_v29  ;;  %v4646_v13 = vld [vmem:[#allocation6_spill] sm:$0xff]  ;;  %v4647_v61 = vld [vmem:[#allocation7_spill] sm:$0xff] }
 0x1f4   : > { %v3291_v19 = vpop.f32.mrf.mxu0  ;;  %v3211_v40 = vpop.f32.mrf.mxu1  ;;  %v2397_v31 = vmul.f32 %v2130_v36, %v2130_v36  ;;  %v3210_v46 = vadd.f32 %v3209_v59, %v3208_v51 }
 0x1f5   : > { %2774 = vst [vmem:[%s4520_s23 + $0x48] sm:$0xff] %v2734_v10   ;;  %v2729_v43 = vpack.c.bf16 %v2122_v56, %v2119_v3  ;;  %v2357_v17 = vadd.f32 %v2356_v16, %v2122_v56  ;;  %v2395_v30 = vmul.f32 %v2122_v56, %v2122_v56  ;;  %v2425_v18 = vadd.f32 %v2424_v4, %v2394_v32  ;;  %v4648_v56 = vld [vmem:[#allocation5_spill] sm:$0xff] }
 0x1f6   : > { %v2134_v9 = vpop.f32.mrf.mxu0  ;;  %v3212_v22 = vpop.f32.mrf.mxu1  ;;  %v2143_v45 = vadd.f32 %v3291_v19, %v1982_v44  ;;  %v1990_v3 = vadd.f32 %v3207_v48, %v4645_v12  ;;  %v1993_v32 = vadd.f32 %v3210_v46, %v4648_v56 }
 0x1f7   : > { %2773 = vst [vmem:[%s4520_s23 + $0x40] sm:$0xff] %v2729_v43   ;;  %v2358_v49 = vadd.f32 %v2357_v17, %v2127_v23  ;;  %v2426_v42 = vadd.f32 %v2425_v18, %v2395_v30  ;;  %v2135_v7 = vadd.f32 %v2134_v9, %v1974_v55  ;;  %v3213_v58 = vadd.f32 %v3212_v22, %v3211_v40 }
 0x1f8   : > { %v3292_v63 = vpop.f32.mrf.mxu0  ;;  %v3214_v26 = vpop.f32.mrf.mxu1  ;;  %v2400_v24 = vmul.f32 %v2143_v45, %v2143_v45 }
 0x1f9   : > { %v2359_v47 = vadd.f32 %v2358_v49, %v2130_v36  ;;  %v2146_v0 = vadd.f32 %v3292_v63, %v1985_v21  ;;  %v2427_v2 = vadd.f32 %v2426_v42, %v2396_v38  ;;  %v2398_v27 = vmul.f32 %v2135_v7, %v2135_v7 }
 0x1fa   : > { %v2137_v53 = vpop.f32.mrf.mxu0  ;;  %v3215_v11 = vpop.f32.mrf.mxu1  ;;  %v1998_v36 = vadd.f32 %v3213_v58, %v4646_v13 }
 0x1fb   : > { %v2360_v34 = vadd.f32 %v2359_v47, %v2135_v7  ;;  %v2744_v60 = vpack.c.bf16 %v2146_v0, %v2143_v45  ;;  %v2138_v15 = vadd.f32 %v2137_v53, %v1977_v35  ;;  %v2428_v28 = vadd.f32 %v2427_v2, %v2397_v31  ;;  %v4650_v53 = vld [vmem:[#allocation9_spill] sm:$0xff] }
 0x1fc   : > { %v3295_v50 = vpop.f32.mrf.mxu0  ;;  %v3216_v20 = vadd.f32 %v3215_v11, %v3214_v26  ;;  %v3217_v37 = vpop.f32.mrf.mxu1  ;;  %v2401_v4 = vmul.f32 %v2146_v0, %v2146_v0 }
 0x1fd   : > { %2776 = vst [vmem:[%s4520_s23 + $0x58] sm:$0xff] %v2744_v60   ;;  %v2739_v6 = vpack.c.bf16 %v2138_v15, %v2135_v7  ;;  %v2361_v41 = vadd.f32 %v2360_v34, %v2138_v15  ;;  %v2399_v52 = vmul.f32 %v2138_v15, %v2138_v15  ;;  %v2429_v8 = vadd.f32 %v2428_v28, %v2398_v27  ;;  %v4649_v7 = vld [vmem:[#allocation8_spill] sm:$0xff]  ;;  %v4651_v27 = vld [vmem:[#allocation10_spill] sm:$0xff] }
 0x1fe   : > { %v2150_v33 = vpop.f32.mrf.mxu0  ;;  %v2001_v14 = vadd.f32 %v3216_v20, %v4647_v61  ;;  %v3218_v62 = vpop.f32.mrf.mxu1  ;;  %v2159_v54 = vadd.f32 %v3295_v50, %v1998_v36 }
 0x1ff   : > { %2775 = vst [vmem:[%s4520_s23 + $0x50] sm:$0xff] %v2739_v6   ;;  %v2362_v23 = vadd.f32 %v2361_v41, %v2143_v45  ;;  %v2430_v29 = vadd.f32 %v2429_v8, %v2399_v52  ;;  %v2151_v51 = vadd.f32 %v2150_v33, %v1990_v3  ;;  %v3219_v19 = vadd.f32 %v3218_v62, %v3217_v37 }
 0x200   : > { %v3296_v39 = vpop.f32.mrf.mxu0  ;;  %v3220_v5 = vpop.f32.mrf.mxu1 }
 0x201   : > { %v2363_v16 = vadd.f32 %v2362_v23, %v2146_v0  ;;  %v2162_v10 = vadd.f32 %v3296_v39, %v2001_v14  ;;  %v2431_v59 = vadd.f32 %v2430_v29, %v2400_v24  ;;  %v2402_v40 = vmul.f32 %v2151_v51, %v2151_v51 }
 0x202   : > { %v2153_v43 = vpop.f32.mrf.mxu0  ;;  %v3221_v9 = vpop.f32.mrf.mxu1  ;;  %v2006_v63 = vadd.f32 %v3219_v19, %v4649_v7  ;;  %v2404_v0 = vmul.f32 %v2159_v54, %v2159_v54 }
 0x203   : > { %v2364_v17 = vadd.f32 %v2363_v16, %v2151_v51  ;;  %v2754_v30 = vpack.c.bf16 %v2162_v10, %v2159_v54  ;;  %v2154_v18 = vadd.f32 %v2153_v43, %v1993_v32  ;;  %v2432_v55 = vadd.f32 %v2431_v59, %v2401_v4 }
 0x204   : > { %v3299_v49 = vpop.f32.mrf.mxu0  ;;  %v3222_v44 = vadd.f32 %v3221_v9, %v3220_v5  ;;  %v3223_v22 = vpop.f32.mrf.mxu1  ;;  %v2405_v34 = vmul.f32 %v2162_v10, %v2162_v10 }
 0x205   : > { %2778 = vst [vmem:[%s4520_s23 + $0x68] sm:$0xff] %v2754_v30   ;;  %v2749_v25 = vpack.c.bf16 %v2154_v18, %v2151_v51  ;;  %v2365_v21 = vadd.f32 %v2364_v17, %v2154_v18  ;;  %v2403_v38 = vmul.f32 %v2154_v18, %v2154_v18  ;;  %v2433_v42 = vadd.f32 %v2432_v55, %v2402_v40 }
 0x206   : > { %v2166_v45 = vpop.f32.mrf.mxu0  ;;  %v3224_v35 = vpop.f32.mrf.mxu1  ;;  %v2009_v58 = vadd.f32 %v3222_v44, %v4650_v53 }
 0x207   : > { %2777 = vst [vmem:[%s4520_s23 + $0x60] sm:$0xff] %v2749_v25   ;;  %v2366_v47 = vadd.f32 %v2365_v21, %v2159_v54  ;;  %v2434_v1 = vadd.f32 %v2433_v42, %v2403_v38  ;;  %v2167_v48 = vadd.f32 %v2166_v45, %v2006_v63  ;;  %v3225_v2 = vadd.f32 %v3224_v35, %v3223_v22 }
 0x208   : > { %v3300_v31 = vpop.f32.mrf.mxu0  ;;  %v3226_v15 = vpop.f32.mrf.mxu1 }
 0x209   : > { %v2367_v26 = vadd.f32 %v2366_v47, %v2162_v10  ;;  %v2435_v60 = vadd.f32 %v2434_v1, %v2404_v0  ;;  %v2014_v28 = vadd.f32 %v3225_v2, %v4651_v27  ;;  %v2406_v20 = vmul.f32 %v2167_v48, %v2167_v48 }
 0x20a   : > { %v2169_v46 = vpop.f32.mrf.mxu0  ;;  %v3227_v41 = vpop.f32.mrf.mxu1 }
 0x20b   : > { %v2368_v11 = vadd.f32 %v2367_v26, %v2167_v48  ;;  %v2170_v50 = vadd.f32 %v2169_v46, %v2009_v58  ;;  %v2436_v6 = vadd.f32 %v2435_v60, %v2405_v34  ;;  %v2175_v52 = vadd.f32 %v3299_v49, %v2014_v28 }
 0x20c   : > { %v3228_v8 = vadd.f32 %v3227_v41, %v3226_v15 }
 0x20d   : > { %v2759_v37 = vpack.c.bf16 %v2170_v50, %v2167_v48  ;;  %v2369_v12 = vadd.f32 %v2368_v11, %v2170_v50  ;;  %v2437_v3 = vadd.f32 %v2436_v6, %v2406_v20  ;;  %v2407_v33 = vmul.f32 %v2170_v50, %v2170_v50 }
 0x20e   : > { %v2017_v23 = vadd.f32 %v3228_v8, %v4502_v57  ;;  %v2408_v36 = vmul.f32 %v2175_v52, %v2175_v52 }
 0x20f   : > { %2779 = vst [vmem:[%s4520_s23 + $0x70] sm:$0xff] %v2759_v37   ;;  %v2370_v13 = vadd.f32 %v2369_v12, %v2175_v52  ;;  %v2438_v61 = vadd.f32 %v2437_v3, %v2407_v33 }
 0x210   : > { %v2178_v14 = vadd.f32 %v3300_v31, %v2017_v23 }
 0x211   : > { %v2439_v24 = vadd.f32 %v2438_v61, %v2408_v36 }
 0x212   : > { %v2764_v29 = vpack.c.bf16 %v2178_v14, %v2175_v52  ;;  %v2409_v62 = vmul.f32 %v2178_v14, %v2178_v14  ;;  %v2371_v51 = vadd.f32 %v2370_v13, %v2178_v14 }
 0x214   : > { %2780 = vst [vmem:[%s4520_s23 + $0x78] sm:$0xff] %v2764_v29   ;;  %v2372_v39 = vrot.slane %v2371_v51, 4  ;;  %v2440_v54 = vadd.f32 %v2439_v24, %v2409_v62 }
 0x216   : > { %v2373_v16 = vadd.f32 %v2372_v39, %v2371_v51  ;;  %v2441_v10 = vrot.slane %v2440_v54, 4 }
 0x218   : > { %v2374_v56 = vrot.slane %v2373_v16, 2  ;;  %v2442_v32 = vadd.f32 %v2441_v10, %v2440_v54 }
 0x21a   : > { %v2375_v4 = vadd.f32 %v2374_v56, %v2373_v16  ;;  %v2443_v59 = vrot.slane %v2442_v32, 2 }
 0x21c   : > { %v2376_v57 = vrot.slane %v2375_v4, 1  ;;  %v2444_v19 = vadd.f32 %v2443_v59, %v2442_v32 }
 0x21e   : > { %v2445_v5 = vrot.slane %v2444_v19, 1  ;;  %v2377_v43 = vadd.f32 %v2376_v57, %v2375_v4 }
 0x220   : > { %v2446_v17 = vadd.f32 %v2445_v5, %v2444_v19 }
 0x222   : > { %v2448_v30 = vsel %vm438_vm0, %v2377_v43, %v2446_v17 }
 0x223   : > { %2449 = vst [vmem:[%s235_s27] sm:$0x3] %v2448_v30 }
 0x224 PF: > { %s16_s18 = sadd.s32 1, %s3404_s18  }
 0x225   : > { %p13_p4 = scmp.ge.s32.totalorder %s16_s18, 4  }
 0x227   :  { %15 = sbr.rel (!%p13_p4) target bundleno = 1 (0x1), region = 78 }

// kernel: basic_dropblock_forward.5
= control target key start
LH: loop header
LB: loop body
LE: loop exit
PB: predicated region body
PF: predicated region fallthrough
CT: control target
= control target key end

     0   :  { %s3694_s18 = smov 0   ;;  %s4956_s0 = inlined_call_operand.vmem [shape: bf16[2,16,16,128], index: 0, kind: input, shape index: {}]   ;;  %s4957_s1 = inlined_call_operand.vmem [shape: f32[1,128], index: 1, kind: input, shape index: {}]   ;;  %s4958_s2 = inlined_call_operand.vmem [shape: f32[1,128], index: 2, kind: input, shape index: {}]   ;;  %s4959_s3 = inlined_call_operand.vmem [shape: bf16[1152,128], index: 3, kind: input, shape index: {}]   ;;  %s4960_s4 = inlined_call_operand.vmem [shape: bf16[2,16,16,128], index: 4, kind: output, shape index: {0}]   ;;  %s4961_s5 = inlined_call_operand.vmem [shape: f32[2,2,128], index: 5, kind: output, shape index: {1}]  }
   0x1 LB: > { %s2710_s19 = sadd.s32 4294967295, %s3661_s18   ;;  %p2714_p0 = scmp.ge.s32.totalorder %s3661_s18, 1  ;;  %s3661_s18 = sphi %s3694_s18, %s16_s18  }
   0x2   : > { %p190_p1 = scmp.lt.s32.totalorder %s3661_s18, 3 }
   0x4   : > { %p191_p2 = pnand %p2714_p0, %p190_p1 }
   0x6   : > { %194 = sbr.rel (%p191_p2) target bundleno = 559 (0x22f), region = 36 }
   0xb   : > { %v3581_v0 = vld [vmem:[%s4959_s3 + $0x78] sm:$0xff]   ;;  %v3583_v2 = vld [vmem:[%s4959_s3 + $0x70] sm:$0xff]   ;;  %p222_p3 = scmp.lt.s32.totalorder %s2710_s19, 1  ;;  %v3585_v4 = vld [vmem:[%s4959_s3 + $0x68] sm:$0xff]   ;;  %v3663_v9 = vmov 0   ;;  %vm612_vm0 = vcmask 1040384  }
   0xc   : > { %v3582_v1 = vld [vmem:[%s4959_s3 + $0x38] sm:$0xff]   ;;  %3036 = vmatprep.subr.bf16.mxu0 %v3581_v0  ;;  %3556 = vmatprep.subr.bf16.mxu1 %v3581_v0  ;;  %v3584_v3 = vld [vmem:[%s4959_s3 + $0x30] sm:$0xff]   ;;  %v3586_v5 = vld [vmem:[%s4959_s3 + $0x28] sm:$0xff]   ;;  %v462_v10 = vrot.slane %v3663_v9, 7  ;;  %vm613_vm1 = vsmask.f32 256 }
   0xd   : > { %3037 = vmatpush3.bf16.msra.mxu0 %v3582_v1  ;;  %3564 = vmatpush3.bf16.msra.mxu1 %v3582_v1  ;;  %s4988_s19 = smov (!%p222_p3, %s2710_s19), 1  ;;  %v3587_v6 = vld [vmem:[%s4959_s3 + $0x60] sm:$0xff]   ;;  %v3589_v8 = vld [vmem:[%s4959_s3 + $0x58] sm:$0xff]   ;;  %v3591_v12 = vld [vmem:[%s4959_s3 + $0x50] sm:$0xff]   ;;  %vm649_vm3 = vsmask.f32 7424 }
   0xe   : > { %3038 = vmatprep.subr.bf16.mxu0 %v3583_v2  ;;  %3557 = vmatprep.subr.bf16.mxu1 %v3583_v2  ;;  %s2828_s9 = sshll.u32 %s4988_s19, 7  ;;  %v3588_v7 = vld [vmem:[%s4959_s3 + $0x20] sm:$0xff]   ;;  %v3590_v11 = vld [vmem:[%s4959_s3 + $0x18] sm:$0xff]   ;;  %vm3747_vm2 = vmand %vm612_vm0, %vm613_vm1  ;;  %vm890_vm4 = vcmask 1046528  }
   0xf   : > { %s3737_s16 = scalar_lea.vmem %s4956_s0, %s2828_s9  ;;  %v3754_v17 = vld [vmem:[%s4957_s1] ss:$0 sm:$0xff]  ;;  %v3763_v19 = vsel %vm3747_vm2, 0, %v462_v10  ;;  %v3767_v20 = vsel %vm3747_vm2, %v462_v10, 0  ;;  %v3592_v21 = vld [vmem:[%s4959_s3 + $0x10] sm:$0xff]   ;;  %v3593_v25 = vld [vmem:[%s4959_s3 + $0x48] sm:$0xff]   ;;  %s4855_s28 = scalar_lea.vmem %s4960_s4, %s2828_s9 }
  0x10   : > { %v3016_v13 = vld [vmem:[%s3737_s16 + $0x58] sm:$0xff]   ;;  %v3759_v18 = vld [vmem:[%s4958_s2] ss:$0 sm:$0xff]  ;;  %4965 = vst [vmem:[#allocation2_spill] sm:$0xff] %v3763_v19  ;;  %v651_v22 = vshrl.u32 %v3763_v19, 16  ;;  %v653_v23 = vshll.u32 %v3763_v19, 16 }
  0x11   : > { %3039 = vmatpush3.bf16.msra.mxu0 %v3584_v3  ;;  %3565 = vmatpush3.bf16.msra.mxu1 %v3584_v3  ;;  %v2908_v15 = vunpack.c.l.bf16 %v3016_v13  ;;  %v2909_v16 = vunpack.c.h.bf16 %v3016_v13  ;;  %v658_v24 = vshll.u32 %v3767_v20, 16  ;;  %v3594_v28 = vld [vmem:[%s4959_s3 + $0x8] sm:$0xff]   ;;  %v3595_v33 = vld [vmem:[%s4959_s3 + $0x40] sm:$0xff]   ;;  %v3597_v45 = vld [vmem:[%s4959_s3 + $0xf8] sm:$0xff]   ;;  %s2719_s9 = sshll.u32 %s4988_s19, 1 }
  0x12   : > { %3040 = vmatprep.subr.bf16.mxu0 %v3585_v4  ;;  %3558 = vmatprep.subr.bf16.mxu1 %v3585_v4  ;;  %v655_v29 = vrot.slane %v653_v23, 1  ;;  %v2863_v38 = vld [vmem:[%s3737_s16] sm:$0xff]   ;;  %v3598_v49 = vld [vmem:[%s4959_s3 + $0x178] sm:$0xff]   ;;  %v3606_v0 = vld [vmem:[%s4959_s3 + $0x170] sm:$0xff]   ;;  %s235_s6 = scalar_lea.vmem %s4961_s5, %s2719_s9 }
  0x13   : > { %v330_v26 = vmul.f32 %v2908_v15, %v3754_v17  ;;  %v331_v27 = vmul.f32 %v2909_v16, %v3754_v17  ;;  %v660_v30 = vrot.slane %v658_v24, 1  ;;  %v3017_v39 = vld [vmem:[%s3737_s16 + $0x60] sm:$0xff]   ;;  %v2864_v43 = vunpack.c.l.bf16 %v2863_v38  ;;  %v3600_v58 = vld [vmem:[%s4959_s3 + $0x138] sm:$0xff]   ;;  %v3006_v3 = vld [vmem:[%s3737_s16 + $0x8] sm:$0xff]  }
  0x14   : > { %v656_v34 = vor.u32 %v655_v29, %v651_v22  ;;  %v3596_v40 = vld [vmem:[%s4959_s3] sm:$0xff]   ;;  %v2865_v44 = vunpack.c.h.bf16 %v2863_v38  ;;  %v2912_v46 = vunpack.c.l.bf16 %v3017_v39  ;;  %v2913_v47 = vunpack.c.h.bf16 %v3017_v39  ;;  %v3018_v4 = vld [vmem:[%s3737_s16 + $0x68] sm:$0xff]  }
  0x15   : > { %3041 = vmatpush3.bf16.msra.mxu0 %v3586_v5  ;;  %3566 = vmatpush3.bf16.msra.mxu1 %v3586_v5  ;;  %v369_v31 = vadd.f32 %v3759_v18, %v330_v26  ;;  %v370_v32 = vadd.f32 %v3759_v18, %v331_v27  ;;  %v308_v50 = vmul.f32 %v2864_v43, %v3754_v17  ;;  %v2868_v13 = vunpack.c.l.bf16 %v3006_v3 }
  0x16   : > { %3042 = vmatprep.subr.bf16.mxu0 %v3587_v6  ;;  %3559 = vmatprep.subr.bf16.mxu1 %v3587_v6  ;;  %v3789_v37 = vsel %vm649_vm3, %v656_v34, %v660_v30  ;;  %v309_v51 = vmul.f32 %v2865_v44, %v3754_v17  ;;  %v332_v52 = vmul.f32 %v2912_v46, %v3754_v17  ;;  %v2916_v22 = vunpack.c.l.bf16 %v3018_v4  ;;  %v3601_v44 = vld [vmem:[%s4959_s3 + $0xf0] sm:$0xff]  }
  0x17   : > { %v401_v35 = vmul.f32 0.1, %v369_v31  ;;  %v402_v36 = vmul.f32 0.1, %v370_v32  ;;  %1582 = vmatprep.mubr.bf16.mxu0 %v3789_v37  ;;  %v333_v53 = vmul.f32 %v2913_v47, %v3754_v17  ;;  %v347_v56 = vadd.f32 %v3759_v18, %v308_v50 }
  0x18   : > { %v348_v57 = vadd.f32 %v3759_v18, %v309_v51  ;;  %v371_v59 = vadd.f32 %v3759_v18, %v332_v52  ;;  %v310_v29 = vmul.f32 %v2868_v13, %v3754_v17  ;;  %v3616_v52 = vld [vmem:[%s4959_s3 + $0x128] sm:$0xff]  }
  0x19   : > { %3043 = vmatpush3.bf16.msra.mxu0 %v3588_v7  ;;  %3567 = vmatpush3.bf16.msra.mxu1 %v3588_v7  ;;  %v433_v41 = vmax.f32 %v369_v31, %v401_v35  ;;  %v434_v42 = vmax.f32 %v370_v32, %v402_v36  ;;  %v372_v60 = vadd.f32 %v3759_v18, %v333_v53  ;;  %v379_v62 = vmul.f32 0.1, %v347_v56  ;;  %v3007_v31 = vld [vmem:[%s3737_s16 + $0x10] sm:$0xff]   ;;  %v3599_v36 = vld [vmem:[%s4959_s3 + $0xb8] sm:$0xff]  }
  0x1a   : > { %3044 = vmatprep.subr.bf16.mxu0 %v3589_v8  ;;  %3560 = vmatprep.subr.bf16.mxu1 %v3589_v8  ;;  %v380_v63 = vmul.f32 0.1, %v348_v57  ;;  %v403_v1 = vmul.f32 0.1, %v371_v59  ;;  %v2917_v35 = vunpack.c.h.bf16 %v3018_v4  ;;  %v349_v39 = vadd.f32 %v3759_v18, %v310_v29  ;;  %v3605_v29 = vld [vmem:[%s4959_s3 + $0xe0] sm:$0xff]  }
  0x1b   : > { %v454_v48 = vpack.c.bf16 %v434_v42, %v433_v41  ;;  %v404_v2 = vmul.f32 0.1, %v372_v60  ;;  %v411_v7 = vmax.f32 %v347_v56, %v379_v62  ;;  %v334_v41 = vmul.f32 %v2916_v22, %v3754_v17  ;;  %v3614_v42 = vld [vmem:[%s4959_s3 + $0x168] sm:$0xff]  }
  0x1c   : > { %v412_v8 = vmax.f32 %v348_v57, %v380_v63  ;;  %v435_v10 = vmax.f32 %v371_v59, %v403_v1  ;;  %v335_v46 = vmul.f32 %v2917_v35, %v3754_v17  ;;  %v2872_v47 = vunpack.c.l.bf16 %v3007_v31  ;;  %v3602_v1 = vld [vmem:[%s4959_s3 + $0xb0] sm:$0xff]  }
  0x1d   : > { %3045 = vmatpush3.bf16.msra.mxu0 %v3590_v11  ;;  %3568 = vmatpush3.bf16.msra.mxu1 %v3590_v11  ;;  %v544_v54 = vshrl.u32 %v454_v48, 16  ;;  %v547_v55 = vshll.u32 %v454_v48, 16  ;;  %v436_v11 = vmax.f32 %v372_v60, %v404_v2  ;;  %v381_v50 = vmul.f32 0.1, %v349_v39 }
  0x1e   : > { %3046 = vmatprep.subr.bf16.mxu0 %v3591_v12  ;;  %3561 = vmatprep.subr.bf16.mxu1 %v3591_v12  ;;  %v3608_v12 = vld [vmem:[%s4959_s3 + $0x130] sm:$0xff]   ;;  %v443_v16 = vpack.c.bf16 %v412_v8, %v411_v7  ;;  %v3603_v8 = vld [vmem:[%s4959_s3 + $0xe8] sm:$0xff]   ;;  %v312_v22 = vmul.f32 %v2872_v47, %v3754_v17 }
  0x1f   : > { %v546_v61 = vrot.slane %v544_v54, 7  ;;  %v455_v26 = vpack.c.bf16 %v436_v11, %v435_v10  ;;  %v413_v59 = vmax.f32 %v349_v39, %v381_v50  ;;  %v374_v10 = vadd.f32 %v3759_v18, %v335_v46  ;;  %v3621_v39 = vld [vmem:[%s4959_s3 + $0x160] sm:$0xff]  }
  0x20   : > { %v467_v27 = vshrl.u32 %v443_v16, 16  ;;  %v2873_v11 = vunpack.c.h.bf16 %v3007_v31  ;;  %v351_v31 = vadd.f32 %v3759_v18, %v312_v22 }
  0x21   : > { %3047 = vmatpush3.bf16.msra.mxu0 %v3592_v21  ;;  %3569 = vmatpush3.bf16.msra.mxu1 %v3592_v21  ;;  %v549_v5 = vor.u32 %v547_v55, %v546_v61  ;;  %v3821_v6 = vsel %vm3747_vm2, %v546_v61, 0  ;;  %v2869_v21 = vunpack.c.h.bf16 %v3006_v3  ;;  %v554_v34 = vshll.u32 %v455_v26, 16 }
  0x22   : > { %3048 = vmatprep.subr.bf16.mxu0 %v3593_v25  ;;  %3562 = vmatprep.subr.bf16.mxu1 %v3593_v25  ;;  %v802_v9 = vshll.u32 %v3821_v6, 16  ;;  %v469_v38 = vrot.slane %v467_v27, 7  ;;  %v313_v27 = vmul.f32 %v2873_v11, %v3754_v17 }
  0x23   : > { %v3830_v15 = vsel %vm3747_vm2, 0, %v549_v5  ;;  %v311_v30 = vmul.f32 %v2869_v21, %v3754_v17 }
  0x24   : > { %v795_v23 = vshrl.u32 %v3830_v15, 16  ;;  %v797_v24 = vshll.u32 %v3830_v15, 16  ;;  %v804_v25 = vrot.slane %v802_v9, 1  ;;  %v373_v9 = vadd.f32 %v3759_v18, %v334_v41 }
  0x25   : > { %3049 = vmatpush3.bf16.msra.mxu0 %v3594_v28  ;;  %3570 = vmatpush3.bf16.msra.mxu1 %v3594_v28  ;;  %v470_v28 = vshll.u32 %v443_v16, 16 }
  0x26   : > { %3050 = vmatprep.subr.bf16.mxu0 %v3595_v33  ;;  %3563 = vmatprep.subr.bf16.mxu1 %v3595_v33  ;;  %v799_v32 = vrot.slane %v797_v24, 1  ;;  %v551_v33 = vshrl.u32 %v455_v26, 16  ;;  %v3604_v24 = vld [vmem:[%s4959_s3 + $0xa8] sm:$0xff]   ;;  %v406_v26 = vmul.f32 0.1, %v374_v10 }
  0x27   : > { %v472_v48 = vor.u32 %v470_v28, %v469_v38 }
  0x28   : > { %v800_v43 = vor.u32 %v799_v32, %v795_v23 }
  0x29   : > { %3051 = vmatpush3.bf16.msra.mxu0 %v3596_v40  ;;  %3571 = vmatpush3.bf16.msra.mxu1 %v3596_v40  ;;  %v350_v40 = vadd.f32 %v3759_v18, %v311_v30  ;;  %v3868_v57 = vsel %vm3747_vm2, 0, %v472_v48 }
  0x2a   : > { %3148 = vmatprep.subr.bf16.mxu1 %v3597_v45  ;;  %3260 = vmatprep.subr.bf16.mxu0 %v3598_v49  ;;  %v553_v45 = vrot.slane %v551_v33, 7  ;;  %v3852_v49 = vsel %vm3747_vm2, %v469_v38, 0  ;;  %v3858_v53 = vsel %vm649_vm3, %v800_v43, %v804_v25  ;;  %v663_v61 = vshrl.u32 %v3868_v57, 16  ;;  %v3008_v33 = vld [vmem:[%s3737_s16 + $0x18] sm:$0xff]  }
  0x2b   : > { %v382_v51 = vmul.f32 0.1, %v350_v40  ;;  %v670_v54 = vshll.u32 %v3852_v49, 16  ;;  %1678 = vmatprep.mubr.bf16.mxu1 %v3858_v53  ;;  %v665_v62 = vshll.u32 %v3868_v57, 16  ;;  %v405_v25 = vmul.f32 0.1, %v373_v9 }
  0x2c   : > { %1583 = vmatmul.mubr.bf16.vlgmr.msra.gmra.mxu0 %v3763_v19  ;;  %v556_v55 = vor.u32 %v554_v34, %v553_v45  ;;  %v3863_v56 = vsel %vm3747_vm2, %v553_v45, 0  ;;  %1679 = vmatmul.mubr.bf16.vlgmr.msra.gmra.mxu1 %v3830_v15  ;;  %v352_v38 = vadd.f32 %v3759_v18, %v313_v27  ;;  %v383_v43 = vmul.f32 0.1, %v351_v31  ;;  %v3607_v45 = vld [vmem:[%s4959_s3 + $0xa0] sm:$0xff]  }
  0x2d   : > { %3261 = vmatpush3.bf16.msra.mxu0 %v3600_v58  ;;  %v814_v58 = vshll.u32 %v3863_v56, 16  ;;  %v414_v60 = vmax.f32 %v350_v40, %v382_v51  ;;  %v672_v63 = vrot.slane %v670_v54, 1  ;;  %3149 = vmatpush3.bf16.msra.mxu1 %v3599_v36  ;;  %v667_v7 = vrot.slane %v665_v62, 1 }
  0x2e   : > { %3262 = vmatprep.subr.bf16.mxu0 %v3606_v0  ;;  %v3876_v0 = vsel %vm3747_vm2, 0, %v556_v55  ;;  %3150 = vmatprep.subr.bf16.mxu1 %v3601_v44  ;;  %v437_v35 = vmax.f32 %v373_v9, %v405_v25  ;;  %v438_v36 = vmax.f32 %v374_v10, %v406_v26  ;;  %v3622_v44 = vld [vmem:[%s4959_s3 + $0x120] sm:$0xff]   ;;  %v384_v48 = vmul.f32 0.1, %v352_v38  ;;  %v3610_v25 = vld [vmem:[%s4959_s3 + $0x98] sm:$0xff]   ;;  %v3611_v26 = vld [vmem:[%s4959_s3 + $0xd0] sm:$0xff]  }
  0x2f   : > { %v807_v2 = vshrl.u32 %v3876_v0, 16  ;;  %v809_v3 = vshll.u32 %v3876_v0, 16  ;;  %v816_v4 = vrot.slane %v814_v58, 1  ;;  %v444_v5 = vpack.c.bf16 %v414_v60, %v413_v59 }
  0x30   : > { %v668_v23 = vor.u32 %v667_v7, %v663_v61  ;;  %v456_v47 = vpack.c.bf16 %v438_v36, %v437_v35  ;;  %v415_v54 = vmax.f32 %v351_v31, %v383_v43  ;;  %v2876_v58 = vunpack.c.l.bf16 %v3008_v33  ;;  %v3625_v7 = vld [vmem:[%s4959_s3 + $0x118] sm:$0xff]  }
  0x31   : > { %3263 = vmatpush3.bf16.msra.mxu0 %v3608_v12  ;;  %v3019_v12 = vld [vmem:[%s3737_s16 + $0x70] sm:$0xff]   ;;  %v811_v13 = vrot.slane %v809_v3, 1  ;;  %v474_v16 = vshrl.u32 %v444_v5, 16  ;;  %v477_v21 = vshll.u32 %v444_v5, 16  ;;  %3151 = vmatpush3.bf16.msra.mxu1 %v3602_v1  ;;  %v3623_v1 = vld [vmem:[%s4959_s3 + $0x158] sm:$0xff]   ;;  %v416_v3 = vmax.f32 %v352_v38, %v384_v48  ;;  %v3613_v48 = vld [vmem:[%s4959_s3 + $0xc8] sm:$0xff]  }
  0x32   : > { %3264 = vmatprep.subr.bf16.mxu0 %v3614_v42  ;;  %v2920_v32 = vunpack.c.l.bf16 %v3019_v12  ;;  %v3900_v34 = vsel %vm649_vm3, %v668_v23, %v672_v63  ;;  %3152 = vmatprep.subr.bf16.mxu1 %v3603_v8  ;;  %v2921_v50 = vunpack.c.h.bf16 %v3019_v12  ;;  %v558_v62 = vshrl.u32 %v456_v47, 16  ;;  %v3935_v63 = vld [vmem:[%s3737_s16 + $0x20] sm:$0xff]  }
  0x33   : > { %v812_v28 = vor.u32 %v811_v13, %v807_v2  ;;  %v476_v30 = vrot.slane %v474_v16, 7  ;;  %1590 = vmatprep.mubr.bf16.mxu0 %v3900_v34  ;;  %v561_v2 = vshll.u32 %v456_v47, 16  ;;  %v2877_v10 = vunpack.c.h.bf16 %v3008_v33 }
  0x34   : > { %1591 = vmatmul.mubr.bf16.gmra.mxu0 %v3868_v57  ;;  %v336_v55 = vmul.f32 %v2920_v32, %v3754_v17  ;;  %v560_v9 = vrot.slane %v558_v62, 7  ;;  %v314_v11 = vmul.f32 %v2876_v58, %v3754_v17  ;;  %v445_v12 = vpack.c.bf16 %v416_v3, %v415_v54  ;;  %v3627_v32 = vld [vmem:[%s4959_s3 + $0x150] sm:$0xff]  }
  0x35   : > { %3265 = vmatpush3.bf16.msra.mxu0 %v3616_v52  ;;  %v3908_v40 = vsel %vm649_vm3, %v812_v28, %v816_v4  ;;  %v479_v41 = vor.u32 %v477_v21, %v476_v30  ;;  %v3912_v42 = vsel %vm3747_vm2, %v476_v30, 0  ;;  %v3609_v52 = vld [vmem:[%s4959_s3 + $0xd8] sm:$0xff]   ;;  %3153 = vmatpush3.bf16.msra.mxu1 %v3604_v24  ;;  %v337_v4 = vmul.f32 %v2921_v50, %v3754_v17 }
  0x36   : > { %1686 = vmatprep.mubr.bf16.mxu1 %v3908_v40  ;;  %v682_v46 = vshll.u32 %v3912_v42, 16  ;;  %3266 = vmatprep.subr.bf16.mxu0 %v3621_v39  ;;  %v375_v5 = vadd.f32 %v3759_v18, %v336_v55  ;;  %v2880_v21 = vunpack.c.l.bf16 %v3935_v63  ;;  %v563_v23 = vor.u32 %v561_v2, %v560_v9  ;;  %v3628_v39 = vld [vmem:[%s4959_s3 + $0x110] sm:$0xff]  }
  0x37   : > { %1687 = vmatmul.mubr.bf16.gmra.mxu1 %v3876_v0  ;;  %v3926_v51 = vsel %vm3747_vm2, 0, %v479_v41  ;;  %3154 = vmatprep.subr.bf16.mxu1 %v3605_v29  ;;  %v376_v13 = vadd.f32 %v3759_v18, %v337_v4  ;;  %v3950_v24 = vsel %vm3747_vm2, %v560_v9, 0  ;;  %v315_v27 = vmul.f32 %v2877_v10, %v3754_v17  ;;  %v3615_v4 = vld [vmem:[%s4959_s3 + $0x88] sm:$0xff]  }
  0x38   : > { %v675_v59 = vshrl.u32 %v3926_v51, 16  ;;  %v677_v60 = vshll.u32 %v3926_v51, 16  ;;  %v684_v61 = vrot.slane %v682_v46, 1  ;;  %v407_v16 = vmul.f32 0.1, %v375_v5  ;;  %v3612_v46 = vld [vmem:[%s4959_s3 + $0x90] sm:$0xff]  }
  0x39   : > { %3267 = vmatpush3.bf16.msra.mxu0 %v3622_v44  ;;  %3155 = vmatpush3.bf16.msra.mxu1 %v3607_v45  ;;  %v826_v28 = vshll.u32 %v3950_v24, 16  ;;  %v481_v29 = vshrl.u32 %v445_v12, 16  ;;  %v484_v30 = vshll.u32 %v445_v12, 16  ;;  %v408_v31 = vmul.f32 0.1, %v376_v13  ;;  %v3631_v12 = vld [vmem:[%s4959_s3 + $0x148] sm:$0xff]  }
  0x3a   : > { %v679_v8 = vrot.slane %v677_v60, 1  ;;  %3268 = vmatprep.subr.bf16.mxu0 %v3623_v1  ;;  %3156 = vmatprep.subr.bf16.mxu1 %v3609_v52  ;;  %v3968_v35 = vsel %vm3747_vm2, 0, %v563_v23  ;;  %v439_v36 = vmax.f32 %v375_v5, %v407_v16  ;;  %v353_v38 = vadd.f32 %v3759_v18, %v314_v11  ;;  %v3010_v11 = vld [vmem:[%s3737_s16 + $0x28] sm:$0xff]  }
  0x3b   : > { %v819_v41 = vshrl.u32 %v3968_v35, 16  ;;  %v821_v43 = vshll.u32 %v3968_v35, 16  ;;  %v828_v44 = vrot.slane %v826_v28, 1  ;;  %v483_v45 = vrot.slane %v481_v29, 7 }
  0x3c   : > { %v680_v22 = vor.u32 %v679_v8, %v675_v59  ;;  %v440_v47 = vmax.f32 %v376_v13, %v408_v31  ;;  %v354_v50 = vadd.f32 %v3759_v18, %v315_v27  ;;  %v385_v52 = vmul.f32 0.1, %v353_v38  ;;  %v3632_v13 = vld [vmem:[%s4959_s3 + $0x108] sm:$0xff]  }
  0x3d   : > { %3269 = vmatpush3.bf16.msra.mxu0 %v3625_v7  ;;  %3157 = vmatpush3.bf16.msra.mxu1 %v3610_v25  ;;  %v2881_v54 = vunpack.c.h.bf16 %v3935_v63  ;;  %v823_v55 = vrot.slane %v821_v43, 1  ;;  %v486_v58 = vor.u32 %v484_v30, %v483_v45  ;;  %v3988_v59 = vsel %vm3747_vm2, %v483_v45, 0  ;;  %v3618_v30 = vld [vmem:[%s4959_s3 + $0x80] sm:$0xff]  }
  0x3e   : > { %v3964_v33 = vsel %vm649_vm3, %v680_v22, %v684_v61  ;;  %3270 = vmatprep.subr.bf16.mxu0 %v3627_v32  ;;  %3158 = vmatprep.subr.bf16.mxu1 %v3611_v26  ;;  %v316_v60 = vmul.f32 %v2880_v21, %v3754_v17  ;;  %v694_v61 = vshll.u32 %v3988_v59, 16  ;;  %v457_v62 = vpack.c.bf16 %v440_v47, %v439_v36  ;;  %v3617_v22 = vld [vmem:[%s4959_s3 + $0xc0] sm:$0xff]   ;;  %v3619_v32 = vld [vmem:[%s4959_s3 + $0x1f8] sm:$0xff]  }
  0x3f   : > { %1598 = vmatprep.mubr.bf16.mxu0 %v3964_v33  ;;  %v386_v1 = vmul.f32 0.1, %v354_v50  ;;  %v417_v2 = vmax.f32 %v353_v38, %v385_v52  ;;  %v824_v3 = vor.u32 %v823_v55, %v819_v41  ;;  %v3994_v63 = vsel %vm3747_vm2, 0, %v486_v58  ;;  %v3635_v45 = vld [vmem:[%s4959_s3 + $0x140] sm:$0xff]  }
  0x40   : > { %1599 = vmatmul.mubr.bf16.gmra.mxu0 %v3926_v51  ;;  %v317_v5 = vmul.f32 %v2881_v54, %v3754_v17  ;;  %v355_v7 = vadd.f32 %v3759_v18, %v316_v60  ;;  %v687_v8 = vshrl.u32 %v3994_v63, 16  ;;  %v689_v9 = vshll.u32 %v3994_v63, 16  ;;  %v3636_v52 = vld [vmem:[%s4959_s3 + $0x100] sm:$0xff]  }
  0x41   : > { %3271 = vmatpush3.bf16.msra.mxu0 %v3628_v39  ;;  %3159 = vmatpush3.bf16.msra.mxu1 %v3612_v46  ;;  %v565_v10 = vshrl.u32 %v457_v62, 16  ;;  %v4011_v16 = vsel %vm649_vm3, %v824_v3, %v828_v44  ;;  %v568_v21 = vshll.u32 %v457_v62, 16  ;;  %v418_v23 = vmax.f32 %v354_v50, %v386_v1 }
  0x42   : > { %3160 = vmatprep.subr.bf16.mxu1 %v3613_v48  ;;  %v356_v25 = vadd.f32 %v3759_v18, %v317_v5  ;;  %1694 = vmatprep.mubr.bf16.mxu1 %v4011_v16  ;;  %v691_v26 = vrot.slane %v689_v9, 1  ;;  %v696_v27 = vrot.slane %v694_v61, 1  ;;  %v387_v29 = vmul.f32 0.1, %v355_v7  ;;  %v4056_v9 = vld [vmem:[%s4959_s3 + $0x238] sm:$0xff]  }
  0x43   : > { %v567_v28 = vrot.slane %v565_v10, 7  ;;  %3272 = vmatprep.subr.bf16.mxu0 %v3631_v12  ;;  %1695 = vmatmul.mubr.bf16.gmra.mxu1 %v3968_v35  ;;  %v446_v31 = vpack.c.bf16 %v418_v23, %v417_v2  ;;  %v2884_v38 = vunpack.c.l.bf16 %v3010_v11  ;;  %v2885_v58 = vunpack.c.h.bf16 %v3010_v11 }
  0x44   : > { %v388_v36 = vmul.f32 0.1, %v356_v25  ;;  %v692_v39 = vor.u32 %v691_v26, %v687_v8  ;;  %v419_v44 = vmax.f32 %v355_v7, %v387_v29 }
  0x45   : > { %3273 = vmatpush3.bf16.msra.mxu0 %v3632_v13  ;;  %v570_v41 = vor.u32 %v568_v21, %v567_v28  ;;  %v4027_v43 = vsel %vm3747_vm2, %v567_v28, 0  ;;  %3161 = vmatpush3.bf16.msra.mxu1 %v3615_v4  ;;  %v488_v47 = vshrl.u32 %v446_v31, 16  ;;  %v491_v48 = vshll.u32 %v446_v31, 16  ;;  %v3011_v21 = vld [vmem:[%s3737_s16 + $0x30] sm:$0xff]  }
  0x46   : > { %v838_v46 = vshll.u32 %v4027_v43, 16  ;;  %3162 = vmatprep.subr.bf16.mxu1 %v3617_v22  ;;  %v420_v50 = vmax.f32 %v356_v25, %v388_v36  ;;  %v4037_v54 = vsel %vm649_vm3, %v692_v39, %v696_v27  ;;  %3274 = vmatprep.subr.bf16.mxu0 %v3635_v45  ;;  %v318_v2 = vmul.f32 %v2884_v38, %v3754_v17 }
  0x47   : > { %v4041_v55 = vsel %vm3747_vm2, 0, %v570_v41  ;;  %1606 = vmatprep.mubr.bf16.mxu0 %v4037_v54  ;;  %v490_v62 = vrot.slane %v488_v47, 7  ;;  %v319_v3 = vmul.f32 %v2885_v58, %v3754_v17  ;;  %v892_v22 = vrot.slane %v3767_v20, 1 }
  0x48   : > { %v831_v60 = vshrl.u32 %v4041_v55, 16  ;;  %v833_v61 = vshll.u32 %v4041_v55, 16  ;;  %1607 = vmatmul.mubr.bf16.gmra.mxu0 %v3994_v63  ;;  %v447_v1 = vpack.c.bf16 %v420_v50, %v419_v44  ;;  %v840_v5 = vrot.slane %v838_v46, 1 }
  0x49   : > { %3275 = vmatpush3.bf16.msra.mxu0 %v3636_v52  ;;  %3163 = vmatpush3.bf16.msra.mxu1 %v3618_v30  ;;  %v493_v7 = vor.u32 %v491_v48, %v490_v62  ;;  %v4051_v8 = vsel %vm3747_vm2, %v490_v62, 0  ;;  %v357_v13 = vadd.f32 %v3759_v18, %v318_v2  ;;  %v358_v26 = vadd.f32 %v3759_v18, %v319_v3 }
  0x4a   : > { %v835_v4 = vrot.slane %v833_v61, 1  ;;  %3372 = vmatprep.subr.bf16.mxu1 %v3619_v32  ;;  %v706_v10 = vshll.u32 %v4051_v8, 16  ;;  %v495_v11 = vshrl.u32 %v447_v1, 16  ;;  %v498_v12 = vshll.u32 %v447_v1, 16  ;;  %3508 = vmatprep.subr.bf16.mxu0 %v4056_v9  ;;  %v3012_v61 = vld [vmem:[%s3737_s16 + $0x38] sm:$0xff]  }
  0x4b   : > { %v4064_v25 = vsel %vm3747_vm2, 0, %v493_v7  ;;  %v389_v32 = vmul.f32 0.1, %v357_v13  ;;  %v390_v20 = vmul.f32 0.1, %v358_v26  ;;  %v2888_v36 = vunpack.c.l.bf16 %v3011_v21 }
  0x4c   : > { %v836_v23 = vor.u32 %v835_v4, %v831_v60  ;;  %v699_v27 = vshrl.u32 %v4064_v25, 16  ;;  %v701_v28 = vshll.u32 %v4064_v25, 16  ;;  %v708_v29 = vrot.slane %v706_v10, 1  ;;  %v3620_v4 = vld [vmem:[%s4959_s3 + $0x1b8] sm:$0xff]  }
  0x4d   : > { %v497_v30 = vrot.slane %v495_v11, 7  ;;  %v2889_v44 = vunpack.c.h.bf16 %v3011_v21  ;;  %v421_v46 = vmax.f32 %v357_v13, %v389_v32  ;;  %v422_v47 = vmax.f32 %v358_v26, %v390_v20  ;;  %v3624_v21 = vld [vmem:[%s4959_s3 + $0x1f0] sm:$0xff]  }
  0x4e   : > { %v4071_v31 = vsel %vm649_vm3, %v836_v23, %v840_v5  ;;  %v703_v38 = vrot.slane %v701_v28, 1  ;;  %v320_v48 = vmul.f32 %v2888_v36, %v3754_v17  ;;  %v891_v52 = vrot.slane %v3763_v19, 1 }
  0x4f   : > { %1702 = vmatprep.mubr.bf16.mxu1 %v4071_v31  ;;  %v500_v39 = vor.u32 %v498_v12, %v497_v30  ;;  %v4076_v41 = vsel %vm3747_vm2, %v497_v30, 0  ;;  %v321_v60 = vmul.f32 %v2889_v44, %v3754_v17  ;;  %v448_v2 = vpack.c.bf16 %v422_v47, %v421_v46  ;;  %v3013_v46 = vld [vmem:[%s3737_s16 + $0x40] sm:$0xff]  }
  0x50   : > { %1703 = vmatmul.mubr.bf16.gmra.mxu1 %v4041_v55  ;;  %v718_v45 = vshll.u32 %v4076_v41, 16  ;;  %v704_v50 = vor.u32 %v703_v38, %v699_v27  ;;  %v359_v7 = vadd.f32 %v3759_v18, %v320_v48  ;;  %v2892_v23 = vunpack.c.l.bf16 %v3012_v61 }
  0x51   : > { %1743 = vmatprep.mubr.bf16.mxu1 %v3868_v57  ;;  %v4085_v58 = vsel %vm3747_vm2, 0, %v500_v39  ;;  %v360_v10 = vadd.f32 %v3759_v18, %v321_v60  ;;  %v502_v12 = vshrl.u32 %v448_v2, 16  ;;  %v505_v13 = vshll.u32 %v448_v2, 16 }
  0x52   : > { %v711_v62 = vshrl.u32 %v4085_v58, 16  ;;  %v713_v1 = vshll.u32 %v4085_v58, 16  ;;  %v4092_v3 = vsel %vm649_vm3, %v704_v50, %v708_v29  ;;  %v720_v5 = vrot.slane %v718_v45, 1 }
  0x53   : > { %1614 = vmatprep.mubr.bf16.mxu0 %v4092_v3  ;;  %v4105_v26 = vsel %vm890_vm4, %v891_v52, %v892_v22  ;;  %v391_v27 = vmul.f32 0.1, %v359_v7  ;;  %v392_v28 = vmul.f32 0.1, %v360_v10  ;;  %v2893_v29 = vunpack.c.h.bf16 %v3012_v61 }
  0x54   : > { %v715_v11 = vrot.slane %v713_v1, 1  ;;  %1615 = vmatmul.mubr.bf16.gmra.mxu0 %v4064_v25  ;;  %v894_v32 = vrot.slane %v3868_v57, 1  ;;  %v504_v20 = vrot.slane %v502_v12, 7  ;;  %v322_v36 = vmul.f32 %v2892_v23, %v3754_v17 }
  0x55   : > { %v895_v38 = vrot.slane %v3852_v49, 1  ;;  %v423_v39 = vmax.f32 %v359_v7, %v391_v27  ;;  %v424_v44 = vmax.f32 %v360_v10, %v392_v28  ;;  %v323_v45 = vmul.f32 %v2893_v29, %v3754_v17  ;;  %v3626_v17 = vld [vmem:[%s4959_s3 + $0x1b0] sm:$0xff]   ;;  %v3014_v10 = vld [vmem:[%s3737_s16 + $0x48] sm:$0xff]  }
  0x56   : > { %v716_v30 = vor.u32 %v715_v11, %v711_v62  ;;  %v507_v47 = vor.u32 %v505_v13, %v504_v20  ;;  %v4118_v48 = vsel %vm3747_vm2, %v504_v20, 0  ;;  %v361_v57 = vadd.f32 %v3759_v18, %v322_v36  ;;  %v3629_v62 = vld [vmem:[%s4959_s3 + $0x1e8] sm:$0xff]  }
  0x57   : > { %v730_v49 = vshll.u32 %v4118_v48, 16  ;;  %v449_v50 = vpack.c.bf16 %v424_v44, %v423_v39  ;;  %v362_v52 = vadd.f32 %v3759_v18, %v323_v45  ;;  %v2896_v1 = vunpack.c.l.bf16 %v3013_v46  ;;  %v3633_v45 = vld [vmem:[%s4959_s3 + $0x1e0] sm:$0xff]  }
  0x58   : > { %1744 = vmatmul.mubr.bf16.vlgmr.msra.gmra.mxu1 %v4105_v26  ;;  %v4114_v22 = vsel %vm649_vm3, %v716_v30, %v720_v5  ;;  %v4130_v60 = vsel %vm3747_vm2, 0, %v507_v47  ;;  %v393_v61 = vmul.f32 0.1, %v361_v57  ;;  %v2897_v2 = vunpack.c.h.bf16 %v3013_v46  ;;  %v3630_v30 = vld [vmem:[%s4959_s3 + $0x1a8] sm:$0xff]  }
  0x59   : > { %3373 = vmatpush3.bf16.msra.mxu1 %v3620_v4  ;;  %1622 = vmatprep.mubr.bf16.mxu0 %v4114_v22  ;;  %v4136_v4 = vsel %vm890_vm4, %v894_v32, %v895_v38  ;;  %v723_v5 = vshrl.u32 %v4130_v60, 16  ;;  %v725_v18 = vshll.u32 %v4130_v60, 16  ;;  %v509_v7 = vshrl.u32 %v449_v50, 16  ;;  %v4156_v38 = vld [vmem:[%s4958_s2] ss:$0 sm:$0xff] }
  0x5a   : > { %1751 = vmatprep.mubr.bf16.mxu1 %v3926_v51  ;;  %3374 = vmatprep.subr.bf16.mxu1 %v3624_v21  ;;  %v512_v11 = vshll.u32 %v449_v50, 16  ;;  %v394_v12 = vmul.f32 0.1, %v362_v52  ;;  %v425_v13 = vmax.f32 %v361_v57, %v393_v61  ;;  %v4144_v21 = vld [vmem:[%s4957_s1] ss:$0 sm:$0xff]  ;;  %v732_v28 = vrot.slane %v730_v49, 1 }
  0x5b   : > { %v324_v23 = vmul.f32 %v4144_v21, %v2896_v1  ;;  %v727_v27 = vrot.slane %v725_v18, 1  ;;  %v511_v29 = vrot.slane %v509_v7, 7  ;;  %v325_v32 = vmul.f32 %v4144_v21, %v2897_v2 }
  0x5c   : > { %1623 = vmatmul.mubr.bf16.gmra.mxu0 %v4085_v58  ;;  %v897_v20 = vrot.slane %v3926_v51, 1  ;;  %v426_v36 = vmax.f32 %v362_v52, %v394_v12  ;;  %v2900_v44 = vunpack.c.l.bf16 %v3014_v10  ;;  %v3015_v12 = vld [vmem:[%s3737_s16 + $0x50] sm:$0xff]  }
  0x5d   : > { %3375 = vmatpush3.bf16.msra.mxu1 %v3626_v17  ;;  %v363_v39 = vadd.f32 %v4156_v38, %v324_v23  ;;  %v728_v46 = vor.u32 %v727_v27, %v723_v5  ;;  %v514_v47 = vor.u32 %v512_v11, %v511_v29  ;;  %v4164_v57 = vsel %vm3747_vm2, %v511_v29, 0 }
  0x5e   : > { %3376 = vmatprep.subr.bf16.mxu1 %v3629_v62  ;;  %v364_v49 = vadd.f32 %v4156_v38, %v325_v32  ;;  %v898_v17 = vrot.slane %v3912_v42, 1  ;;  %v742_v50 = vshll.u32 %v4164_v57, 16  ;;  %v450_v52 = vpack.c.bf16 %v426_v36, %v425_v13  ;;  %v3634_v42 = vld [vmem:[%s4959_s3 + $0x1a0] sm:$0xff]   ;;  %v3637_v13 = vld [vmem:[%s4959_s3 + $0x1d8] sm:$0xff]  }
  0x5f   : > { %v395_v61 = vmul.f32 0.1, %v363_v39  ;;  %v4171_v62 = vsel %vm649_vm3, %v728_v46, %v732_v28  ;;  %v4176_v1 = vsel %vm3747_vm2, 0, %v514_v47  ;;  %v2901_v5 = vunpack.c.h.bf16 %v3014_v10 }
  0x60   : > { %1752 = vmatmul.mubr.bf16.gmra.mxu1 %v4136_v4  ;;  %v396_v2 = vmul.f32 0.1, %v364_v49  ;;  %1630 = vmatprep.mubr.bf16.mxu0 %v4171_v62  ;;  %v735_v18 = vshrl.u32 %v4176_v1, 16  ;;  %v737_v7 = vshll.u32 %v4176_v1, 16  ;;  %v516_v11 = vshrl.u32 %v450_v52, 16 }
  0x61   : > { %1759 = vmatprep.mubr.bf16.mxu1 %v3994_v63  ;;  %3377 = vmatpush3.bf16.msra.mxu1 %v3630_v30  ;;  %v519_v23 = vshll.u32 %v450_v52, 16  ;;  %v427_v27 = vmax.f32 %v363_v39, %v395_v61  ;;  %v326_v28 = vmul.f32 %v4144_v21, %v2900_v44  ;;  %v744_v30 = vrot.slane %v742_v50, 1  ;;  %v3639_v50 = vld [vmem:[%s4959_s3 + $0x198] sm:$0xff]  }
  0x62   : > { %3378 = vmatprep.subr.bf16.mxu1 %v3633_v45  ;;  %v428_v10 = vmax.f32 %v364_v49, %v396_v2  ;;  %v739_v29 = vrot.slane %v737_v7, 1  ;;  %v518_v32 = vrot.slane %v516_v11, 7  ;;  %v327_v36 = vmul.f32 %v4144_v21, %v2901_v5  ;;  %v3640_v5 = vld [vmem:[%s4959_s3 + $0x1d0] sm:$0xff]  }
  0x63   : > { %v4192_v46 = vsel %vm890_vm4, %v897_v20, %v898_v17  ;;  %v365_v47 = vadd.f32 %v4156_v38, %v326_v28  ;;  %v2904_v19 = vunpack.c.l.bf16 %v3015_v12 }
  0x64   : > { %1631 = vmatmul.mubr.bf16.gmra.mxu0 %v4130_v60  ;;  %v451_v45 = vpack.c.bf16 %v428_v10, %v427_v27  ;;  %v740_v52 = vor.u32 %v739_v29, %v735_v18  ;;  %v521_v39 = vor.u32 %v519_v23, %v518_v32  ;;  %v4197_v44 = vsel %vm3747_vm2, %v518_v32, 0 }
  0x65   : > { %3379 = vmatpush3.bf16.msra.mxu1 %v3634_v42  ;;  %v366_v49 = vadd.f32 %v4156_v38, %v327_v36  ;;  %v754_v20 = vshll.u32 %v4197_v44, 16  ;;  %v397_v2 = vmul.f32 0.1, %v365_v47  ;;  %v900_v18 = vrot.slane %v3994_v63, 1  ;;  %v3642_v36 = vld [vmem:[%s4959_s3 + $0x190] sm:$0xff]  }
  0x66   : > { %3380 = vmatprep.subr.bf16.mxu1 %v3637_v13  ;;  %v523_v17 = vshrl.u32 %v451_v45, 16  ;;  %v526_v61 = vshll.u32 %v451_v45, 16  ;;  %v4209_v42 = vsel %vm649_vm3, %v740_v52, %v744_v30  ;;  %v4214_v7 = vsel %vm3747_vm2, 0, %v521_v39 }
  0x67   : > { %v398_v11 = vmul.f32 0.1, %v366_v49  ;;  %1638 = vmatprep.mubr.bf16.mxu0 %v4209_v42  ;;  %v901_v13 = vrot.slane %v3988_v59, 1  ;;  %v747_v23 = vshrl.u32 %v4214_v7, 16  ;;  %v749_v27 = vshll.u32 %v4214_v7, 16 }
  0x68   : > { %1760 = vmatmul.mubr.bf16.gmra.mxu1 %v4192_v46  ;;  %v525_v10 = vrot.slane %v523_v17, 7  ;;  %v429_v28 = vmax.f32 %v365_v47, %v397_v2  ;;  %v2905_v30 = vunpack.c.h.bf16 %v3015_v12  ;;  %v328_v32 = vmul.f32 %v4144_v21, %v2904_v19  ;;  %v3643_v47 = vld [vmem:[%s4959_s3 + $0x1c8] sm:$0xff]  }
  0x69   : > { %1767 = vmatprep.mubr.bf16.mxu1 %v4064_v25  ;;  %v430_v29 = vmax.f32 %v366_v49, %v398_v11  ;;  %3381 = vmatpush3.bf16.msra.mxu1 %v3639_v50  ;;  %v751_v45 = vrot.slane %v749_v27, 1  ;;  %v756_v52 = vrot.slane %v754_v20, 1  ;;  %v4237_v20 = vsel %vm890_vm4, %v900_v18, %v901_v13  ;;  %v3645_v27 = vld [vmem:[%s4959_s3 + $0x188] sm:$0xff]  }
  0x6a   : > { %v528_v39 = vor.u32 %v526_v61, %v525_v10  ;;  %v4227_v59 = vsel %vm3747_vm2, %v525_v10, 0  ;;  %3382 = vmatprep.subr.bf16.mxu1 %v3640_v5  ;;  %v329_v49 = vmul.f32 %v4144_v21, %v2905_v30  ;;  %v367_v50 = vadd.f32 %v4156_v38, %v328_v32 }
  0x6b   : > { %v766_v12 = vshll.u32 %v4227_v59, 16  ;;  %v452_v19 = vpack.c.bf16 %v430_v29, %v429_v28  ;;  %v752_v17 = vor.u32 %v751_v45, %v747_v23  ;;  %v3646_v28 = vld [vmem:[%s4959_s3 + $0x1c0] sm:$0xff]   ;;  %v904_v45 = vrot.slane %v4051_v8, 1 }
  0x6c   : > { %1639 = vmatmul.mubr.bf16.gmra.mxu0 %v4176_v1  ;;  %v4241_v61 = vsel %vm3747_vm2, 0, %v528_v39  ;;  %v368_v13 = vadd.f32 %v4156_v38, %v329_v49  ;;  %v399_v23 = vmul.f32 0.1, %v367_v50 }
  0x6d   : > { %v759_v2 = vshrl.u32 %v4241_v61, 16  ;;  %v761_v5 = vshll.u32 %v4241_v61, 16  ;;  %v530_v11 = vshrl.u32 %v452_v19, 16  ;;  %3383 = vmatpush3.bf16.msra.mxu1 %v3642_v36  ;;  %v4249_v10 = vsel %vm649_vm3, %v752_v17, %v756_v52 }
  0x6e   : > { %v533_v18 = vshll.u32 %v452_v19, 16  ;;  %3384 = vmatprep.subr.bf16.mxu1 %v3643_v47  ;;  %1646 = vmatprep.mubr.bf16.mxu0 %v4249_v10  ;;  %v768_v30 = vrot.slane %v766_v12, 1  ;;  %v903_v36 = vrot.slane %v4064_v25, 1  ;;  %v400_v52 = vmul.f32 0.1, %v368_v13  ;;  %v3648_v12 = vld [vmem:[%s4959_s3 + $0x180] sm:$0xff]  }
  0x6f   : > { %v763_v29 = vrot.slane %v761_v5, 1  ;;  %v532_v32 = vrot.slane %v530_v11, 7  ;;  %v431_v39 = vmax.f32 %v367_v50, %v399_v23 }
  0x70   : > { %1768 = vmatmul.mubr.bf16.gmra.mxu1 %v4237_v20  ;;  %v432_v5 = vmax.f32 %v368_v13, %v400_v52  ;;  %v4277_v50 = vsel %vm890_vm4, %v903_v36, %v904_v45 }
  0x71   : > { %1775 = vmatprep.mubr.bf16.mxu1 %v4085_v58  ;;  %v764_v47 = vor.u32 %v763_v29, %v759_v2  ;;  %v535_v19 = vor.u32 %v533_v18, %v532_v32  ;;  %v4262_v49 = vsel %vm3747_vm2, %v532_v32, 0  ;;  %3385 = vmatpush3.bf16.msra.mxu1 %v3645_v27  ;;  %v907_v32 = vrot.slane %v4076_v41, 1 }
  0x72   : > { %v778_v17 = vshll.u32 %v4262_v49, 16  ;;  %3386 = vmatprep.subr.bf16.mxu1 %v3646_v28  ;;  %v453_v18 = vpack.c.bf16 %v432_v5, %v431_v39 }
  0x73   : > { %v4269_v11 = vsel %vm649_vm3, %v764_v47, %v768_v30  ;;  %v4273_v8 = vsel %vm3747_vm2, 0, %v535_v19  ;;  %v906_v30 = vrot.slane %v4085_v58, 1 }
  0x74   : > { %1647 = vmatmul.mubr.bf16.gmra.mxu0 %v4214_v7  ;;  %v771_v2 = vshrl.u32 %v4273_v8, 16  ;;  %v773_v27 = vshll.u32 %v4273_v8, 16  ;;  %v780_v23 = vrot.slane %v778_v17, 1  ;;  %v537_v28 = vshrl.u32 %v453_v18, 16 }
  0x75   : > { %1654 = vmatprep.mubr.bf16.mxu0 %v4269_v11  ;;  %3387 = vmatpush3.bf16.msra.mxu1 %v3648_v12  ;;  %v540_v29 = vshll.u32 %v453_v18, 16  ;;  %v4296_v12 = vsel %vm890_vm4, %v906_v30, %v907_v32  ;;  %v909_v18 = vrot.slane %v4130_v60, 1  ;;  %v912_v30 = vrot.slane %v4176_v1, 1 }
  0x76   : > { %v775_v13 = vrot.slane %v773_v27, 1  ;;  %v539_v45 = vrot.slane %v537_v28, 7  ;;  %v913_v32 = vrot.slane %v4164_v57, 1 }
  0x78   : > { %1776 = vmatmul.mubr.bf16.gmra.mxu1 %v4277_v50  ;;  %v776_v36 = vor.u32 %v775_v13, %v771_v2  ;;  %v542_v39 = vor.u32 %v540_v29, %v539_v45  ;;  %v4291_v47 = vsel %vm3747_vm2, %v539_v45, 0  ;;  %v910_v13 = vrot.slane %v4118_v48, 1 }
  0x79   : > { %1783 = vmatprep.mubr.bf16.mxu1 %v4130_v60  ;;  %v790_v19 = vshll.u32 %v4291_v47, 16  ;;  %v4323_v48 = vsel %vm890_vm4, %v912_v30, %v913_v32  ;;  %v916_v45 = vrot.slane %v4197_v44, 1  ;;  %v918_v44 = vrot.slane %v4241_v61, 1 }
  0x7a   : > { %v4287_v52 = vsel %vm649_vm3, %v776_v36, %v780_v23  ;;  %v4300_v41 = vsel %vm3747_vm2, 0, %v542_v39  ;;  %v4314_v29 = vsel %vm890_vm4, %v909_v18, %v910_v13  ;;  %v915_v36 = vrot.slane %v4214_v7, 1  ;;  %v3641_v39 = vld [vmem:[%s4959_s3 + $0x230] sm:$0xff]  }
  0x7b   : > { %v783_v17 = vshrl.u32 %v4300_v41, 16  ;;  %v785_v5 = vshll.u32 %v4300_v41, 16  ;;  %v792_v27 = vrot.slane %v790_v19, 1  ;;  %v919_v19 = vrot.slane %v4227_v59, 1  ;;  %v3649_v59 = vld [vmem:[%s4959_s3 + $0x218] sm:$0xff]   ;;  %v3650_v13 = vld [vmem:[%s4959_s3 + $0x210] sm:$0xff]  }
  0x7c   : > { %1655 = vmatmul.mubr.bf16.gmra.mxu0 %v4241_v61  ;;  %v4334_v57 = vsel %vm890_vm4, %v915_v36, %v916_v45  ;;  %v924_v36 = vrot.slane %v4300_v41, 1  ;;  %v925_v45 = vrot.slane %v4291_v47, 1  ;;  %v928_v47 = vrot.slane %v3821_v6, 1 }
  0x7d   : > { %1662 = vmatprep.mubr.bf16.mxu0 %v4287_v52  ;;  %v787_v2 = vrot.slane %v785_v5, 1  ;;  %v921_v5 = vrot.slane %v4273_v8, 1 }
  0x7f   : > { %v788_v23 = vor.u32 %v787_v2, %v783_v17  ;;  %v3020_v17 = vld [vmem:[%s3737_s16 + $0x78] sm:$0xff]   ;;  %v922_v2 = vrot.slane %v4262_v49, 1  ;;  %v3651_v49 = vld [vmem:[%s4959_s3 + $0x208] sm:$0xff]  }
  0x80   : > { %1784 = vmatmul.mubr.bf16.gmra.mxu1 %v4296_v12  ;;  %v2925_v18 = vunpack.c.h.bf16 %v3020_v17 }
  0x81   : > { %1791 = vmatprep.mubr.bf16.mxu1 %v4176_v1  ;;  %v4310_v28 = vsel %vm649_vm3, %v788_v23, %v792_v27  ;;  %v2924_v27 = vunpack.c.l.bf16 %v3020_v17  ;;  %v4366_v23 = vsel %vm890_vm4, %v921_v5, %v922_v2 }
  0x82   : > { %v339_v32 = vmul.f32 %v4144_v21, %v2925_v18  ;;  %v931_v18 = vrot.slane %v3863_v56, 1 }
  0x83   : > { %v338_v30 = vmul.f32 %v4144_v21, %v2924_v27  ;;  %v3652_v21 = vld [vmem:[%s4959_s3 + $0x200] sm:$0xff]   ;;  %v930_v27 = vrot.slane %v3876_v0, 1 }
  0x84   : > { %1663 = vmatmul.mubr.bf16.gmra.mxu0 %v4273_v8 }
  0x85   : > { %1670 = vmatprep.mubr.bf16.mxu0 %v4310_v28 }
  0x88   : > { %1792 = vmatmul.mubr.bf16.gmra.mxu1 %v4314_v29 }
  0x89   : > { %1799 = vmatprep.mubr.bf16.mxu1 %v4214_v7 }
  0x8c   : > { %1671 = vmatmul.mubr.bf16.gmra.mxu0 %v4300_v41 }
  0x8d   : > { %1904 = vmatprep.mubr.bf16.mxu0 %v4136_v4  ;;  %v3644_v4 = vld [vmem:[%s4959_s3 + $0x228] sm:$0xff]  }
  0x90   : > { %1800 = vmatmul.mubr.bf16.gmra.mxu1 %v4323_v48 }
  0x91   : > { %1807 = vmatprep.mubr.bf16.mxu1 %v4241_v61 }
  0x94   : > { %1905 = vmatmul.mubr.bf16.vlgmr.msra.gmra.mxu0 %v3900_v34  ;;  %v3647_v34 = vld [vmem:[%s4959_s3 + $0x220] sm:$0xff]  }
  0x95   : > { %3509 = vmatpush3.bf16.msra.mxu0 %v4056_v9  ;;  %1912 = vmatprep.mubr.bf16.mxu0 %v4192_v46  ;;  %v4350_v9 = vsel %vm890_vm4, %v918_v44, %v919_v19  ;;  %v4385_v44 = vsel %vm890_vm4, %v924_v36, %v925_v45  ;;  %v934_v36 = vrot.slane %v3950_v24, 1  ;;  %v937_v24 = vrot.slane %v4027_v43, 1 }
  0x96   : > { %3510 = vmatprep.subr.bf16.mxu0 %v3641_v39 }
  0x98   : > { %1808 = vmatmul.mubr.bf16.gmra.mxu1 %v4334_v57 }
  0x99   : > { %1815 = vmatprep.mubr.bf16.mxu1 %v4273_v8  ;;  %3511 = vmatpush3.bf16.msra.mxu0 %v3641_v39  ;;  %v377_v39 = vadd.f32 %v4156_v38, %v338_v30 }
  0x9a   : > { %3512 = vmatprep.subr.bf16.mxu0 %v3644_v4 }
  0x9b   : > { %v409_v19 = vmul.f32 0.1, %v377_v39 }
  0x9c   : > { %1913 = vmatmul.mubr.bf16.gmra.mxu0 %v3964_v33 }
  0x9d   : > { %1920 = vmatprep.mubr.bf16.mxu0 %v4237_v20  ;;  %3513 = vmatpush3.bf16.msra.mxu0 %v3644_v4  ;;  %v378_v4 = vadd.f32 %v4156_v38, %v339_v32  ;;  %v927_v38 = vrot.slane %v3830_v15, 1  ;;  %v441_v17 = vmax.f32 %v377_v39, %v409_v19 }
  0x9e   : > { %3514 = vmatprep.subr.bf16.mxu0 %v3647_v34 }
  0x9f   : > { %v4394_v5 = vsel %vm890_vm4, %v927_v38, %v928_v47 }
  0xa0   : > { %1816 = vmatmul.mubr.bf16.gmra.mxu1 %v4350_v9 }
  0xa1   : > { %1823 = vmatprep.mubr.bf16.mxu1 %v4300_v41  ;;  %3515 = vmatpush3.bf16.msra.mxu0 %v3647_v34  ;;  %v410_v34 = vmul.f32 0.1, %v378_v4 }
  0xa2   : > { %3516 = vmatprep.subr.bf16.mxu0 %v3649_v59 }
  0xa4   : > { %1921 = vmatmul.mubr.bf16.gmra.mxu0 %v4037_v54 }
  0xa5   : > { %1928 = vmatprep.mubr.bf16.mxu0 %v4277_v50  ;;  %3517 = vmatpush3.bf16.msra.mxu0 %v3649_v59  ;;  %v442_v59 = vmax.f32 %v378_v4, %v410_v34  ;;  %v936_v4 = vrot.slane %v4041_v55, 1 }
  0xa6   : > { %3518 = vmatprep.subr.bf16.mxu0 %v3650_v13 }
  0xa7   : > { %v458_v2 = vpack.c.bf16 %v442_v59, %v441_v17 }
  0xa8   : > { %1824 = vmatmul.mubr.bf16.gmra.mxu1 %v4366_v23 }
  0xa9   : > { %1831 = vmatprep.mubr.bf16.mxu1 %v3830_v15  ;;  %3519 = vmatpush3.bf16.msra.mxu0 %v3650_v13  ;;  %v572_v6 = vshrl.u32 %v458_v2, 16  ;;  %v4403_v13 = vsel %vm890_vm4, %v930_v27, %v931_v18  ;;  %v575_v32 = vshll.u32 %v458_v2, 16 }
  0xaa   : > { %3520 = vmatprep.subr.bf16.mxu0 %v3651_v49 }
  0xab   : > { %v4407_v30 = vrot.slane %v572_v6, 7 }
  0xac   : > { %1929 = vmatmul.mubr.bf16.gmra.mxu0 %v4092_v3 }
  0xad   : > { %1936 = vmatprep.mubr.bf16.mxu0 %v4296_v12  ;;  %3521 = vmatpush3.bf16.msra.mxu0 %v3651_v49  ;;  %v933_v49 = vrot.slane %v3968_v35, 1  ;;  %v577_v56 = vor.u32 %v575_v32, %v4407_v30 }
  0xae   : > { %3522 = vmatprep.subr.bf16.mxu0 %v3652_v21 }
  0xaf   : > { %v4415_v45 = vsel %vm890_vm4, %v933_v49, %v934_v36  ;;  %v4420_v39 = vsel %vm3747_vm2, 0, %v577_v56 }
  0xb0   : > { %1832 = vmatmul.mubr.bf16.gmra.mxu1 %v4385_v44  ;;  %v956_v14 = vshrl.u32 %v4420_v39, 16 }
  0xb1   : > { %1839 = vmatprep.mubr.bf16.mxu1 %v3876_v0  ;;  %3523 = vmatpush3.bf16.msra.mxu0 %v3652_v21  ;;  %v4428_v21 = vsel %vm890_vm4, %v936_v4, %v937_v24  ;;  %v648_v4 = vsel %vm3747_vm2, %v4407_v30, 0 }
  0xb4   : > { %1937 = vmatmul.mubr.bf16.gmra.mxu0 %v4114_v22 }
  0xb5   : > { %1944 = vmatprep.mubr.bf16.mxu0 %v4314_v29 }
  0xb8   : > { %1840 = vmatmul.mubr.bf16.gmra.mxu1 %v4394_v5 }
  0xb9   : > { %1847 = vmatprep.mubr.bf16.mxu1 %v3968_v35 }
  0xbc   : > { %1945 = vmatmul.mubr.bf16.gmra.mxu0 %v4171_v62 }
  0xbd   : > { %1952 = vmatprep.mubr.bf16.mxu0 %v4323_v48 }
  0xc0   : > { %1848 = vmatmul.mubr.bf16.gmra.mxu1 %v4403_v13 }
  0xc1   : > { %1855 = vmatprep.mubr.bf16.mxu1 %v4041_v55 }
  0xc4   : > { %1953 = vmatmul.mubr.bf16.gmra.mxu0 %v4209_v42 }
  0xc5   : > { %1960 = vmatprep.mubr.bf16.mxu0 %v4334_v57 }
  0xc8   : > { %1856 = vmatmul.mubr.bf16.gmra.mxu1 %v4415_v45 }
  0xc9   : > { %1863 = vmatprep.mubr.bf16.mxu1 %v4420_v39 }
  0xcc   : > { %1961 = vmatmul.mubr.bf16.gmra.mxu0 %v4249_v10 }
  0xcd   : > { %1968 = vmatprep.mubr.bf16.mxu0 %v4350_v9 }
  0xd0   : > { %1864 = vmatmul.mubr.bf16.gmra.mxu1 %v4428_v21 }
  0xd1   : > { %2065 = vmatprep.mubr.bf16.mxu1 %v3964_v33 }
  0xd4   : > { %1969 = vmatmul.mubr.bf16.gmra.mxu0 %v4269_v11 }
  0xd5   : > { %1976 = vmatprep.mubr.bf16.mxu0 %v4366_v23 }
  0xd8   : > { %2066 = vmatmul.mubr.bf16.vlgmr.msra.gmra.mxu1 %v3926_v51 }
  0xd9   : > { %2073 = vmatprep.mubr.bf16.mxu1 %v4037_v54 }
  0xdc   : > { %1977 = vmatmul.mubr.bf16.gmra.mxu0 %v4287_v52 }
  0xdd   : > { %1984 = vmatprep.mubr.bf16.mxu0 %v4385_v44 }
  0xe0   : > { %2074 = vmatmul.mubr.bf16.gmra.mxu1 %v3994_v63 }
  0xe1   : > { %2081 = vmatprep.mubr.bf16.mxu1 %v4092_v3 }
  0xe4   : > { %1985 = vmatmul.mubr.bf16.gmra.mxu0 %v4310_v28 }
  0xe5   : > { %1992 = vmatprep.mubr.bf16.mxu0 %v4394_v5 }
  0xe8   : > { %2082 = vmatmul.mubr.bf16.gmra.mxu1 %v4064_v25 }
  0xe9   : > { %2089 = vmatprep.mubr.bf16.mxu1 %v4114_v22 }
  0xec   : > { %v3052_v43 = vpop.f32.mrf.mxu0  ;;  %v3124_v54 = vpop.f32.mrf.mxu1  ;;  %1993 = vmatmul.mubr.bf16.gmra.mxu0 %v3858_v53 }
  0xed   : > { %2000 = vmatprep.mubr.bf16.mxu0 %v4403_v13 }
  0xee   : > { %v3053_v19 = vpop.f32.mrf.mxu0  ;;  %v3125_v63 = vpop.f32.mrf.mxu1 }
  0xef   : > { %v4442_v34 = vadd.f32 %v3053_v19, %v3052_v43  ;;  %v4452_v3 = vadd.f32 %v3125_v63, %v3124_v54  ;;  %v971_v19 = vrot.slane %v648_v4, 1  ;;  %v963_v54 = vshll.u32 %v648_v4, 16 }
  0xf0   : > { %v3055_v33 = vpop.f32.mrf.mxu0  ;;  %v3127_v47 = vpop.f32.mrf.mxu1  ;;  %2090 = vmatmul.mubr.bf16.gmra.mxu1 %v4085_v58 }
  0xf1   : > { %2097 = vmatprep.mubr.bf16.mxu1 %v4171_v62 }
  0xf2   : > { %v3056_v51 = vpop.f32.mrf.mxu0  ;;  %v3128_v17 = vpop.f32.mrf.mxu1 }
  0xf3   : > { %v4446_v38 = vadd.f32 %v3056_v51, %v3055_v33  ;;  %v4456_v59 = vadd.f32 %v3128_v17, %v3127_v47 }
  0xf4   : > { %v3058_v2 = vpop.f32.mrf.mxu0  ;;  %2001 = vmatmul.mubr.bf16.gmra.mxu0 %v3908_v40 }
  0xf5   : > { %2008 = vmatprep.mubr.bf16.mxu0 %v4415_v45 }
  0xf6   : > { %v3059_v22 = vpop.f32.mrf.mxu0 }
  0xf7   : > { %v3130_v25 = vpop.f32.mrf.mxu1  ;;  %v4460_v27 = vadd.f32 %v3059_v22, %v3058_v2  ;;  %v965_v22 = vrot.slane %v963_v54, 1 }
  0xf8   : > { %v3061_v32 = vpop.f32.mrf.mxu0  ;;  %2098 = vmatmul.mubr.bf16.gmra.mxu1 %v4130_v60  ;;  %v958_v60 = vshll.u32 %v4420_v39, 16 }
  0xf9   : > { %v3131_v18 = vpop.f32.mrf.mxu1  ;;  %2105 = vmatprep.mubr.bf16.mxu1 %v4209_v42  ;;  %v970_v42 = vrot.slane %v4420_v39, 1 }
  0xfa   : > { %v4462_v6 = vadd.f32 %v3131_v18, %v3130_v25  ;;  %v3062_v62 = vpop.f32.mrf.mxu0  ;;  %v960_v30 = vrot.slane %v958_v60, 1 }
  0xfb   : > { %v3133_v58 = vpop.f32.mrf.mxu1  ;;  %v4466_v49 = vadd.f32 %v3062_v62, %v3061_v32  ;;  %v4483_v47 = vsel %vm890_vm4, %v970_v42, %v971_v19 }
  0xfc   : > { %2009 = vmatmul.mubr.bf16.gmra.mxu0 %v4011_v16 }
  0xfd   : > { %v3134_v36 = vpop.f32.mrf.mxu1  ;;  %2016 = vmatprep.mubr.bf16.mxu0 %v4428_v21 }
  0xfe   : > { %v4468_v56 = vadd.f32 %v3134_v36, %v3133_v58 }
 0x100   : > { %v3064_v24 = vpop.f32.mrf.mxu0  ;;  %2106 = vmatmul.mubr.bf16.gmra.mxu1 %v4176_v1  ;;  %v961_v1 = vor.u32 %v960_v30, %v956_v14 }
 0x101   : > { %2113 = vmatprep.mubr.bf16.mxu1 %v4249_v10 }
 0x102   : > { %v3065_v43 = vpop.f32.mrf.mxu0  ;;  %v4494_v62 = vsel %vm649_vm3, %v961_v1, %v965_v22 }
 0x103   : > { %v4478_v33 = vadd.f32 %v3065_v43, %v3064_v24  ;;  %v3136_v17 = vpop.f32.mrf.mxu1 }
 0x104   : > { %v3067_v51 = vpop.f32.mrf.mxu0  ;;  %2017 = vmatmul.mubr.bf16.gmra.mxu0 %v4071_v31 }
 0x105   : > { %v3137_v25 = vpop.f32.mrf.mxu1  ;;  %2024 = vmatprep.mubr.bf16.mxu0 %v4483_v47 }
 0x106   : > { %v3068_v63 = vpop.f32.mrf.mxu0  ;;  %v4489_v10 = vadd.f32 %v3137_v25, %v3136_v17 }
 0x107   : > { %v4485_v2 = vadd.f32 %v3068_v63, %v3067_v51  ;;  %v3139_v18 = vpop.f32.mrf.mxu1 }
 0x108   : > { %2114 = vmatmul.mubr.bf16.gmra.mxu1 %v4214_v7  ;;  %v3070_v32 = vpop.f32.mrf.mxu0 }
 0x109   : > { %2121 = vmatprep.mubr.bf16.mxu1 %v4269_v11  ;;  %v3140_v58 = vpop.f32.mrf.mxu1 }
 0x10a   : > { %v4496_v36 = vadd.f32 %v3140_v58, %v3139_v18  ;;  %v3071_v4 = vpop.f32.mrf.mxu0 }
 0x10b   : > { %v4498_v24 = vadd.f32 %v3071_v4, %v3070_v32 }
 0x10c   : > { %2025 = vmatmul.mubr.bf16.gmra.mxu0 %v4494_v62  ;;  %v3073_v60 = vpop.f32.mrf.mxu0 }
 0x10d   : > { %3524 = vmatprep.mubr.bf16.mxu0 %v4192_v46 }
 0x10e   : > { %v3074_v43 = vpop.f32.mrf.mxu0 }
 0x10f   : > { %v4503_v11 = vadd.f32 %v3074_v43, %v3073_v60 }
 0x110   : > { %v3142_v7 = vpop.f32.mrf.mxu1  ;;  %2122 = vmatmul.mubr.bf16.gmra.mxu1 %v4241_v61 }
 0x111   : > { %2129 = vmatprep.mubr.bf16.mxu1 %v4287_v52 }
 0x112   : > { %v3143_v42 = vpop.f32.mrf.mxu1 }
 0x113   : > { %v4506_v19 = vadd.f32 %v3143_v42, %v3142_v7 }
 0x114   : > { %v3145_v51 = vpop.f32.mrf.mxu1  ;;  %v3076_v14 = vpop.f32.mrf.mxu0  ;;  %3525 = vmatmul.mubr.bf16.vlgmr.msra.gmra.mxu0 %v4237_v20 }
 0x115   : > { %3528 = vmatprep.mubr.bf16.mxu0 %v4277_v50 }
 0x116   : > { %v3146_v30 = vpop.f32.mrf.mxu1  ;;  %v3077_v46 = vpop.f32.mrf.mxu0 }
 0x117   : > { %v4510_v54 = vadd.f32 %v3146_v30, %v3145_v51  ;;  %v4513_v61 = vadd.f32 %v3077_v46, %v3076_v14 }
 0x118   : > { %v3164_v63 = vpop.f32.mrf.mxu1  ;;  %2130 = vmatmul.mubr.bf16.gmra.mxu1 %v4273_v8  ;;  %v3079_v17 = vpop.f32.mrf.mxu0 }
 0x119   : > { %2137 = vmatprep.mubr.bf16.mxu1 %v4310_v28 }
 0x11a   : > { %v3165_v52 = vpop.f32.mrf.mxu1  ;;  %v3080_v1 = vpop.f32.mrf.mxu0 }
 0x11b   : > { %v3166_v25 = vadd.f32 %v3165_v52, %v3164_v63  ;;  %v4516_v18 = vadd.f32 %v3080_v1, %v3079_v17 }
 0x11c   : > { %v3167_v22 = vpop.f32.mrf.mxu1  ;;  %v3082_v50 = vpop.f32.mrf.mxu0  ;;  %3529 = vmatmul.mubr.bf16.gmra.mxu0 %v4296_v12 }
 0x11d   : > { %v4519_v20 = vadd.f32 %v3166_v25, %v4442_v34  ;;  %3532 = vmatprep.mubr.bf16.mxu0 %v4314_v29 }
 0x11e   : > { %v3168_v32 = vpop.f32.mrf.mxu1  ;;  %v3083_v58 = vpop.f32.mrf.mxu0 }
 0x11f   : > { %v3169_v8 = vadd.f32 %v3168_v32, %v3167_v22  ;;  %v4524_v28 = vadd.f32 %v3083_v58, %v3082_v50 }
 0x120   : > { %v3170_v4 = vpop.f32.mrf.mxu1  ;;  %2138 = vmatmul.mubr.bf16.gmra.mxu1 %v4300_v41  ;;  %v3085_v43 = vpop.f32.mrf.mxu0 }
 0x121   : > { %v4527_v60 = vadd.f32 %v3169_v8, %v4446_v38  ;;  %2145 = vmatprep.mubr.bf16.mxu1 %v3858_v53 }
 0x122   : > { %v3171_v34 = vpop.f32.mrf.mxu1  ;;  %v3086_v42 = vpop.f32.mrf.mxu0 }
 0x123   : > { %v3172_v7 = vadd.f32 %v3171_v34, %v3170_v4  ;;  %v4530_v51 = vadd.f32 %v3086_v42, %v3085_v43 }
 0x124   : > { %v3173_v12 = vpop.f32.mrf.mxu1  ;;  %v3088_v14 = vpop.f32.mrf.mxu0  ;;  %3533 = vmatmul.mubr.bf16.gmra.mxu0 %v4323_v48 }
 0x125   : > { %v4533_v29 = vadd.f32 %v3172_v7, %v4460_v27  ;;  %3536 = vmatprep.mubr.bf16.mxu0 %v4334_v57 }
 0x126   : > { %v3174_v41 = vpop.f32.mrf.mxu1  ;;  %v3089_v30 = vpop.f32.mrf.mxu0 }
 0x127   : > { %v3175_v38 = vadd.f32 %v3174_v41, %v3173_v12  ;;  %v4538_v53 = vadd.f32 %v3089_v30, %v3088_v14 }
 0x128   : > { %v3176_v46 = vpop.f32.mrf.mxu1  ;;  %2146 = vmatmul.mubr.bf16.gmra.mxu1 %v3830_v15  ;;  %v3091_v17 = vpop.f32.mrf.mxu0 }
 0x129   : > { %v4541_v63 = vadd.f32 %v3175_v38, %v4466_v49  ;;  %2153 = vmatprep.mubr.bf16.mxu1 %v3908_v40 }
 0x12a   : > { %v3177_v27 = vpop.f32.mrf.mxu1  ;;  %v3092_v25 = vpop.f32.mrf.mxu0 }
 0x12b   : > { %v3178_v52 = vadd.f32 %v3177_v27, %v3176_v46  ;;  %v4544_v1 = vadd.f32 %v3092_v25, %v3091_v17 }
 0x12c   : > { %v3179_v48 = vpop.f32.mrf.mxu1  ;;  %v3094_v22 = vpop.f32.mrf.mxu0  ;;  %3537 = vmatmul.mubr.bf16.gmra.mxu0 %v4350_v9 }
 0x12d   : > { %v4547_v57 = vadd.f32 %v3178_v52, %v4478_v33  ;;  %3540 = vmatprep.mubr.bf16.mxu0 %v4366_v23 }
 0x12e   : > { %v3180_v15 = vpop.f32.mrf.mxu1  ;;  %v3095_v50 = vpop.f32.mrf.mxu0 }
 0x12f   : > { %v3181_v49 = vadd.f32 %v3180_v15, %v3179_v48  ;;  %v4552_v40 = vadd.f32 %v3095_v50, %v3094_v22 }
 0x130   : > { %v3182_v32 = vpop.f32.mrf.mxu1  ;;  %2154 = vmatmul.mubr.bf16.gmra.mxu1 %v3876_v0  ;;  %v3097_v58 = vpop.f32.mrf.mxu0 }
 0x131   : > { %v4555_v8 = vadd.f32 %v3181_v49, %v4485_v2  ;;  %2161 = vmatprep.mubr.bf16.mxu1 %v4011_v16 }
 0x132   : > { %v3183_v33 = vpop.f32.mrf.mxu1  ;;  %v3098_v43 = vpop.f32.mrf.mxu0 }
 0x133   : > { %v3184_v4 = vadd.f32 %v3183_v33, %v3182_v32  ;;  %v4558_v34 = vadd.f32 %v3098_v43, %v3097_v58 }
 0x134   : > { %v3185_v9 = vpop.f32.mrf.mxu1  ;;  %v3100_v7 = vpop.f32.mrf.mxu0  ;;  %3541 = vmatmul.mubr.bf16.gmra.mxu0 %v4385_v44 }
 0x135   : > { %v4561_v23 = vadd.f32 %v3184_v4, %v4498_v24  ;;  %3544 = vmatprep.mubr.bf16.mxu0 %v4394_v5 }
 0x136   : > { %v3186_v0 = vpop.f32.mrf.mxu1  ;;  %v3101_v42 = vpop.f32.mrf.mxu0 }
 0x137   : > { %v3187_v2 = vadd.f32 %v3186_v0, %v3185_v9  ;;  %v4566_v16 = vadd.f32 %v3101_v42, %v3100_v7 }
 0x138   : > { %v3188_v12 = vpop.f32.mrf.mxu1  ;;  %2162 = vmatmul.mubr.bf16.gmra.mxu1 %v3968_v35  ;;  %v3103_v41 = vpop.f32.mrf.mxu0 }
 0x139   : > { %v4569_v14 = vadd.f32 %v3187_v2, %v4503_v11  ;;  %2169 = vmatprep.mubr.bf16.mxu1 %v4071_v31 }
 0x13a   : > { %v3189_v24 = vpop.f32.mrf.mxu1  ;;  %v3104_v30 = vpop.f32.mrf.mxu0 }
 0x13b   : > { %v3190_v38 = vadd.f32 %v3189_v24, %v3188_v12  ;;  %v4572_v46 = vadd.f32 %v3104_v30, %v3103_v41  ;;  %v4966_v12 = vld [vmem:[#allocation2_spill] sm:$0xff] }
 0x13c   : > { %v3191_v44 = vpop.f32.mrf.mxu1  ;;  %v3106_v17 = vpop.f32.mrf.mxu0  ;;  %3545 = vmatmul.mubr.bf16.gmra.mxu0 %v4403_v13 }
 0x13d   : > { %v4575_v5 = vadd.f32 %v3190_v38, %v4513_v61  ;;  %3548 = vmatprep.mubr.bf16.mxu0 %v4415_v45 }
 0x13e   : > { %v3192_v35 = vpop.f32.mrf.mxu1  ;;  %v3107_v27 = vpop.f32.mrf.mxu0 }
 0x13f   : > { %v3193_v11 = vadd.f32 %v3192_v35, %v3191_v44  ;;  %v4580_v31 = vadd.f32 %v3107_v27, %v3106_v17 }
 0x140   : > { %v3194_v52 = vpop.f32.mrf.mxu1  ;;  %2170 = vmatmul.mubr.bf16.gmra.mxu1 %v4041_v55  ;;  %v3109_v48 = vpop.f32.mrf.mxu0 }
 0x141   : > { %v4583_v25 = vadd.f32 %v3193_v11, %v4516_v18  ;;  %2177 = vmatprep.mubr.bf16.mxu1 %v4494_v62 }
 0x142   : > { %v3195_v61 = vpop.f32.mrf.mxu1  ;;  %v3110_v15 = vpop.f32.mrf.mxu0 }
 0x143   : > { %v3196_v22 = vadd.f32 %v3195_v61, %v3194_v52  ;;  %v4586_v49 = vadd.f32 %v3110_v15, %v3109_v48 }
 0x144   : > { %v3197_v13 = vpop.f32.mrf.mxu1  ;;  %v3112_v50 = vpop.f32.mrf.mxu0  ;;  %3549 = vmatmul.mubr.bf16.gmra.mxu0 %v4428_v21 }
 0x145   : > { %v4589_v45 = vadd.f32 %v3196_v22, %v4524_v28  ;;  %3552 = vmatprep.mubr.bf16.mxu0 %v4483_v47 }
 0x146   : > { %v3198_v55 = vpop.f32.mrf.mxu1  ;;  %v3113_v32 = vpop.f32.mrf.mxu0 }
 0x147   : > { %v3199_v18 = vadd.f32 %v3198_v55, %v3197_v13  ;;  %v4594_v62 = vadd.f32 %v3113_v32, %v3112_v50 }
 0x148   : > { %v3200_v58 = vpop.f32.mrf.mxu1  ;;  %2178 = vmatmul.mubr.bf16.gmra.mxu1 %v4420_v39  ;;  %v3115_v4 = vpop.f32.mrf.mxu0 }
 0x149   : > { %v4597_v33 = vadd.f32 %v3199_v18, %v4530_v51  ;;  %2185 = vmatprep.mubr.bf16.mxu1 %v3789_v37 }
 0x14a   : > { %v3201_v28 = vpop.f32.mrf.mxu1  ;;  %v3116_v9 = vpop.f32.mrf.mxu0 }
 0x14b   : > { %v3202_v43 = vadd.f32 %v3201_v28, %v3200_v58  ;;  %v4600_v7 = vadd.f32 %v3116_v9, %v3115_v4 }
 0x14c   : > { %v3203_v21 = vpop.f32.mrf.mxu1  ;;  %v3118_v0 = vpop.f32.mrf.mxu0  ;;  %3553 = vmatmul.mubr.bf16.gmra.mxu0 %v4105_v26 }
 0x14d   : > { %v4603_v47 = vadd.f32 %v3202_v43, %v4538_v53 }
 0x14e   : > { %v3204_v39 = vpop.f32.mrf.mxu1  ;;  %v3119_v42 = vpop.f32.mrf.mxu0 }
 0x14f   : > { %v3205_v2 = vadd.f32 %v3204_v39, %v3203_v21  ;;  %v4607_v41 = vadd.f32 %v3119_v42, %v3118_v0 }
 0x150   : > { %v3206_v51 = vpop.f32.mrf.mxu1  ;;  %2186 = vmatmul.mubr.bf16.gmra.mxu1 %v4966_v12  ;;  %v3121_v24 = vpop.f32.mrf.mxu0 }
 0x151   : > { %v4610_v37 = vadd.f32 %v3205_v2, %v4544_v1 }
 0x152   : > { %v3207_v38 = vpop.f32.mrf.mxu1  ;;  %v3122_v44 = vpop.f32.mrf.mxu0 }
 0x153   : > { %v3208_v30 = vadd.f32 %v3207_v38, %v3206_v51  ;;  %v4612_v17 = vadd.f32 %v3122_v44, %v3121_v24 }
 0x154   : > { %v3209_v53 = vpop.f32.mrf.mxu1  ;;  %v3276_v35 = vpop.f32.mrf.mxu0 }
 0x155   : > { %v4615_v26 = vadd.f32 %v3208_v30, %v4552_v40 }
 0x156   : > { %v3210_v11 = vpop.f32.mrf.mxu1  ;;  %v3277_v52 = vpop.f32.mrf.mxu0 }
 0x157   : > { %v3211_v27 = vadd.f32 %v3210_v11, %v3209_v53  ;;  %v3278_v61 = vadd.f32 %v3277_v52, %v3276_v35 }
 0x158   : > { %v3212_v48 = vpop.f32.mrf.mxu1  ;;  %v3279_v1 = vpop.f32.mrf.mxu0 }
 0x159   : > { %v4618_v22 = vadd.f32 %v3211_v27, %v4558_v34  ;;  %v4621_v13 = vadd.f32 %v3278_v61, %v4519_v20 }
 0x15a   : > { %v3213_v15 = vpop.f32.mrf.mxu1  ;;  %v3280_v55 = vpop.f32.mrf.mxu0 }
 0x15b   : > { %v3214_v50 = vadd.f32 %v3213_v15, %v3212_v48  ;;  %v3281_v32 = vadd.f32 %v3280_v55, %v3279_v1 }
 0x15c   : > { %v3215_v18 = vpop.f32.mrf.mxu1  ;;  %v3282_v58 = vpop.f32.mrf.mxu0 }
 0x15d   : > { %v4624_v40 = vadd.f32 %v3214_v50, %v4566_v16  ;;  %v4627_v28 = vadd.f32 %v3281_v32, %v4527_v60 }
 0x15e   : > { %v3216_v4 = vpop.f32.mrf.mxu1  ;;  %v3283_v34 = vpop.f32.mrf.mxu0 }
 0x15f   : > { %v3217_v43 = vadd.f32 %v3216_v4, %v3215_v18  ;;  %v3284_v21 = vadd.f32 %v3283_v34, %v3282_v58 }
 0x160   : > { %v3218_v9 = vpop.f32.mrf.mxu1  ;;  %v3285_v20 = vpop.f32.mrf.mxu0 }
 0x161   : > { %v4630_v0 = vadd.f32 %v3217_v43, %v4572_v46  ;;  %v4633_v2 = vadd.f32 %v3284_v21, %v4533_v29 }
 0x162   : > { %v3219_v39 = vpop.f32.mrf.mxu1  ;;  %v3286_v16 = vpop.f32.mrf.mxu0 }
 0x163   : > { %v3220_v42 = vadd.f32 %v3219_v39, %v3218_v9  ;;  %v3287_v12 = vadd.f32 %v3286_v16, %v3285_v20 }
 0x164   : > { %v3221_v51 = vpop.f32.mrf.mxu1  ;;  %v3288_v60 = vpop.f32.mrf.mxu0 }
 0x165   : > { %v4636_v24 = vadd.f32 %v3220_v42, %v4580_v31  ;;  %v4639_v30 = vadd.f32 %v3287_v12, %v4541_v63 }
 0x166   : > { %v3222_v38 = vpop.f32.mrf.mxu1  ;;  %v3289_v46 = vpop.f32.mrf.mxu0 }
 0x167   : > { %v3223_v44 = vadd.f32 %v3222_v38, %v3221_v51  ;;  %v3290_v35 = vadd.f32 %v3289_v46, %v3288_v60 }
 0x168   : > { %v3224_v53 = vpop.f32.mrf.mxu1  ;;  %v3291_v29 = vpop.f32.mrf.mxu0 }
 0x169   : > { %v4642_v11 = vadd.f32 %v3223_v44, %v4586_v49  ;;  %v4645_v52 = vadd.f32 %v3290_v35, %v4547_v57 }
 0x16a   : > { %v3225_v27 = vpop.f32.mrf.mxu1  ;;  %v3292_v31 = vpop.f32.mrf.mxu0 }
 0x16b   : > { %v3226_v48 = vadd.f32 %v3225_v27, %v3224_v53  ;;  %v3293_v1 = vadd.f32 %v3292_v31, %v3291_v29 }
 0x16c   : > { %v3227_v61 = vpop.f32.mrf.mxu1  ;;  %v3294_v63 = vpop.f32.mrf.mxu0 }
 0x16d   : > { %v4648_v15 = vadd.f32 %v3226_v48, %v4594_v62  ;;  %v4651_v55 = vadd.f32 %v3293_v1, %v4555_v8 }
 0x16e   : > { %v3228_v50 = vpop.f32.mrf.mxu1  ;;  %v3295_v49 = vpop.f32.mrf.mxu0 }
 0x16f   : > { %v3229_v18 = vadd.f32 %v3228_v50, %v3227_v61  ;;  %v3296_v58 = vadd.f32 %v3295_v49, %v3294_v63 }
 0x170   : > { %v3230_v32 = vpop.f32.mrf.mxu1  ;;  %v3297_v57 = vpop.f32.mrf.mxu0 }
 0x171   : > { %v4654_v4 = vadd.f32 %v3229_v18, %v4600_v7  ;;  %v4657_v34 = vadd.f32 %v3296_v58, %v4561_v23 }
 0x172   : > { %v3231_v43 = vpop.f32.mrf.mxu1  ;;  %v3298_v62 = vpop.f32.mrf.mxu0 }
 0x173   : > { %v3232_v9 = vadd.f32 %v3231_v43, %v3230_v32  ;;  %v3299_v20 = vadd.f32 %v3298_v62, %v3297_v57 }
 0x174   : > { %v3233_v21 = vpop.f32.mrf.mxu1  ;;  %v3300_v8 = vpop.f32.mrf.mxu0 }
 0x175   : > { %v4660_v39 = vadd.f32 %v3232_v9, %v4607_v41  ;;  %v4663_v16 = vadd.f32 %v3299_v20, %v4569_v14 }
 0x176   : > { %v3234_v42 = vpop.f32.mrf.mxu1  ;;  %v3301_v7 = vpop.f32.mrf.mxu0 }
 0x177   : > { %v3235_v51 = vadd.f32 %v3234_v42, %v3233_v21  ;;  %v3302_v60 = vadd.f32 %v3301_v7, %v3300_v8 }
 0x178   : > { %v3236_v12 = vpop.f32.mrf.mxu1  ;;  %v3303_v23 = vpop.f32.mrf.mxu0 }
 0x179   : > { %v4666_v38 = vadd.f32 %v3235_v51, %v4612_v17  ;;  %v4669_v46 = vadd.f32 %v3302_v60, %v4575_v5 }
 0x17a   : > { %v3237_v44 = vpop.f32.mrf.mxu1  ;;  %v3304_v41 = vpop.f32.mrf.mxu0 }
 0x17b   : > { %v3238_v53 = vadd.f32 %v3237_v44, %v3236_v12  ;;  %v3305_v29 = vadd.f32 %v3304_v41, %v3303_v23 }
 0x17c   : > { %v3239_v35 = vpop.f32.mrf.mxu1  ;;  %v3306_v14 = vpop.f32.mrf.mxu0 }
 0x17d   : > { %v4672_v27 = vadd.f32 %v3238_v53, %v4452_v3  ;;  %v4675_v31 = vadd.f32 %v3305_v29, %v4583_v25 }
 0x17e   : > { %v3240_v48 = vpop.f32.mrf.mxu1  ;;  %v3307_v17 = vpop.f32.mrf.mxu0 }
 0x17f   : > { %v3241_v61 = vadd.f32 %v3240_v48, %v3239_v35  ;;  %v3308_v63 = vadd.f32 %v3307_v17, %v3306_v14 }
 0x180   : > { %v3242_v1 = vpop.f32.mrf.mxu1  ;;  %v3309_v5 = vpop.f32.mrf.mxu0 }
 0x181   : > { %v4678_v50 = vadd.f32 %v3241_v61, %v4456_v59  ;;  %v4681_v49 = vadd.f32 %v3308_v63, %v4589_v45 }
 0x182   : > { %v3243_v18 = vpop.f32.mrf.mxu1  ;;  %v3310_v3 = vpop.f32.mrf.mxu0 }
 0x183   : > { %v3244_v32 = vadd.f32 %v3243_v18, %v3242_v1  ;;  %v3311_v57 = vadd.f32 %v3310_v3, %v3309_v5 }
 0x184   : > { %v3245_v58 = vpop.f32.mrf.mxu1  ;;  %v3312_v25 = vpop.f32.mrf.mxu0 }
 0x185   : > { %v4684_v43 = vadd.f32 %v3244_v32, %v4462_v6  ;;  %v4687_v62 = vadd.f32 %v3311_v57, %v4597_v33 }
 0x186   : > { %v3246_v9 = vpop.f32.mrf.mxu1  ;;  %v3313_v59 = vpop.f32.mrf.mxu0 }
 0x187   : > { %v3247_v21 = vadd.f32 %v3246_v9, %v3245_v58  ;;  %v3314_v8 = vadd.f32 %v3313_v59, %v3312_v25 }
 0x188   : > { %v3248_v20 = vpop.f32.mrf.mxu1  ;;  %v3315_v45 = vpop.f32.mrf.mxu0 }
 0x189   : > { %v4690_v42 = vadd.f32 %v3247_v21, %v4468_v56  ;;  %v4693_v7 = vadd.f32 %v3314_v8, %v4603_v47 }
 0x18a   : > { %v3249_v51 = vpop.f32.mrf.mxu1  ;;  %v3316_v6 = vpop.f32.mrf.mxu0 }
 0x18b   : > { %v3250_v12 = vadd.f32 %v3249_v51, %v3248_v20  ;;  %v3317_v23 = vadd.f32 %v3316_v6, %v3315_v45 }
 0x18c   : > { %v3251_v60 = vpop.f32.mrf.mxu1  ;;  %v3318_v33 = vpop.f32.mrf.mxu0 }
 0x18d   : > { %v4696_v44 = vadd.f32 %v3250_v12, %v4489_v10  ;;  %v4699_v41 = vadd.f32 %v3317_v23, %v4610_v37 }
 0x18e   : > { %v3252_v53 = vpop.f32.mrf.mxu1  ;;  %v3319_v56 = vpop.f32.mrf.mxu0 }
 0x18f   : > { %v3253_v35 = vadd.f32 %v3252_v53, %v3251_v60  ;;  %v3320_v14 = vadd.f32 %v3319_v56, %v3318_v33 }
 0x190   : > { %v3254_v29 = vpop.f32.mrf.mxu1  ;;  %v3321_v47 = vpop.f32.mrf.mxu0 }
 0x191   : > { %v4702_v48 = vadd.f32 %v3253_v35, %v4496_v36  ;;  %v4705_v17 = vadd.f32 %v3320_v14, %v4615_v26 }
 0x192   : > { %v3255_v61 = vpop.f32.mrf.mxu1  ;;  %v3322_v10 = vpop.f32.mrf.mxu0 }
 0x193   : > { %v3256_v1 = vadd.f32 %v3255_v61, %v3254_v29  ;;  %v3323_v5 = vadd.f32 %v3322_v10, %v3321_v47 }
 0x194   : > { %v3257_v63 = vpop.f32.mrf.mxu1  ;;  %v3324_v37 = vpop.f32.mrf.mxu0 }
 0x195   : > { %v4708_v18 = vadd.f32 %v3256_v1, %v4506_v19  ;;  %v4711_v3 = vadd.f32 %v3323_v5, %v4618_v22 }
 0x196   : > { %v3258_v32 = vpop.f32.mrf.mxu1  ;;  %v3325_v36 = vpop.f32.mrf.mxu0 }
 0x197   : > { %v3259_v58 = vadd.f32 %v3258_v32, %v3257_v63  ;;  %v3326_v25 = vadd.f32 %v3325_v36, %v3324_v37 }
 0x198   : > { %v4713_v57 = vpop.f32.mrf.mxu1  ;;  %v3327_v9 = vpop.f32.mrf.mxu0 }
 0x199   : > { %v4716_v26 = vadd.f32 %v3259_v58, %v4510_v54  ;;  %v4719_v21 = vadd.f32 %v3326_v25, %v4624_v40 }
 0x19a   : > { %v4721_v59 = vpop.f32.mrf.mxu1  ;;  %v3328_v19 = vpop.f32.mrf.mxu0 }
 0x19b   : > { %v3329_v8 = vadd.f32 %v3328_v19, %v3327_v9 }
 0x19c   : > { %v4723_v20 = vpop.f32.mrf.mxu1  ;;  %v3330_v22 = vpop.f32.mrf.mxu0 }
 0x19d   : > { %v4726_v45 = vadd.f32 %v3329_v8, %v4630_v0 }
 0x19e   : > { %v4728_v51 = vpop.f32.mrf.mxu1  ;;  %v3331_v12 = vpop.f32.mrf.mxu0 }
 0x19f   : > { %v3332_v54 = vadd.f32 %v3331_v12, %v3330_v22 }
 0x1a0   : > { %v4730_v6 = vpop.f32.mrf.mxu1  ;;  %v3333_v60 = vpop.f32.mrf.mxu0 }
 0x1a1   : > { %v4733_v40 = vadd.f32 %v3332_v54, %v4636_v24 }
 0x1a2   : > { %v4735_v23 = vpop.f32.mrf.mxu1  ;;  %v3334_v33 = vpop.f32.mrf.mxu0 }
 0x1a3   : > { %v3335_v35 = vadd.f32 %v3334_v33, %v3333_v60 }
 0x1a4   : > { %v4737_v53 = vpop.f32.mrf.mxu1  ;;  %v3336_v56 = vpop.f32.mrf.mxu0 }
 0x1a5   : > { %v4740_v0 = vadd.f32 %v3335_v35, %v4642_v11 }
 0x1a6   : > { %v4742_v29 = vpop.f32.mrf.mxu1  ;;  %v3337_v14 = vpop.f32.mrf.mxu0 }
 0x1a7   : > { %v3338_v61 = vadd.f32 %v3337_v14, %v3336_v56 }
 0x1a8   : > { %v4744_v47 = vpop.f32.mrf.mxu1  ;;  %v3339_v1 = vpop.f32.mrf.mxu0 }
 0x1a9   : > { %v4747_v24 = vadd.f32 %v3338_v61, %v4648_v15 }
 0x1aa   : > { %v4749_v10 = vpop.f32.mrf.mxu1  ;;  %v3340_v63 = vpop.f32.mrf.mxu0 }
 0x1ab   : > { %v3341_v37 = vadd.f32 %v3340_v63, %v3339_v1 }
 0x1ac   : > { %v4751_v5 = vpop.f32.mrf.mxu1  ;;  %v3342_v32 = vpop.f32.mrf.mxu0 }
 0x1ad   : > { %v4754_v11 = vadd.f32 %v3341_v37, %v4654_v4 }
 0x1ae   : > { %v4756_v58 = vpop.f32.mrf.mxu1  ;;  %v3343_v36 = vpop.f32.mrf.mxu0 }
 0x1af   : > { %4967 = vst [vmem:[#allocation2_spill] sm:$0xff] %v4754_v11  ;;  %v3344_v9 = vadd.f32 %v3343_v36, %v3342_v32 }
 0x1b0   : > { %v4758_v25 = vpop.f32.mrf.mxu1  ;;  %v3345_v19 = vpop.f32.mrf.mxu0 }
 0x1b1   : > { %v4761_v15 = vadd.f32 %v3344_v9, %v4660_v39 }
 0x1b2   : > { %v4763_v8 = vpop.f32.mrf.mxu1  ;;  %v3346_v22 = vpop.f32.mrf.mxu0 }
 0x1b3   : > { %4968 = vst [vmem:[#allocation3_spill] sm:$0xff] %v4761_v15  ;;  %v3347_v54 = vadd.f32 %v3346_v22, %v3345_v19 }
 0x1b4   : > { %v4765_v12 = vpop.f32.mrf.mxu1  ;;  %v3348_v60 = vpop.f32.mrf.mxu0 }
 0x1b5   : > { %v4768_v4 = vadd.f32 %v3347_v54, %v4666_v38 }
 0x1b6   : > { %v4770_v33 = vpop.f32.mrf.mxu1  ;;  %v3349_v35 = vpop.f32.mrf.mxu0 }
 0x1b7   : > { %4969 = vst [vmem:[#allocation4_spill] sm:$0xff] %v4768_v4  ;;  %v3350_v14 = vadd.f32 %v3349_v35, %v3348_v60 }
 0x1b8   : > { %v4772_v56 = vpop.f32.mrf.mxu1  ;;  %v3351_v61 = vpop.f32.mrf.mxu0 }
 0x1b9   : > { %v4775_v39 = vadd.f32 %v3350_v14, %v4672_v27 }
 0x1ba   : > { %v4777_v1 = vpop.f32.mrf.mxu1  ;;  %v3352_v63 = vpop.f32.mrf.mxu0 }
 0x1bb   : > { %4970 = vst [vmem:[#allocation5_spill] sm:$0xff] %v4775_v39  ;;  %v3353_v32 = vadd.f32 %v3352_v63, %v3351_v61 }
 0x1bc   : > { %v4779_v37 = vpop.f32.mrf.mxu1  ;;  %v3354_v36 = vpop.f32.mrf.mxu0 }
 0x1bd   : > { %v4782_v38 = vadd.f32 %v3353_v32, %v4678_v50 }
 0x1be   : > { %v4784_v9 = vpop.f32.mrf.mxu1  ;;  %v3355_v19 = vpop.f32.mrf.mxu0 }
 0x1bf   : > { %4971 = vst [vmem:[#allocation6_spill] sm:$0xff] %v4782_v38  ;;  %v3356_v54 = vadd.f32 %v3355_v19, %v3354_v36 }
 0x1c0   : > { %v4786_v22 = vpop.f32.mrf.mxu1  ;;  %v3357_v60 = vpop.f32.mrf.mxu0 }
 0x1c1   : > { %v4789_v27 = vadd.f32 %v3356_v54, %v4684_v43 }
 0x1c2   : > { %v4791_v35 = vpop.f32.mrf.mxu1  ;;  %v3358_v14 = vpop.f32.mrf.mxu0 }
 0x1c3   : > { %4972 = vst [vmem:[#allocation7_spill] sm:$0xff] %v4789_v27  ;;  %v3359_v61 = vadd.f32 %v3358_v14, %v3357_v60 }
 0x1c4   : > { %v4793_v39 = vpop.f32.mrf.mxu1  ;;  %v3360_v63 = vpop.f32.mrf.mxu0 }
 0x1c5   : > { %v4796_v50 = vadd.f32 %v3359_v61, %v4690_v42 }
 0x1c6   : > { %v4798_v32 = vpop.f32.mrf.mxu1  ;;  %v3361_v38 = vpop.f32.mrf.mxu0 }
 0x1c7   : > { %4973 = vst [vmem:[#allocation8_spill] sm:$0xff] %v4796_v50  ;;  %v3362_v36 = vadd.f32 %v3361_v38, %v3360_v63 }
 0x1c8   : > { %v4800_v11 = vpop.f32.mrf.mxu1  ;;  %v3363_v19 = vpop.f32.mrf.mxu0 }
 0x1c9   : > { %v4803_v43 = vadd.f32 %v3362_v36, %v4696_v44 }
 0x1ca   : > { %v4805_v54 = vpop.f32.mrf.mxu1  ;;  %v3364_v27 = vpop.f32.mrf.mxu0 }
 0x1cb   : > { %4974 = vst [vmem:[#allocation9_spill] sm:$0xff] %v4803_v43  ;;  %v3365_v60 = vadd.f32 %v3364_v27, %v3363_v19  ;;  %v3390_v27 = vadd.f32 %v4721_v59, %v4713_v57  ;;  %v3399_v19 = vadd.f32 %v4742_v29, %v4737_v53  ;;  %v3402_v29 = vadd.f32 %v4749_v10, %v4744_v47 }
 0x1cc   : > { %v4807_v4 = vpop.f32.mrf.mxu1  ;;  %v3366_v14 = vpop.f32.mrf.mxu0 }
 0x1cd   : > { %v4810_v42 = vadd.f32 %v3365_v60, %v4702_v48  ;;  %v3396_v48 = vadd.f32 %v4735_v23, %v4730_v6  ;;  %v2068_v23 = vadd.f32 %v3390_v27, %v4621_v13  ;;  %v2079_v53 = vadd.f32 %v3399_v19, %v4639_v30 }
 0x1ce   : > { %v4812_v61 = vpop.f32.mrf.mxu1  ;;  %v3367_v50 = vpop.f32.mrf.mxu0  ;;  %v2084_v27 = vadd.f32 %v3402_v29, %v4645_v52  ;;  %v3405_v19 = vadd.f32 %v4756_v58, %v4751_v5  ;;  %v3423_v58 = vadd.f32 %v4798_v32, %v4793_v39 }
 0x1cf   : > { %4975 = vst [vmem:[#allocation10_spill] sm:$0xff] %v4810_v42  ;;  %v3368_v38 = vadd.f32 %v3367_v50, %v3366_v14  ;;  %v2076_v6 = vadd.f32 %v3396_v48, %v4633_v2  ;;  %v3411_v2 = vadd.f32 %v4770_v33, %v4765_v12 }
 0x1d0   : > { %v4814_v15 = vpop.f32.mrf.mxu1  ;;  %v3369_v63 = vpop.f32.mrf.mxu0 }
 0x1d1   : > { %v4817_v44 = vadd.f32 %v3368_v38, %v4708_v18  ;;  %v3393_v18 = vadd.f32 %v4728_v51, %v4723_v20 }
 0x1d2   : > { %v4819_v36 = vpop.f32.mrf.mxu1  ;;  %v3370_v43 = vpop.f32.mrf.mxu0 }
 0x1d3   : > { %v3371_v42 = vadd.f32 %v3370_v43, %v3369_v63  ;;  %v2071_v63 = vadd.f32 %v3393_v18, %v4627_v28 }
 0x1d4   : > { %v4827_v60 = vpop.f32.mrf.mxu1  ;;  %v3526_v50 = vpop.f32.mrf.mxu0 }
 0x1d5   : > { %v4832_v14 = vadd.f32 %v3371_v42, %v4716_v26  ;;  %v2237_v20 = vadd.f32 %v3526_v50, %v2076_v6 }
 0x1d6   : > { %v4834_v38 = vpop.f32.mrf.mxu1  ;;  %v2228_v57 = vpop.f32.mrf.mxu0 }
 0x1d7   : > { %4976 = vst [vmem:[#allocation11_spill] sm:$0xff] %v4832_v14  ;;  %v2229_v26 = vadd.f32 %v2228_v57, %v2068_v23  ;;  %v3408_v14 = vadd.f32 %v4763_v8, %v4758_v25  ;;  %v2095_v57 = vadd.f32 %v3411_v2, %v4663_v16  ;;  %v2554_v6 = vmul.f32 %v2237_v20, %v2237_v20 }
 0x1d8   : > { %v4836_v59 = vpop.f32.mrf.mxu1  ;;  %v3527_v43 = vpop.f32.mrf.mxu0  ;;  %v3420_v16 = vadd.f32 %v4791_v35, %v4786_v22 }
 0x1d9   : > { %v2240_v42 = vadd.f32 %v3527_v43, %v2079_v53  ;;  %v2552_v25 = vmul.f32 %v2229_v26, %v2229_v26  ;;  %v2092_v50 = vadd.f32 %v3408_v14, %v4657_v34  ;;  %v3414_v34 = vadd.f32 %v4777_v1, %v4772_v56 }
 0x1da   : > { %v4843_v51 = vpop.f32.mrf.mxu1  ;;  %v2231_v13 = vpop.f32.mrf.mxu0  ;;  %v2087_v14 = vadd.f32 %v3405_v19, %v4651_v55  ;;  %v3417_v56 = vadd.f32 %v4784_v9, %v4779_v37 }
 0x1db   : > { %v2934_v47 = vpack.c.bf16 %v2240_v42, %v2237_v20  ;;  %v2232_v10 = vadd.f32 %v2231_v13, %v2071_v63  ;;  %v2555_v43 = vmul.f32 %v2240_v42, %v2240_v42  ;;  %v2100_v55 = vadd.f32 %v3414_v34, %v4669_v46 }
 0x1dc   : > { %v4857_v30 = vpop.f32.mrf.mxu1  ;;  %v3530_v28 = vpop.f32.mrf.mxu0  ;;  %v3426_v46 = vadd.f32 %v4805_v54, %v4800_v11  ;;  %v3435_v34 = vadd.f32 %v4834_v38, %v4827_v60  ;;  %v3429_v11 = vadd.f32 %v4812_v61, %v4807_v4 }
 0x1dd   : > { %3021 = vst [vmem:[%s4855_s28 + $0x8] sm:$0xff] %v2934_v47   ;;  %v2929_v12 = vpack.c.bf16 %v2232_v10, %v2229_v26  ;;  %v2515_v33 = vadd.f32 %v2232_v10, %v2229_v26  ;;  %v2553_v48 = vmul.f32 %v2232_v10, %v2232_v10  ;;  %v2253_v26 = vadd.f32 %v3530_v28, %v2092_v50 }
 0x1de   : > { %v4861_v8 = vpop.f32.mrf.mxu1  ;;  %v2244_v18 = vpop.f32.mrf.mxu0  ;;  %v2108_v50 = vadd.f32 %v3420_v16, %v4681_v49  ;;  %v2116_v60 = vadd.f32 %v3426_v46, %v4693_v7  ;;  %v3438_v7 = vadd.f32 %v4843_v51, %v4836_v59 }
 0x1df   : > { %2930 = vst [vmem:[%s4855_s28] sm:$0xff] %v2929_v12   ;;  %v2516_v23 = vadd.f32 %v2515_v33, %v2237_v20  ;;  %v2584_v53 = vadd.f32 %v2553_v48, %v2552_v25  ;;  %v2245_v29 = vadd.f32 %v2244_v18, %v2084_v27  ;;  %v2111_v18 = vadd.f32 %v3423_v58, %v4687_v62 }
 0x1e0   : > { %v4868_v52 = vpop.f32.mrf.mxu1  ;;  %v3531_v63 = vpop.f32.mrf.mxu0  ;;  %v3441_v59 = vadd.f32 %v4861_v8, %v4857_v30 }
 0x1e1   : > { %v2585_v13 = vadd.f32 %v2584_v53, %v2554_v6  ;;  %v2517_v10 = vadd.f32 %v2516_v23, %v2240_v42  ;;  %v2256_v5 = vadd.f32 %v3531_v63, %v2095_v57  ;;  %v2556_v27 = vmul.f32 %v2245_v29, %v2245_v29 }
 0x1e2   : > { %v4870_v47 = vpop.f32.mrf.mxu1  ;;  %v2247_v20 = vpop.f32.mrf.mxu0  ;;  %v2558_v57 = vmul.f32 %v2253_v26, %v2253_v26  ;;  %v2103_v63 = vadd.f32 %v3417_v56, %v4675_v31 }
 0x1e3   : > { %v2518_v2 = vadd.f32 %v2517_v10, %v2245_v29  ;;  %v2586_v28 = vadd.f32 %v2585_v13, %v2555_v43  ;;  %v2944_v42 = vpack.c.bf16 %v2256_v5, %v2253_v26  ;;  %v2248_v12 = vadd.f32 %v2247_v20, %v2087_v14 }
 0x1e4   : > { %v4879_v25 = vpop.f32.mrf.mxu1  ;;  %v3534_v33 = vpop.f32.mrf.mxu0  ;;  %v2559_v13 = vmul.f32 %v2256_v5, %v2256_v5 }
 0x1e5   : > { %v2587_v1 = vadd.f32 %v2586_v28, %v2556_v27  ;;  %3023 = vst [vmem:[%s4855_s28 + $0x18] sm:$0xff] %v2944_v42   ;;  %v2939_v35 = vpack.c.bf16 %v2248_v12, %v2245_v29  ;;  %v2519_v39 = vadd.f32 %v2518_v2, %v2248_v12  ;;  %v2557_v32 = vmul.f32 %v2248_v12, %v2248_v12 }
 0x1e6   : > { %v3446_v22 = vpop.f32.mrf.mxu1  ;;  %v2260_v48 = vpop.f32.mrf.mxu0  ;;  %v2269_v53 = vadd.f32 %v3534_v33, %v2108_v50  ;;  %v2127_v33 = vadd.f32 %v3435_v34, %v4711_v3  ;;  %v3444_v3 = vadd.f32 %v4870_v47, %v4868_v52  ;;  %v2132_v52 = vadd.f32 %v3438_v7, %v4719_v21 }
 0x1e7   : > { %3022 = vst [vmem:[%s4855_s28 + $0x10] sm:$0xff] %v2939_v35   ;;  %v2520_v6 = vadd.f32 %v2519_v39, %v2253_v26  ;;  %v2588_v23 = vadd.f32 %v2587_v1, %v2557_v32  ;;  %v2261_v37 = vadd.f32 %v2260_v48, %v2100_v55  ;;  %v3432_v26 = vadd.f32 %v4819_v36, %v4814_v15 }
 0x1e8   : > { %v4885_v19 = vpop.f32.mrf.mxu1  ;;  %v3535_v9 = vpop.f32.mrf.mxu0  ;;  %v2562_v56 = vmul.f32 %v2269_v53, %v2269_v53  ;;  %v2119_v48 = vadd.f32 %v3429_v11, %v4699_v41 }
 0x1e9   : > { %v2272_v29 = vadd.f32 %v3535_v9, %v2111_v18  ;;  %v2589_v49 = vadd.f32 %v2588_v23, %v2558_v57  ;;  %v2521_v10 = vadd.f32 %v2520_v6, %v2256_v5  ;;  %v2560_v20 = vmul.f32 %v2261_v37, %v2261_v37 }
 0x1ea   : > { %v4890_v43 = vpop.f32.mrf.mxu1  ;;  %v2263_v62 = vpop.f32.mrf.mxu0  ;;  %v2124_v12 = vadd.f32 %v3432_v26, %v4705_v17  ;;  %v3447_v6 = vadd.f32 %v3446_v22, %v4879_v25  ;;  %v2140_v22 = vadd.f32 %v3444_v3, %v4733_v40 }
 0x1eb   : > { %v2954_v58 = vpack.c.bf16 %v2272_v29, %v2269_v53  ;;  %v2264_v14 = vadd.f32 %v2263_v62, %v2103_v63  ;;  %v2522_v31 = vadd.f32 %v2521_v10, %v2261_v37  ;;  %v2590_v2 = vadd.f32 %v2589_v49, %v2559_v13 }
 0x1ec   : > { %v4899_v16 = vpop.f32.mrf.mxu1  ;;  %v3538_v27 = vpop.f32.mrf.mxu0  ;;  %v2563_v50 = vmul.f32 %v2272_v29, %v2272_v29  ;;  %v2143_v62 = vadd.f32 %v3447_v6, %v4740_v0  ;;  %v3450_v21 = vadd.f32 %v4890_v43, %v4885_v19 }
 0x1ed   : > { %3025 = vst [vmem:[%s4855_s28 + $0x28] sm:$0xff] %v2954_v58   ;;  %v2949_v5 = vpack.c.bf16 %v2264_v14, %v2261_v37  ;;  %v2561_v15 = vmul.f32 %v2264_v14, %v2264_v14  ;;  %v2591_v36 = vadd.f32 %v2590_v2, %v2560_v20  ;;  %v2523_v28 = vadd.f32 %v2522_v31, %v2264_v14 }
 0x1ee   : > { %v4904_v54 = vpop.f32.mrf.mxu1  ;;  %v2276_v38 = vpop.f32.mrf.mxu0  ;;  %v2285_v39 = vadd.f32 %v3538_v27, %v2124_v12  ;;  %v2135_v2 = vadd.f32 %v3441_v59, %v4726_v45 }
 0x1ef   : > { %3024 = vst [vmem:[%s4855_s28 + $0x20] sm:$0xff] %v2949_v5   ;;  %v2524_v1 = vadd.f32 %v2523_v28, %v2269_v53  ;;  %v2592_v35 = vadd.f32 %v2591_v36, %v2561_v15  ;;  %v2277_v4 = vadd.f32 %v2276_v38, %v2116_v60  ;;  %v3453_v45 = vadd.f32 %v4904_v54, %v4899_v16 }
 0x1f0   : > { %v3454_v42 = vpop.f32.mrf.mxu1  ;;  %v3539_v61 = vpop.f32.mrf.mxu0  ;;  %v2566_v26 = vmul.f32 %v2285_v39, %v2285_v39 }
 0x1f1   : > { %v2288_v55 = vadd.f32 %v3539_v61, %v2127_v33  ;;  %v2593_v18 = vadd.f32 %v2592_v35, %v2562_v56  ;;  %v2525_v57 = vadd.f32 %v2524_v1, %v2272_v29  ;;  %v2564_v63 = vmul.f32 %v2277_v4, %v2277_v4 }
 0x1f2   : > { %v3455_v32 = vpop.f32.mrf.mxu1  ;;  %v2279_v17 = vpop.f32.mrf.mxu0 }
 0x1f3   : > { %v2964_v37 = vpack.c.bf16 %v2288_v55, %v2285_v39  ;;  %v2280_v9 = vadd.f32 %v2279_v17, %v2119_v48  ;;  %v2526_v53 = vadd.f32 %v2525_v57, %v2277_v4  ;;  %v2594_v41 = vadd.f32 %v2593_v18, %v2563_v50  ;;  %v4978_v48 = vld [vmem:[#allocation4_spill] sm:$0xff] }
 0x1f4   : > { %v3457_v23 = vpop.f32.mrf.mxu1  ;;  %v3542_v46 = vpop.f32.mrf.mxu0  ;;  %v2567_v27 = vmul.f32 %v2288_v55, %v2288_v55  ;;  %v3456_v15 = vadd.f32 %v3455_v32, %v3454_v42  ;;  %v2148_v42 = vadd.f32 %v3450_v21, %v4747_v24  ;;  %v4977_v32 = vld [vmem:[#allocation3_spill] sm:$0xff] }
 0x1f5   : > { %3027 = vst [vmem:[%s4855_s28 + $0x38] sm:$0xff] %v2964_v37   ;;  %v2959_v29 = vpack.c.bf16 %v2280_v9, %v2277_v4  ;;  %v2565_v13 = vmul.f32 %v2280_v9, %v2280_v9  ;;  %v2595_v49 = vadd.f32 %v2594_v41, %v2564_v63  ;;  %v2527_v10 = vadd.f32 %v2526_v53, %v2280_v9 }
 0x1f6   : > { %v3458_v51 = vpop.f32.mrf.mxu1  ;;  %v2292_v47 = vpop.f32.mrf.mxu0  ;;  %v2301_v8 = vadd.f32 %v3542_v46, %v2140_v22 }
 0x1f7   : > { %3026 = vst [vmem:[%s4855_s28 + $0x30] sm:$0xff] %v2959_v29   ;;  %v2528_v34 = vadd.f32 %v2527_v10, %v2285_v39  ;;  %v2596_v58 = vadd.f32 %v2595_v49, %v2565_v13  ;;  %v2293_v14 = vadd.f32 %v2292_v47, %v2132_v52  ;;  %v3459_v0 = vadd.f32 %v3458_v51, %v3457_v23  ;;  %v4979_v23 = vld [vmem:[#allocation2_spill] sm:$0xff] }
 0x1f8   : > { %v3460_v25 = vpop.f32.mrf.mxu1  ;;  %v3543_v30 = vpop.f32.mrf.mxu0  ;;  %v2570_v50 = vmul.f32 %v2301_v8, %v2301_v8  ;;  %v2151_v37 = vadd.f32 %v3453_v45, %v4979_v23 }
 0x1f9   : > { %v2304_v20 = vadd.f32 %v3543_v30, %v2143_v62  ;;  %v2597_v11 = vadd.f32 %v2596_v58, %v2566_v26  ;;  %v2529_v5 = vadd.f32 %v2528_v34, %v2288_v55  ;;  %v2568_v12 = vmul.f32 %v2293_v14, %v2293_v14 }
 0x1fa   : > { %v3461_v31 = vpop.f32.mrf.mxu1  ;;  %v2295_v40 = vpop.f32.mrf.mxu0  ;;  %v2156_v55 = vadd.f32 %v3456_v15, %v4977_v32  ;;  %v2159_v7 = vadd.f32 %v3459_v0, %v4978_v48 }
 0x1fb   : > { %v2974_v28 = vpack.c.bf16 %v2304_v20, %v2301_v8  ;;  %v2296_v60 = vadd.f32 %v2295_v40, %v2135_v2  ;;  %v2530_v38 = vadd.f32 %v2529_v5, %v2293_v14  ;;  %v2598_v33 = vadd.f32 %v2597_v11, %v2567_v27  ;;  %v4981_v2 = vld [vmem:[#allocation7_spill] sm:$0xff]  ;;  %v4982_v40 = vld [vmem:[#allocation8_spill] sm:$0xff] }
 0x1fc   : > { %v3463_v36 = vpop.f32.mrf.mxu1  ;;  %v3546_v56 = vpop.f32.mrf.mxu0  ;;  %v3462_v9 = vadd.f32 %v3461_v31, %v3460_v25  ;;  %v2571_v24 = vmul.f32 %v2304_v20, %v2304_v20 }
 0x1fd   : > { %3029 = vst [vmem:[%s4855_s28 + $0x48] sm:$0xff] %v2974_v28   ;;  %v2969_v19 = vpack.c.bf16 %v2296_v60, %v2293_v14  ;;  %v2569_v43 = vmul.f32 %v2296_v60, %v2296_v60  ;;  %v2599_v35 = vadd.f32 %v2598_v33, %v2568_v12  ;;  %v2531_v4 = vadd.f32 %v2530_v38, %v2296_v60  ;;  %v4980_v14 = vld [vmem:[#allocation5_spill] sm:$0xff]  ;;  %v4983_v38 = vld [vmem:[#allocation6_spill] sm:$0xff] }
 0x1fe   : > { %v3464_v1 = vpop.f32.mrf.mxu1  ;;  %v2308_v61 = vpop.f32.mrf.mxu0  ;;  %v2317_v54 = vadd.f32 %v3546_v56, %v2156_v55  ;;  %v2164_v30 = vadd.f32 %v3462_v9, %v4980_v14 }
 0x1ff   : > { %3028 = vst [vmem:[%s4855_s28 + $0x40] sm:$0xff] %v2969_v19   ;;  %v2532_v18 = vadd.f32 %v2531_v4, %v2301_v8  ;;  %v2600_v57 = vadd.f32 %v2599_v35, %v2569_v43  ;;  %v2309_v17 = vadd.f32 %v2308_v61, %v2148_v42  ;;  %v3465_v47 = vadd.f32 %v3464_v1, %v3463_v36 }
 0x200   : > { %v3466_v39 = vpop.f32.mrf.mxu1  ;;  %v3547_v16 = vpop.f32.mrf.mxu0  ;;  %v2574_v31 = vmul.f32 %v2317_v54, %v2317_v54 }
 0x201   : > { %v2320_v6 = vadd.f32 %v3547_v16, %v2159_v7  ;;  %v2601_v53 = vadd.f32 %v2600_v57, %v2570_v50  ;;  %v2533_v63 = vadd.f32 %v2532_v18, %v2304_v20  ;;  %v2572_v49 = vmul.f32 %v2309_v17, %v2309_v17 }
 0x202   : > { %v3467_v3 = vpop.f32.mrf.mxu1  ;;  %v2311_v41 = vpop.f32.mrf.mxu0  ;;  %v2167_v12 = vadd.f32 %v3465_v47, %v4983_v38 }
 0x203   : > { %v3468_v46 = vadd.f32 %v3467_v3, %v3466_v39  ;;  %v2984_v51 = vpack.c.bf16 %v2320_v6, %v2317_v54  ;;  %v2312_v29 = vadd.f32 %v2311_v41, %v2151_v37  ;;  %v2534_v13 = vadd.f32 %v2533_v63, %v2309_v17  ;;  %v4985_v63 = vld [vmem:[#allocation10_spill] sm:$0xff] }
 0x204   : > { %v3469_v59 = vpop.f32.mrf.mxu1  ;;  %v2602_v10 = vadd.f32 %v2601_v53, %v2571_v24  ;;  %v3550_v52 = vpop.f32.mrf.mxu0  ;;  %v2575_v36 = vmul.f32 %v2320_v6, %v2320_v6 }
 0x205   : > { %3031 = vst [vmem:[%s4855_s28 + $0x58] sm:$0xff] %v2984_v51   ;;  %v2979_v62 = vpack.c.bf16 %v2312_v29, %v2309_v17  ;;  %v2573_v26 = vmul.f32 %v2312_v29, %v2312_v29  ;;  %v2535_v58 = vadd.f32 %v2534_v13, %v2312_v29  ;;  %v2172_v21 = vadd.f32 %v3468_v46, %v4981_v2  ;;  %v4984_v17 = vld [vmem:[#allocation9_spill] sm:$0xff] }
 0x206   : > { %v3470_v22 = vpop.f32.mrf.mxu1  ;;  %v2603_v34 = vadd.f32 %v2602_v10, %v2572_v49  ;;  %v2324_v8 = vpop.f32.mrf.mxu0 }
 0x207   : > { %v3471_v25 = vadd.f32 %v3470_v22, %v3469_v59  ;;  %3030 = vst [vmem:[%s4855_s28 + $0x50] sm:$0xff] %v2979_v62   ;;  %v2536_v27 = vadd.f32 %v2535_v58, %v2317_v54  ;;  %v2325_v5 = vadd.f32 %v2324_v8, %v2164_v30  ;;  %v2333_v28 = vadd.f32 %v3550_v52, %v2172_v21 }
 0x208   : > { %v3472_v20 = vpop.f32.mrf.mxu1  ;;  %v2604_v11 = vadd.f32 %v2603_v34, %v2573_v26  ;;  %v3551_v0 = vpop.f32.mrf.mxu0 }
 0x209   : > { %v2175_v15 = vadd.f32 %v3471_v25, %v4982_v40  ;;  %v2537_v45 = vadd.f32 %v2536_v27, %v2320_v6  ;;  %v2576_v42 = vmul.f32 %v2325_v5, %v2325_v5  ;;  %v2578_v6 = vmul.f32 %v2333_v28, %v2333_v28 }
 0x20a   : > { %v3473_v60 = vpop.f32.mrf.mxu1  ;;  %v2605_v33 = vadd.f32 %v2604_v11, %v2574_v31  ;;  %v2327_v19 = vpop.f32.mrf.mxu0 }
 0x20b   : > { %v3474_v56 = vadd.f32 %v3473_v60, %v3472_v20  ;;  %v2336_v1 = vadd.f32 %v3551_v0, %v2175_v15  ;;  %v2328_v35 = vadd.f32 %v2327_v19, %v2167_v12  ;;  %v2538_v4 = vadd.f32 %v2537_v45, %v2325_v5  ;;  %v4986_v20 = vld [vmem:[#allocation11_spill] sm:$0xff] }
 0x20c   : > { %v3475_v43 = vpop.f32.mrf.mxu1  ;;  %v2606_v61 = vadd.f32 %v2605_v33, %v2575_v36  ;;  %v3554_v32 = vpop.f32.mrf.mxu0 }
 0x20d   : > { %v2994_v39 = vpack.c.bf16 %v2336_v1, %v2333_v28  ;;  %v2989_v48 = vpack.c.bf16 %v2328_v35, %v2325_v5  ;;  %v2577_v7 = vmul.f32 %v2328_v35, %v2328_v35  ;;  %v2539_v57 = vadd.f32 %v2538_v4, %v2328_v35 }
 0x20e   : > { %v3476_v55 = vpop.f32.mrf.mxu1  ;;  %v2607_v50 = vadd.f32 %v2606_v61, %v2576_v42  ;;  %v2180_v16 = vadd.f32 %v3474_v56, %v4984_v17  ;;  %v2340_v54 = vpop.f32.mrf.mxu0  ;;  %v2579_v46 = vmul.f32 %v2336_v1, %v2336_v1 }
 0x20f   : > { %3033 = vst [vmem:[%s4855_s28 + $0x68] sm:$0xff] %v2994_v39   ;;  %v3477_v18 = vadd.f32 %v3476_v55, %v3475_v43  ;;  %3032 = vst [vmem:[%s4855_s28 + $0x60] sm:$0xff] %v2989_v48   ;;  %v2540_v23 = vadd.f32 %v2539_v57, %v2333_v28 }
 0x210   : > { %v3478_v3 = vpop.f32.mrf.mxu1  ;;  %v2608_v37 = vadd.f32 %v2607_v50, %v2577_v7  ;;  %v2341_v9 = vadd.f32 %v2340_v54, %v2180_v16  ;;  %v3555_v24 = vpop.f32.mrf.mxu0 }
 0x211   : > { %v2183_v41 = vadd.f32 %v3477_v18, %v4985_v63  ;;  %v2541_v29 = vadd.f32 %v2540_v23, %v2336_v1 }
 0x212   : > { %v3479_v53 = vpop.f32.mrf.mxu1  ;;  %v2609_v59 = vadd.f32 %v2608_v37, %v2578_v6  ;;  %v2343_v13 = vpop.f32.mrf.mxu0  ;;  %v2580_v22 = vmul.f32 %v2341_v9, %v2341_v9 }
 0x213   : > { %v3480_v51 = vadd.f32 %v3479_v53, %v3478_v3  ;;  %v2344_v10 = vadd.f32 %v2343_v13, %v2183_v41  ;;  %v2542_v47 = vadd.f32 %v2541_v29, %v2341_v9 }
 0x214   : > { %v3481_v49 = vpop.f32.mrf.mxu1  ;;  %v2610_v62 = vadd.f32 %v2609_v59, %v2579_v46 }
 0x215   : > { %v2188_v52 = vadd.f32 %v3480_v51, %v4817_v44  ;;  %v2999_v34 = vpack.c.bf16 %v2344_v10, %v2341_v9  ;;  %v2581_v25 = vmul.f32 %v2344_v10, %v2344_v10  ;;  %v2543_v8 = vadd.f32 %v2542_v47, %v2344_v10 }
 0x216   : > { %v3482_v26 = vpop.f32.mrf.mxu1  ;;  %v2611_v14 = vadd.f32 %v2610_v62, %v2580_v22 }
 0x217   : > { %v2349_v58 = vadd.f32 %v3554_v32, %v2188_v52  ;;  %v3483_v30 = vadd.f32 %v3482_v26, %v3481_v49  ;;  %3034 = vst [vmem:[%s4855_s28 + $0x70] sm:$0xff] %v2999_v34  }
 0x218   : > { %v2612_v27 = vadd.f32 %v2611_v14, %v2581_v25 }
 0x219   : > { %v2582_v31 = vmul.f32 %v2349_v58, %v2349_v58  ;;  %v2191_v2 = vadd.f32 %v3483_v30, %v4986_v20  ;;  %v2544_v21 = vadd.f32 %v2543_v8, %v2349_v58 }
 0x21b   : > { %v2352_v11 = vadd.f32 %v3555_v24, %v2191_v2  ;;  %v2613_v44 = vadd.f32 %v2612_v27, %v2582_v31 }
 0x21d   : > { %v3004_v5 = vpack.c.bf16 %v2352_v11, %v2349_v58  ;;  %v2583_v40 = vmul.f32 %v2352_v11, %v2352_v11  ;;  %v2545_v15 = vadd.f32 %v2544_v21, %v2352_v11 }
 0x21f   : > { %3035 = vst [vmem:[%s4855_s28 + $0x78] sm:$0xff] %v3004_v5   ;;  %v2546_v0 = vrot.slane %v2545_v15, 4  ;;  %v2614_v36 = vadd.f32 %v2613_v44, %v2583_v40 }
 0x221   : > { %v2547_v28 = vadd.f32 %v2546_v0, %v2545_v15  ;;  %v2615_v60 = vrot.slane %v2614_v36, 4 }
 0x223   : > { %v2548_v38 = vrot.slane %v2547_v28, 2  ;;  %v2616_v12 = vadd.f32 %v2615_v60, %v2614_v36 }
 0x225   : > { %v2549_v33 = vadd.f32 %v2548_v38, %v2547_v28  ;;  %v2617_v56 = vrot.slane %v2616_v12, 2 }
 0x227   : > { %v2550_v45 = vrot.slane %v2549_v33, 1  ;;  %v2618_v1 = vadd.f32 %v2617_v56, %v2616_v12 }
 0x229   : > { %v2619_v19 = vrot.slane %v2618_v1, 1  ;;  %v2551_v43 = vadd.f32 %v2550_v45, %v2549_v33 }
 0x22b   : > { %v2620_v35 = vadd.f32 %v2619_v19, %v2618_v1 }
 0x22d   : > { %v2622_v4 = vsel %vm612_vm0, %v2551_v43, %v2620_v35 }
 0x22e   : > { %2623 = vst [vmem:[%s235_s6] sm:$0x3] %v2622_v4 }
 0x22f PF: > { %s16_s18 = sadd.s32 1, %s3661_s18  }
 0x230   : > { %p13_p4 = scmp.ge.s32.totalorder %s16_s18, 4  }
 0x232   :  { %15 = sbr.rel (!%p13_p4) target bundleno = 1 (0x1), region = 78 }

</bundles_post_ra>
